<compile_context>
chip_gen: v7x
topology: tpu7x:2x2x1
jax: 0.10.0
libtpu: 0.0.40
codegen_flags: <defaults>
</compile_context>

<pallas_src>
import functools

import jax
import jax.numpy as jnp
from jax import lax
from jax.experimental import pallas as pl
from jax.experimental.pallas import tpu as pltpu


# ----------------------------------------------------------------------------
# Fused kernel: dw5x5 -> dw7x7(dil 3) -> 1x1 + gate, one grid step per batch.
# All tensors inside are lane-dense (H, W*C).
# ----------------------------------------------------------------------------
def _fused_lka_kernel(x_ref, w0t_ref, wspt_ref, w1p_ref, b_ref, o_ref,
                      xp0_ref, xp1_ref, apad_ref,
                      *, H, W, C, K0, P0, K1, P1, DIL):
    WC = W * C
    x = x_ref[0].astype(jnp.float32)                       # (H, W*C), u = x

    # ---- conv0: 5x5 depthwise, pad 2 --------------------------------------
    xp0_ref[...] = jnp.zeros_like(xp0_ref)                 # zero halo buffer
    xp0_ref[pl.ds(P0, H), pl.ds(P0 * C, WC)] = x           # place image interior
    acc = jnp.zeros((H, WC), jnp.float32)
    for kh in range(K0):                                   # static unrolled taps
        for kw in range(K0):
            patch = xp0_ref[pl.ds(kh, H), pl.ds(kw * C, WC)]
            acc = acc + patch * w0t_ref[pl.ds(kh * K0 + kw, 1), :]
    acc = acc + b_ref[pl.ds(0, 1), :]                      # + b0 (not foldable: zero pad)

    # ---- conv_spatial: 7x7 depthwise, dilation 3, pad 9 --------------------
    xp1_ref[...] = jnp.zeros_like(xp1_ref)
    xp1_ref[pl.ds(P1, H), pl.ds(P1 * C, WC)] = acc
    acc2 = jnp.zeros((H, WC), jnp.float32)
    for kh in range(K1):
        for kw in range(K1):
            patch = xp1_ref[pl.ds(kh * DIL, H), pl.ds(kw * DIL * C, WC)]
            acc2 = acc2 + patch * wspt_ref[pl.ds(kh * K1 + kw, 1), :]
    acc2 = acc2 + b_ref[pl.ds(1, 1), :]                    # + b_sp

    # ---- conv1 (1x1 channel mix) as lane-shifted VPU FMAs, then gate -------
    # apad[h, q] = attn[h, q-(C-1)], zero outside; shifted slices implement the
    # within-group channel mix with host-precomputed masked weight patterns.
    apad_ref[...] = jnp.zeros_like(apad_ref)
    apad_ref[pl.ds(0, H), pl.ds(C - 1, WC)] = acc2
    y = jnp.zeros((H, WC), jnp.float32) + b_ref[pl.ds(2, 1), :]   # start from b1
    for s in range(2 * C - 1):
        y = y + apad_ref[pl.ds(0, H), pl.ds(s, WC)] * w1p_ref[pl.ds(s, 1), :]

    o_ref[0] = (x * y).astype(o_ref.dtype)                 # out = u * attn


def attention_module(x_nhwc, params):
    """x: (B,H,W,C); params: w0 (5,5,C), b0 (C,), w_sp (7,7,C), b_sp (C,),
    w1 (Cin,Cout), b1 (Cout,)."""
    B, H, W, C = x_nhwc.shape
    WC = W * C
    K0, P0 = 5, 2
    K1, P1, DIL = 7, 9, 3

    # --- host-side weight plumbing (tiny, layout-only) ----------------------
    # Depthwise weights tiled along W so they broadcast lane-dense: [tap, w*C+c].
    w0t = jnp.tile(params["w0"].reshape(K0 * K0, C), (1, W))         # (25, W*C)
    wspt = jnp.tile(params["w_sp"].reshape(K1 * K1, C), (1, W))      # (49, W*C)
    # 1x1 conv as 2C-1 shifted-lane patterns: pattern[s, w*C+cout] =
    #   w1[cout + (s-(C-1)), cout] if that cin is in range, else 0.
    lane = jnp.arange(WC)
    cout = lane % C
    d = jnp.arange(2 * C - 1) - (C - 1)
    cin = cout[None, :] + d[:, None]
    valid = (cin >= 0) & (cin < C)
    w1pat = jnp.where(valid,
                      params["w1"][jnp.clip(cin, 0, C - 1), cout[None, :]],
                      0.0).astype(jnp.float32)                       # (2C-1, W*C)
    biases = jnp.stack([jnp.tile(params["b0"], W),
                        jnp.tile(params["b_sp"], W),
                        jnp.tile(params["b1"], W)], axis=0).astype(jnp.float32)  # (3, W*C)

    x2 = x_nhwc.reshape(B, H, WC)                                    # lane-dense view

    kernel = functools.partial(_fused_lka_kernel, H=H, W=W, C=C,
                               K0=K0, P0=P0, K1=K1, P1=P1, DIL=DIL)
    out2 = pl.pallas_call(
        kernel,
        out_shape=jax.ShapeDtypeStruct((B, H, WC), x_nhwc.dtype),
        grid_spec=pltpu.PrefetchScalarGridSpec(
            num_scalar_prefetch=0,
            grid=(B,),
            in_specs=[
                pl.BlockSpec((1, H, WC), lambda b: (b, 0, 0)),
                pl.BlockSpec((K0 * K0, WC), lambda b: (0, 0)),
                pl.BlockSpec((K1 * K1, WC), lambda b: (0, 0)),
                pl.BlockSpec((2 * C - 1, WC), lambda b: (0, 0)),
                pl.BlockSpec((3, WC), lambda b: (0, 0)),
            ],
            out_specs=pl.BlockSpec((1, H, WC), lambda b: (b, 0, 0)),
            scratch_shapes=[
                pltpu.VMEM((H + 2 * P0, (W + 2 * P0) * C), jnp.float32),   # conv0 halo
                pltpu.VMEM((H + 2 * P1, (W + 2 * P1) * C), jnp.float32),   # conv_sp halo
                pltpu.VMEM((H, WC + 2 * (C - 1)), jnp.float32),            # 1x1 lane halo
            ],
        ),
        compiler_params=pltpu.CompilerParams(
            dimension_semantics=("parallel",)),   # batch axis -> both v7x TCs
    )(x2, w0t, wspt, w1pat, biases)
    return out2.reshape(B, H, W, C)


# ----------------------------------------------------------------------------
# Pure-JAX reference for correctness checking.
# ----------------------------------------------------------------------------
def attention_module_ref(x_nhwc, params):
    dn = ("NHWC", "HWIO", "NHWC")
    C = x_nhwc.shape[-1]
    w0 = params["w0"][:, :, None, :]        # (5,5,1,C)
    wsp = params["w_sp"][:, :, None, :]     # (7,7,1,C)
    a = lax.conv_general_dilated(x_nhwc, w0, (1, 1), [(2, 2), (2, 2)],
                                 dimension_numbers=dn, feature_group_count=C,
                                 precision=lax.Precision.HIGHEST)
    a = a + params["b0"]
    a = lax.conv_general_dilated(a, wsp, (1, 1), [(9, 9), (9, 9)],
                                 rhs_dilation=(3, 3), dimension_numbers=dn,
                                 feature_group_count=C,
                                 precision=lax.Precision.HIGHEST)
    a = a + params["b_sp"]
    a = jnp.einsum("bhwc,cd->bhwd", a, params["w1"],
                   precision=lax.Precision.HIGHEST) + params["b1"]
    return x_nhwc * a


if __name__ == "__main__":
    B, H, W, dim = 2, 16, 16, 8
    key = jax.random.PRNGKey(0)
    ks = jax.random.split(key, 7)

    x = jax.random.normal(ks[0], (B, H, W, dim), jnp.float32)
    params = {
        "w0":   0.1 * jax.random.normal(ks[1], (5, 5, dim), jnp.float32),
        "b0":   0.1 * jax.random.normal(ks[2], (dim,), jnp.float32),
        "w_sp": 0.1 * jax.random.normal(ks[3], (7, 7, dim), jnp.float32),
        "b_sp": 0.1 * jax.random.normal(ks[4], (dim,), jnp.float32),
        "w1":   0.1 * jax.random.normal(ks[5], (dim, dim), jnp.float32),  # (Cin, Cout)
        "b1":   0.1 * jax.random.normal(ks[6], (dim,), jnp.float32),
    }

    out = jax.block_until_ready(jax.jit(attention_module)(x, params))
    ref = jax.block_until_ready(attention_module_ref(x, params))
    assert out.shape == (B, H, W, dim)
    assert jnp.allclose(out, ref, rtol=1e-4, atol=1e-4), "mismatch vs JAX reference"
    print("KERNEL_OK")
</pallas_src>

<mosaic_0001>
module attributes {stable_mosaic.version = 11 : i64} {
  func.func @_fused_lka_kernel(%arg0: i32, %arg1: memref<1x16x128xf32, #tpu.memory_space<vmem>>, %arg2: memref<25x128xf32, #tpu.memory_space<vmem>>, %arg3: memref<49x128xf32, #tpu.memory_space<vmem>>, %arg4: memref<15x128xf32, #tpu.memory_space<vmem>>, %arg5: memref<3x128xf32, #tpu.memory_space<vmem>>, %arg6: memref<1x16x128xf32, #tpu.memory_space<vmem>>, %arg7: memref<20x160xf32, #tpu.memory_space<vmem>>, %arg8: memref<34x272xf32, #tpu.memory_space<vmem>>, %arg9: memref<16x142xf32, #tpu.memory_space<vmem>>) attributes {dimension_semantics = [#tpu.dimension_semantics<parallel>], iteration_bounds = array<i64: 2>, scalar_prefetch = 0 : i64, scratch_operands = 3 : i64, tpu.core_type = #tpu.core_type<tc>, window_params = [{transform_indices = @transform_0, window_bounds = array<i64: 1, 16, 128>}, {pipeline_mode = #tpu.pipeline_mode<synchronous>, transform_indices = @transform_1, window_bounds = array<i64: 25, 128>}, {pipeline_mode = #tpu.pipeline_mode<synchronous>, transform_indices = @transform_2, window_bounds = array<i64: 49, 128>}, {pipeline_mode = #tpu.pipeline_mode<synchronous>, transform_indices = @transform_3, window_bounds = array<i64: 15, 128>}, {pipeline_mode = #tpu.pipeline_mode<synchronous>, transform_indices = @transform_4, window_bounds = array<i64: 3, 128>}, {transform_indices = @transform_5, window_bounds = array<i64: 1, 16, 128>}]} {
    %c0 = arith.constant 0 : index
    %c0_0 = arith.constant 0 : index
    %c0_1 = arith.constant 0 : index
    %0 = vector.load %arg1[%c0, %c0_0, %c0_1] : memref<1x16x128xf32, #tpu.memory_space<vmem>>, vector<1x16x128xf32>
    %1 = vector.shape_cast %0 : vector<1x16x128xf32> to vector<16x128xf32>
    %cst = arith.constant 0.000000e+00 : f32
    %2 = vector.broadcast %cst : f32 to vector<20x160xf32>
    %c0_2 = arith.constant 0 : index
    %c0_3 = arith.constant 0 : index
    %3 = vector.load %arg7[%c0_2, %c0_3] : memref<20x160xf32, #tpu.memory_space<vmem>>, vector<20x160xf32>
    tpu.vector_store %arg7[%c0_2, %c0_3], %2 {strides = array<i32>} : memref<20x160xf32, #tpu.memory_space<vmem>>, vector<20x160xf32>,
    %c2 = arith.constant 2 : index
    %c16 = arith.constant 16 : index
    %4 = vector.load %arg7[%c2, %c16] : memref<20x160xf32, #tpu.memory_space<vmem>>, vector<16x128xf32>
    tpu.vector_store %arg7[%c2, %c16], %1 {strides = array<i32>} : memref<20x160xf32, #tpu.memory_space<vmem>>, vector<16x128xf32>,
    %cst_4 = arith.constant 0.000000e+00 : f32
    %5 = vector.broadcast %cst_4 : f32 to vector<16x128xf32>
    %c0_5 = arith.constant 0 : index
    %c0_6 = arith.constant 0 : index
    %6 = vector.load %arg7[%c0_5, %c0_6] : memref<20x160xf32, #tpu.memory_space<vmem>>, vector<16x128xf32>
    %c0_7 = arith.constant 0 : index
    %c0_8 = arith.constant 0 : index
    %7 = vector.load %arg2[%c0_7, %c0_8] : memref<25x128xf32, #tpu.memory_space<vmem>>, vector<1x128xf32>
    %8 = vector.broadcast %7 : vector<1x128xf32> to vector<16x128xf32>
    %9 = arith.mulf %6, %8 : vector<16x128xf32>
    %10 = arith.addf %5, %9 : vector<16x128xf32>
    %c0_9 = arith.constant 0 : index
    %c8 = arith.constant 8 : index
    %11 = vector.load %arg7[%c0_9, %c8] : memref<20x160xf32, #tpu.memory_space<vmem>>, vector<16x128xf32>
    %c1 = arith.constant 1 : index
    %c0_10 = arith.constant 0 : index
    %12 = vector.load %arg2[%c1, %c0_10] : memref<25x128xf32, #tpu.memory_space<vmem>>, vector<1x128xf32>
    %13 = vector.broadcast %12 : vector<1x128xf32> to vector<16x128xf32>
    %14 = arith.mulf %11, %13 : vector<16x128xf32>
    %15 = arith.addf %10, %14 : vector<16x128xf32>
    %c0_11 = arith.constant 0 : index
    %c16_12 = arith.constant 16 : index
    %16 = vector.load %arg7[%c0_11, %c16_12] : memref<20x160xf32, #tpu.memory_space<vmem>>, vector<16x128xf32>
    %c2_13 = arith.constant 2 : index
    %c0_14 = arith.constant 0 : index
    %17 = vector.load %arg2[%c2_13, %c0_14] : memref<25x128xf32, #tpu.memory_space<vmem>>, vector<1x128xf32>
    %18 = vector.broadcast %17 : vector<1x128xf32> to vector<16x128xf32>
    %19 = arith.mulf %16, %18 : vector<16x128xf32>
    %20 = arith.addf %15, %19 : vector<16x128xf32>
    %c0_15 = arith.constant 0 : index
    %c24 = arith.constant 24 : index
    %21 = vector.load %arg7[%c0_15, %c24] : memref<20x160xf32, #tpu.memory_space<vmem>>, vector<16x128xf32>
    %c3 = arith.constant 3 : index
    %c0_16 = arith.constant 0 : index
    %22 = vector.load %arg2[%c3, %c0_16] : memref<25x128xf32, #tpu.memory_space<vmem>>, vector<1x128xf32>
    %23 = vector.broadcast %22 : vector<1x128xf32> to vector<16x128xf32>
    %24 = arith.mulf %21, %23 : vector<16x128xf32>
    %25 = arith.addf %20, %24 : vector<16x128xf32>
    %c0_17 = arith.constant 0 : index
    %c32 = arith.constant 32 : index
    %26 = vector.load %arg7[%c0_17, %c32] : memref<20x160xf32, #tpu.memory_space<vmem>>, vector<16x128xf32>
    %c4 = arith.constant 4 : index
    %c0_18 = arith.constant 0 : index
    %27 = vector.load %arg2[%c4, %c0_18] : memref<25x128xf32, #tpu.memory_space<vmem>>, vector<1x128xf32>
    %28 = vector.broadcast %27 : vector<1x128xf32> to vector<16x128xf32>
    %29 = arith.mulf %26, %28 : vector<16x128xf32>
    %30 = arith.addf %25, %29 : vector<16x128xf32>
    %c1_19 = arith.constant 1 : index
    %c0_20 = arith.constant 0 : index
    %31 = vector.load %arg7[%c1_19, %c0_20] : memref<20x160xf32, #tpu.memory_space<vmem>>, vector<16x128xf32>
    %c5 = arith.constant 5 : index
    %c0_21 = arith.constant 0 : index
    %32 = vector.load %arg2[%c5, %c0_21] : memref<25x128xf32, #tpu.memory_space<vmem>>, vector<1x128xf32>
    %33 = vector.broadcast %32 : vector<1x128xf32> to vector<16x128xf32>
    %34 = arith.mulf %31, %33 : vector<16x128xf32>
    %35 = arith.addf %30, %34 : vector<16x128xf32>
    %c1_22 = arith.constant 1 : index
    %c8_23 = arith.constant 8 : index
    %36 = vector.load %arg7[%c1_22, %c8_23] : memref<20x160xf32, #tpu.memory_space<vmem>>, vector<16x128xf32>
    %c6 = arith.constant 6 : index
    %c0_24 = arith.constant 0 : index
    %37 = vector.load %arg2[%c6, %c0_24] : memref<25x128xf32, #tpu.memory_space<vmem>>, vector<1x128xf32>
    %38 = vector.broadcast %37 : vector<1x128xf32> to vector<16x128xf32>
    %39 = arith.mulf %36, %38 : vector<16x128xf32>
    %40 = arith.addf %35, %39 : vector<16x128xf32>
    %c1_25 = arith.constant 1 : index
    %c16_26 = arith.constant 16 : index
    %41 = vector.load %arg7[%c1_25, %c16_26] : memref<20x160xf32, #tpu.memory_space<vmem>>, vector<16x128xf32>
    %c7 = arith.constant 7 : index
    %c0_27 = arith.constant 0 : index
    %42 = vector.load %arg2[%c7, %c0_27] : memref<25x128xf32, #tpu.memory_space<vmem>>, vector<1x128xf32>
    %43 = vector.broadcast %42 : vector<1x128xf32> to vector<16x128xf32>
    %44 = arith.mulf %41, %43 : vector<16x128xf32>
    %45 = arith.addf %40, %44 : vector<16x128xf32>
    %c1_28 = arith.constant 1 : index
    %c24_29 = arith.constant 24 : index
    %46 = vector.load %arg7[%c1_28, %c24_29] : memref<20x160xf32, #tpu.memory_space<vmem>>, vector<16x128xf32>
    %c8_30 = arith.constant 8 : index
    %c0_31 = arith.constant 0 : index
    %47 = vector.load %arg2[%c8_30, %c0_31] : memref<25x128xf32, #tpu.memory_space<vmem>>, vector<1x128xf32>
    %48 = vector.broadcast %47 : vector<1x128xf32> to vector<16x128xf32>
    %49 = arith.mulf %46, %48 : vector<16x128xf32>
    %50 = arith.addf %45, %49 : vector<16x128xf32>
    %c1_32 = arith.constant 1 : index
    %c32_33 = arith.constant 32 : index
    %51 = vector.load %arg7[%c1_32, %c32_33] : memref<20x160xf32, #tpu.memory_space<vmem>>, vector<16x128xf32>
    %c9 = arith.constant 9 : index
    %c0_34 = arith.constant 0 : index
    %52 = vector.load %arg2[%c9, %c0_34] : memref<25x128xf32, #tpu.memory_space<vmem>>, vector<1x128xf32>
    %53 = vector.broadcast %52 : vector<1x128xf32> to vector<16x128xf32>
    %54 = arith.mulf %51, %53 : vector<16x128xf32>
    %55 = arith.addf %50, %54 : vector<16x128xf32>
    %c2_35 = arith.constant 2 : index
    %c0_36 = arith.constant 0 : index
    %56 = vector.load %arg7[%c2_35, %c0_36] : memref<20x160xf32, #tpu.memory_space<vmem>>, vector<16x128xf32>
    %c10 = arith.constant 10 : index
    %c0_37 = arith.constant 0 : index
    %57 = vector.load %arg2[%c10, %c0_37] : memref<25x128xf32, #tpu.memory_space<vmem>>, vector<1x128xf32>
    %58 = vector.broadcast %57 : vector<1x128xf32> to vector<16x128xf32>
    %59 = arith.mulf %56, %58 : vector<16x128xf32>
    %60 = arith.addf %55, %59 : vector<16x128xf32>
    %c2_38 = arith.constant 2 : index
    %c8_39 = arith.constant 8 : index
    %61 = vector.load %arg7[%c2_38, %c8_39] : memref<20x160xf32, #tpu.memory_space<vmem>>, vector<16x128xf32>
    %c11 = arith.constant 11 : index
    %c0_40 = arith.constant 0 : index
    %62 = vector.load %arg2[%c11, %c0_40] : memref<25x128xf32, #tpu.memory_space<vmem>>, vector<1x128xf32>
    %63 = vector.broadcast %62 : vector<1x128xf32> to vector<16x128xf32>
    %64 = arith.mulf %61, %63 : vector<16x128xf32>
    %65 = arith.addf %60, %64 : vector<16x128xf32>
    %c2_41 = arith.constant 2 : index
    %c16_42 = arith.constant 16 : index
    %66 = vector.load %arg7[%c2_41, %c16_42] : memref<20x160xf32, #tpu.memory_space<vmem>>, vector<16x128xf32>
    %c12 = arith.constant 12 : index
    %c0_43 = arith.constant 0 : index
    %67 = vector.load %arg2[%c12, %c0_43] : memref<25x128xf32, #tpu.memory_space<vmem>>, vector<1x128xf32>
    %68 = vector.broadcast %67 : vector<1x128xf32> to vector<16x128xf32>
    %69 = arith.mulf %66, %68 : vector<16x128xf32>
    %70 = arith.addf %65, %69 : vector<16x128xf32>
    %c2_44 = arith.constant 2 : index
    %c24_45 = arith.constant 24 : index
    %71 = vector.load %arg7[%c2_44, %c24_45] : memref<20x160xf32, #tpu.memory_space<vmem>>, vector<16x128xf32>
    %c13 = arith.constant 13 : index
    %c0_46 = arith.constant 0 : index
    %72 = vector.load %arg2[%c13, %c0_46] : memref<25x128xf32, #tpu.memory_space<vmem>>, vector<1x128xf32>
    %73 = vector.broadcast %72 : vector<1x128xf32> to vector<16x128xf32>
    %74 = arith.mulf %71, %73 : vector<16x128xf32>
    %75 = arith.addf %70, %74 : vector<16x128xf32>
    %c2_47 = arith.constant 2 : index
    %c32_48 = arith.constant 32 : index
    %76 = vector.load %arg7[%c2_47, %c32_48] : memref<20x160xf32, #tpu.memory_space<vmem>>, vector<16x128xf32>
    %c14 = arith.constant 14 : index
    %c0_49 = arith.constant 0 : index
    %77 = vector.load %arg2[%c14, %c0_49] : memref<25x128xf32, #tpu.memory_space<vmem>>, vector<1x128xf32>
    %78 = vector.broadcast %77 : vector<1x128xf32> to vector<16x128xf32>
    %79 = arith.mulf %76, %78 : vector<16x128xf32>
    %80 = arith.addf %75, %79 : vector<16x128xf32>
    %c3_50 = arith.constant 3 : index
    %c0_51 = arith.constant 0 : index
    %81 = vector.load %arg7[%c3_50, %c0_51] : memref<20x160xf32, #tpu.memory_space<vmem>>, vector<16x128xf32>
    %c15 = arith.constant 15 : index
    %c0_52 = arith.constant 0 : index
    %82 = vector.load %arg2[%c15, %c0_52] : memref<25x128xf32, #tpu.memory_space<vmem>>, vector<1x128xf32>
    %83 = vector.broadcast %82 : vector<1x128xf32> to vector<16x128xf32>
    %84 = arith.mulf %81, %83 : vector<16x128xf32>
    %85 = arith.addf %80, %84 : vector<16x128xf32>
    %c3_53 = arith.constant 3 : index
    %c8_54 = arith.constant 8 : index
    %86 = vector.load %arg7[%c3_53, %c8_54] : memref<20x160xf32, #tpu.memory_space<vmem>>, vector<16x128xf32>
    %c16_55 = arith.constant 16 : index
    %c0_56 = arith.constant 0 : index
    %87 = vector.load %arg2[%c16_55, %c0_56] : memref<25x128xf32, #tpu.memory_space<vmem>>, vector<1x128xf32>
    %88 = vector.broadcast %87 : vector<1x128xf32> to vector<16x128xf32>
    %89 = arith.mulf %86, %88 : vector<16x128xf32>
    %90 = arith.addf %85, %89 : vector<16x128xf32>
    %c3_57 = arith.constant 3 : index
    %c16_58 = arith.constant 16 : index
    %91 = vector.load %arg7[%c3_57, %c16_58] : memref<20x160xf32, #tpu.memory_space<vmem>>, vector<16x128xf32>
    %c17 = arith.constant 17 : index
    %c0_59 = arith.constant 0 : index
    %92 = vector.load %arg2[%c17, %c0_59] : memref<25x128xf32, #tpu.memory_space<vmem>>, vector<1x128xf32>
    %93 = vector.broadcast %92 : vector<1x128xf32> to vector<16x128xf32>
    %94 = arith.mulf %91, %93 : vector<16x128xf32>
    %95 = arith.addf %90, %94 : vector<16x128xf32>
    %c3_60 = arith.constant 3 : index
    %c24_61 = arith.constant 24 : index
    %96 = vector.load %arg7[%c3_60, %c24_61] : memref<20x160xf32, #tpu.memory_space<vmem>>, vector<16x128xf32>
    %c18 = arith.constant 18 : index
    %c0_62 = arith.constant 0 : index
    %97 = vector.load %arg2[%c18, %c0_62] : memref<25x128xf32, #tpu.memory_space<vmem>>, vector<1x128xf32>
    %98 = vector.broadcast %97 : vector<1x128xf32> to vector<16x128xf32>
    %99 = arith.mulf %96, %98 : vector<16x128xf32>
    %100 = arith.addf %95, %99 : vector<16x128xf32>
    %c3_63 = arith.constant 3 : index
    %c32_64 = arith.constant 32 : index
    %101 = vector.load %arg7[%c3_63, %c32_64] : memref<20x160xf32, #tpu.memory_space<vmem>>, vector<16x128xf32>
    %c19 = arith.constant 19 : index
    %c0_65 = arith.constant 0 : index
    %102 = vector.load %arg2[%c19, %c0_65] : memref<25x128xf32, #tpu.memory_space<vmem>>, vector<1x128xf32>
    %103 = vector.broadcast %102 : vector<1x128xf32> to vector<16x128xf32>
    %104 = arith.mulf %101, %103 : vector<16x128xf32>
    %105 = arith.addf %100, %104 : vector<16x128xf32>
    %c4_66 = arith.constant 4 : index
    %c0_67 = arith.constant 0 : index
    %106 = vector.load %arg7[%c4_66, %c0_67] : memref<20x160xf32, #tpu.memory_space<vmem>>, vector<16x128xf32>
    %c20 = arith.constant 20 : index
    %c0_68 = arith.constant 0 : index
    %107 = vector.load %arg2[%c20, %c0_68] : memref<25x128xf32, #tpu.memory_space<vmem>>, vector<1x128xf32>
    %108 = vector.broadcast %107 : vector<1x128xf32> to vector<16x128xf32>
    %109 = arith.mulf %106, %108 : vector<16x128xf32>
    %110 = arith.addf %105, %109 : vector<16x128xf32>
    %c4_69 = arith.constant 4 : index
    %c8_70 = arith.constant 8 : index
    %111 = vector.load %arg7[%c4_69, %c8_70] : memref<20x160xf32, #tpu.memory_space<vmem>>, vector<16x128xf32>
    %c21 = arith.constant 21 : index
    %c0_71 = arith.constant 0 : index
    %112 = vector.load %arg2[%c21, %c0_71] : memref<25x128xf32, #tpu.memory_space<vmem>>, vector<1x128xf32>
    %113 = vector.broadcast %112 : vector<1x128xf32> to vector<16x128xf32>
    %114 = arith.mulf %111, %113 : vector<16x128xf32>
    %115 = arith.addf %110, %114 : vector<16x128xf32>
    %c4_72 = arith.constant 4 : index
    %c16_73 = arith.constant 16 : index
    %116 = vector.load %arg7[%c4_72, %c16_73] : memref<20x160xf32, #tpu.memory_space<vmem>>, vector<16x128xf32>
    %c22 = arith.constant 22 : index
    %c0_74 = arith.constant 0 : index
    %117 = vector.load %arg2[%c22, %c0_74] : memref<25x128xf32, #tpu.memory_space<vmem>>, vector<1x128xf32>
    %118 = vector.broadcast %117 : vector<1x128xf32> to vector<16x128xf32>
    %119 = arith.mulf %116, %118 : vector<16x128xf32>
    %120 = arith.addf %115, %119 : vector<16x128xf32>
    %c4_75 = arith.constant 4 : index
    %c24_76 = arith.constant 24 : index
    %121 = vector.load %arg7[%c4_75, %c24_76] : memref<20x160xf32, #tpu.memory_space<vmem>>, vector<16x128xf32>
    %c23 = arith.constant 23 : index
    %c0_77 = arith.constant 0 : index
    %122 = vector.load %arg2[%c23, %c0_77] : memref<25x128xf32, #tpu.memory_space<vmem>>, vector<1x128xf32>
    %123 = vector.broadcast %122 : vector<1x128xf32> to vector<16x128xf32>
    %124 = arith.mulf %121, %123 : vector<16x128xf32>
    %125 = arith.addf %120, %124 : vector<16x128xf32>
    %c4_78 = arith.constant 4 : index
    %c32_79 = arith.constant 32 : index
    %126 = vector.load %arg7[%c4_78, %c32_79] : memref<20x160xf32, #tpu.memory_space<vmem>>, vector<16x128xf32>
    %c24_80 = arith.constant 24 : index
    %c0_81 = arith.constant 0 : index
    %127 = vector.load %arg2[%c24_80, %c0_81] : memref<25x128xf32, #tpu.memory_space<vmem>>, vector<1x128xf32>
    %128 = vector.broadcast %127 : vector<1x128xf32> to vector<16x128xf32>
    %129 = arith.mulf %126, %128 : vector<16x128xf32>
    %130 = arith.addf %125, %129 : vector<16x128xf32>
    %c0_82 = arith.constant 0 : index
    %c0_83 = arith.constant 0 : index
    %131 = vector.load %arg5[%c0_82, %c0_83] : memref<3x128xf32, #tpu.memory_space<vmem>>, vector<1x128xf32>
    %132 = vector.broadcast %131 : vector<1x128xf32> to vector<16x128xf32>
    %133 = arith.addf %130, %132 : vector<16x128xf32>
    %cst_84 = arith.constant 0.000000e+00 : f32
    %134 = vector.broadcast %cst_84 : f32 to vector<34x272xf32>
    %c0_85 = arith.constant 0 : index
    %c0_86 = arith.constant 0 : index
    %135 = vector.load %arg8[%c0_85, %c0_86] : memref<34x272xf32, #tpu.memory_space<vmem>>, vector<34x272xf32>
    tpu.vector_store %arg8[%c0_85, %c0_86], %134 {strides = array<i32>} : memref<34x272xf32, #tpu.memory_space<vmem>>, vector<34x272xf32>,
    %c9_87 = arith.constant 9 : index
    %c72 = arith.constant 72 : index
    %136 = vector.load %arg8[%c9_87, %c72] : memref<34x272xf32, #tpu.memory_space<vmem>>, vector<16x128xf32>
    tpu.vector_store %arg8[%c9_87, %c72], %133 {strides = array<i32>} : memref<34x272xf32, #tpu.memory_space<vmem>>, vector<16x128xf32>,
    %cst_88 = arith.constant 0.000000e+00 : f32
    %137 = vector.broadcast %cst_88 : f32 to vector<16x128xf32>
    %c0_89 = arith.constant 0 : index
    %c0_90 = arith.constant 0 : index
    %138 = vector.load %arg8[%c0_89, %c0_90] : memref<34x272xf32, #tpu.memory_space<vmem>>, vector<16x128xf32>
    %c0_91 = arith.constant 0 : index
    %c0_92 = arith.constant 0 : index
    %139 = vector.load %arg3[%c0_91, %c0_92] : memref<49x128xf32, #tpu.memory_space<vmem>>, vector<1x128xf32>
    %140 = vector.broadcast %139 : vector<1x128xf32> to vector<16x128xf32>
    %141 = arith.mulf %138, %140 : vector<16x128xf32>
    %142 = arith.addf %137, %141 : vector<16x128xf32>
    %c0_93 = arith.constant 0 : index
    %c24_94 = arith.constant 24 : index
    %143 = vector.load %arg8[%c0_93, %c24_94] : memref<34x272xf32, #tpu.memory_space<vmem>>, vector<16x128xf32>
    %c1_95 = arith.constant 1 : index
    %c0_96 = arith.constant 0 : index
    %144 = vector.load %arg3[%c1_95, %c0_96] : memref<49x128xf32, #tpu.memory_space<vmem>>, vector<1x128xf32>
    %145 = vector.broadcast %144 : vector<1x128xf32> to vector<16x128xf32>
    %146 = arith.mulf %143, %145 : vector<16x128xf32>
    %147 = arith.addf %142, %146 : vector<16x128xf32>
    %c0_97 = arith.constant 0 : index
    %c48 = arith.constant 48 : index
    %148 = vector.load %arg8[%c0_97, %c48] : memref<34x272xf32, #tpu.memory_space<vmem>>, vector<16x128xf32>
    %c2_98 = arith.constant 2 : index
    %c0_99 = arith.constant 0 : index
    %149 = vector.load %arg3[%c2_98, %c0_99] : memref<49x128xf32, #tpu.memory_space<vmem>>, vector<1x128xf32>
    %150 = vector.broadcast %149 : vector<1x128xf32> to vector<16x128xf32>
    %151 = arith.mulf %148, %150 : vector<16x128xf32>
    %152 = arith.addf %147, %151 : vector<16x128xf32>
    %c0_100 = arith.constant 0 : index
    %c72_101 = arith.constant 72 : index
    %153 = vector.load %arg8[%c0_100, %c72_101] : memref<34x272xf32, #tpu.memory_space<vmem>>, vector<16x128xf32>
    %c3_102 = arith.constant 3 : index
    %c0_103 = arith.constant 0 : index
    %154 = vector.load %arg3[%c3_102, %c0_103] : memref<49x128xf32, #tpu.memory_space<vmem>>, vector<1x128xf32>
    %155 = vector.broadcast %154 : vector<1x128xf32> to vector<16x128xf32>
    %156 = arith.mulf %153, %155 : vector<16x128xf32>
    %157 = arith.addf %152, %156 : vector<16x128xf32>
    %c0_104 = arith.constant 0 : index
    %c96 = arith.constant 96 : index
    %158 = vector.load %arg8[%c0_104, %c96] : memref<34x272xf32, #tpu.memory_space<vmem>>, vector<16x128xf32>
    %c4_105 = arith.constant 4 : index
    %c0_106 = arith.constant 0 : index
    %159 = vector.load %arg3[%c4_105, %c0_106] : memref<49x128xf32, #tpu.memory_space<vmem>>, vector<1x128xf32>
    %160 = vector.broadcast %159 : vector<1x128xf32> to vector<16x128xf32>
    %161 = arith.mulf %158, %160 : vector<16x128xf32>
    %162 = arith.addf %157, %161 : vector<16x128xf32>
    %c0_107 = arith.constant 0 : index
    %c120 = arith.constant 120 : index
    %163 = vector.load %arg8[%c0_107, %c120] : memref<34x272xf32, #tpu.memory_space<vmem>>, vector<16x128xf32>
    %c5_108 = arith.constant 5 : index
    %c0_109 = arith.constant 0 : index
    %164 = vector.load %arg3[%c5_108, %c0_109] : memref<49x128xf32, #tpu.memory_space<vmem>>, vector<1x128xf32>
    %165 = vector.broadcast %164 : vector<1x128xf32> to vector<16x128xf32>
    %166 = arith.mulf %163, %165 : vector<16x128xf32>
    %167 = arith.addf %162, %166 : vector<16x128xf32>
    %c0_110 = arith.constant 0 : index
    %c144 = arith.constant 144 : index
    %168 = vector.load %arg8[%c0_110, %c144] : memref<34x272xf32, #tpu.memory_space<vmem>>, vector<16x128xf32>
    %c6_111 = arith.constant 6 : index
    %c0_112 = arith.constant 0 : index
    %169 = vector.load %arg3[%c6_111, %c0_112] : memref<49x128xf32, #tpu.memory_space<vmem>>, vector<1x128xf32>
    %170 = vector.broadcast %169 : vector<1x128xf32> to vector<16x128xf32>
    %171 = arith.mulf %168, %170 : vector<16x128xf32>
    %172 = arith.addf %167, %171 : vector<16x128xf32>
    %c3_113 = arith.constant 3 : index
    %c0_114 = arith.constant 0 : index
    %173 = vector.load %arg8[%c3_113, %c0_114] : memref<34x272xf32, #tpu.memory_space<vmem>>, vector<16x128xf32>
    %c7_115 = arith.constant 7 : index
    %c0_116 = arith.constant 0 : index
    %174 = vector.load %arg3[%c7_115, %c0_116] : memref<49x128xf32, #tpu.memory_space<vmem>>, vector<1x128xf32>
    %175 = vector.broadcast %174 : vector<1x128xf32> to vector<16x128xf32>
    %176 = arith.mulf %173, %175 : vector<16x128xf32>
    %177 = arith.addf %172, %176 : vector<16x128xf32>
    %c3_117 = arith.constant 3 : index
    %c24_118 = arith.constant 24 : index
    %178 = vector.load %arg8[%c3_117, %c24_118] : memref<34x272xf32, #tpu.memory_space<vmem>>, vector<16x128xf32>
    %c8_119 = arith.constant 8 : index
    %c0_120 = arith.constant 0 : index
    %179 = vector.load %arg3[%c8_119, %c0_120] : memref<49x128xf32, #tpu.memory_space<vmem>>, vector<1x128xf32>
    %180 = vector.broadcast %179 : vector<1x128xf32> to vector<16x128xf32>
    %181 = arith.mulf %178, %180 : vector<16x128xf32>
    %182 = arith.addf %177, %181 : vector<16x128xf32>
    %c3_121 = arith.constant 3 : index
    %c48_122 = arith.constant 48 : index
    %183 = vector.load %arg8[%c3_121, %c48_122] : memref<34x272xf32, #tpu.memory_space<vmem>>, vector<16x128xf32>
    %c9_123 = arith.constant 9 : index
    %c0_124 = arith.constant 0 : index
    %184 = vector.load %arg3[%c9_123, %c0_124] : memref<49x128xf32, #tpu.memory_space<vmem>>, vector<1x128xf32>
    %185 = vector.broadcast %184 : vector<1x128xf32> to vector<16x128xf32>
    %186 = arith.mulf %183, %185 : vector<16x128xf32>
    %187 = arith.addf %182, %186 : vector<16x128xf32>
    %c3_125 = arith.constant 3 : index
    %c72_126 = arith.constant 72 : index
    %188 = vector.load %arg8[%c3_125, %c72_126] : memref<34x272xf32, #tpu.memory_space<vmem>>, vector<16x128xf32>
    %c10_127 = arith.constant 10 : index
    %c0_128 = arith.constant 0 : index
    %189 = vector.load %arg3[%c10_127, %c0_128] : memref<49x128xf32, #tpu.memory_space<vmem>>, vector<1x128xf32>
    %190 = vector.broadcast %189 : vector<1x128xf32> to vector<16x128xf32>
    %191 = arith.mulf %188, %190 : vector<16x128xf32>
    %192 = arith.addf %187, %191 : vector<16x128xf32>
    %c3_129 = arith.constant 3 : index
    %c96_130 = arith.constant 96 : index
    %193 = vector.load %arg8[%c3_129, %c96_130] : memref<34x272xf32, #tpu.memory_space<vmem>>, vector<16x128xf32>
    %c11_131 = arith.constant 11 : index
    %c0_132 = arith.constant 0 : index
    %194 = vector.load %arg3[%c11_131, %c0_132] : memref<49x128xf32, #tpu.memory_space<vmem>>, vector<1x128xf32>
    %195 = vector.broadcast %194 : vector<1x128xf32> to vector<16x128xf32>
    %196 = arith.mulf %193, %195 : vector<16x128xf32>
    %197 = arith.addf %192, %196 : vector<16x128xf32>
    %c3_133 = arith.constant 3 : index
    %c120_134 = arith.constant 120 : index
    %198 = vector.load %arg8[%c3_133, %c120_134] : memref<34x272xf32, #tpu.memory_space<vmem>>, vector<16x128xf32>
    %c12_135 = arith.constant 12 : index
    %c0_136 = arith.constant 0 : index
    %199 = vector.load %arg3[%c12_135, %c0_136] : memref<49x128xf32, #tpu.memory_space<vmem>>, vector<1x128xf32>
    %200 = vector.broadcast %199 : vector<1x128xf32> to vector<16x128xf32>
    %201 = arith.mulf %198, %200 : vector<16x128xf32>
    %202 = arith.addf %197, %201 : vector<16x128xf32>
    %c3_137 = arith.constant 3 : index
    %c144_138 = arith.constant 144 : index
    %203 = vector.load %arg8[%c3_137, %c144_138] : memref<34x272xf32, #tpu.memory_space<vmem>>, vector<16x128xf32>
    %c13_139 = arith.constant 13 : index
    %c0_140 = arith.constant 0 : index
    %204 = vector.load %arg3[%c13_139, %c0_140] : memref<49x128xf32, #tpu.memory_space<vmem>>, vector<1x128xf32>
    %205 = vector.broadcast %204 : vector<1x128xf32> to vector<16x128xf32>
    %206 = arith.mulf %203, %205 : vector<16x128xf32>
    %207 = arith.addf %202, %206 : vector<16x128xf32>
    %c6_141 = arith.constant 6 : index
    %c0_142 = arith.constant 0 : index
    %208 = vector.load %arg8[%c6_141, %c0_142] : memref<34x272xf32, #tpu.memory_space<vmem>>, vector<16x128xf32>
    %c14_143 = arith.constant 14 : index
    %c0_144 = arith.constant 0 : index
    %209 = vector.load %arg3[%c14_143, %c0_144] : memref<49x128xf32, #tpu.memory_space<vmem>>, vector<1x128xf32>
    %210 = vector.broadcast %209 : vector<1x128xf32> to vector<16x128xf32>
    %211 = arith.mulf %208, %210 : vector<16x128xf32>
    %212 = arith.addf %207, %211 : vector<16x128xf32>
    %c6_145 = arith.constant 6 : index
    %c24_146 = arith.constant 24 : index
    %213 = vector.load %arg8[%c6_145, %c24_146] : memref<34x272xf32, #tpu.memory_space<vmem>>, vector<16x128xf32>
    %c15_147 = arith.constant 15 : index
    %c0_148 = arith.constant 0 : index
    %214 = vector.load %arg3[%c15_147, %c0_148] : memref<49x128xf32, #tpu.memory_space<vmem>>, vector<1x128xf32>
    %215 = vector.broadcast %214 : vector<1x128xf32> to vector<16x128xf32>
    %216 = arith.mulf %213, %215 : vector<16x128xf32>
    %217 = arith.addf %212, %216 : vector<16x128xf32>
    %c6_149 = arith.constant 6 : index
    %c48_150 = arith.constant 48 : index
    %218 = vector.load %arg8[%c6_149, %c48_150] : memref<34x272xf32, #tpu.memory_space<vmem>>, vector<16x128xf32>
    %c16_151 = arith.constant 16 : index
    %c0_152 = arith.constant 0 : index
    %219 = vector.load %arg3[%c16_151, %c0_152] : memref<49x128xf32, #tpu.memory_space<vmem>>, vector<1x128xf32>
    %220 = vector.broadcast %219 : vector<1x128xf32> to vector<16x128xf32>
    %221 = arith.mulf %218, %220 : vector<16x128xf32>
    %222 = arith.addf %217, %221 : vector<16x128xf32>
    %c6_153 = arith.constant 6 : index
    %c72_154 = arith.constant 72 : index
    %223 = vector.load %arg8[%c6_153, %c72_154] : memref<34x272xf32, #tpu.memory_space<vmem>>, vector<16x128xf32>
    %c17_155 = arith.constant 17 : index
    %c0_156 = arith.constant 0 : index
    %224 = vector.load %arg3[%c17_155, %c0_156] : memref<49x128xf32, #tpu.memory_space<vmem>>, vector<1x128xf32>
    %225 = vector.broadcast %224 : vector<1x128xf32> to vector<16x128xf32>
    %226 = arith.mulf %223, %225 : vector<16x128xf32>
    %227 = arith.addf %222, %226 : vector<16x128xf32>
    %c6_157 = arith.constant 6 : index
    %c96_158 = arith.constant 96 : index
    %228 = vector.load %arg8[%c6_157, %c96_158] : memref<34x272xf32, #tpu.memory_space<vmem>>, vector<16x128xf32>
    %c18_159 = arith.constant 18 : index
    %c0_160 = arith.constant 0 : index
    %229 = vector.load %arg3[%c18_159, %c0_160] : memref<49x128xf32, #tpu.memory_space<vmem>>, vector<1x128xf32>
    %230 = vector.broadcast %229 : vector<1x128xf32> to vector<16x128xf32>
    %231 = arith.mulf %228, %230 : vector<16x128xf32>
    %232 = arith.addf %227, %231 : vector<16x128xf32>
    %c6_161 = arith.constant 6 : index
    %c120_162 = arith.constant 120 : index
    %233 = vector.load %arg8[%c6_161, %c120_162] : memref<34x272xf32, #tpu.memory_space<vmem>>, vector<16x128xf32>
    %c19_163 = arith.constant 19 : index
    %c0_164 = arith.constant 0 : index
    %234 = vector.load %arg3[%c19_163, %c0_164] : memref<49x128xf32, #tpu.memory_space<vmem>>, vector<1x128xf32>
    %235 = vector.broadcast %234 : vector<1x128xf32> to vector<16x128xf32>
    %236 = arith.mulf %233, %235 : vector<16x128xf32>
    %237 = arith.addf %232, %236 : vector<16x128xf32>
    %c6_165 = arith.constant 6 : index
    %c144_166 = arith.constant 144 : index
    %238 = vector.load %arg8[%c6_165, %c144_166] : memref<34x272xf32, #tpu.memory_space<vmem>>, vector<16x128xf32>
    %c20_167 = arith.constant 20 : index
    %c0_168 = arith.constant 0 : index
    %239 = vector.load %arg3[%c20_167, %c0_168] : memref<49x128xf32, #tpu.memory_space<vmem>>, vector<1x128xf32>
    %240 = vector.broadcast %239 : vector<1x128xf32> to vector<16x128xf32>
    %241 = arith.mulf %238, %240 : vector<16x128xf32>
    %242 = arith.addf %237, %241 : vector<16x128xf32>
    %c9_169 = arith.constant 9 : index
    %c0_170 = arith.constant 0 : index
    %243 = vector.load %arg8[%c9_169, %c0_170] : memref<34x272xf32, #tpu.memory_space<vmem>>, vector<16x128xf32>
    %c21_171 = arith.constant 21 : index
    %c0_172 = arith.constant 0 : index
    %244 = vector.load %arg3[%c21_171, %c0_172] : memref<49x128xf32, #tpu.memory_space<vmem>>, vector<1x128xf32>
    %245 = vector.broadcast %244 : vector<1x128xf32> to vector<16x128xf32>
    %246 = arith.mulf %243, %245 : vector<16x128xf32>
    %247 = arith.addf %242, %246 : vector<16x128xf32>
    %c9_173 = arith.constant 9 : index
    %c24_174 = arith.constant 24 : index
    %248 = vector.load %arg8[%c9_173, %c24_174] : memref<34x272xf32, #tpu.memory_space<vmem>>, vector<16x128xf32>
    %c22_175 = arith.constant 22 : index
    %c0_176 = arith.constant 0 : index
    %249 = vector.load %arg3[%c22_175, %c0_176] : memref<49x128xf32, #tpu.memory_space<vmem>>, vector<1x128xf32>
    %250 = vector.broadcast %249 : vector<1x128xf32> to vector<16x128xf32>
    %251 = arith.mulf %248, %250 : vector<16x128xf32>
    %252 = arith.addf %247, %251 : vector<16x128xf32>
    %c9_177 = arith.constant 9 : index
    %c48_178 = arith.constant 48 : index
    %253 = vector.load %arg8[%c9_177, %c48_178] : memref<34x272xf32, #tpu.memory_space<vmem>>, vector<16x128xf32>
    %c23_179 = arith.constant 23 : index
    %c0_180 = arith.constant 0 : index
    %254 = vector.load %arg3[%c23_179, %c0_180] : memref<49x128xf32, #tpu.memory_space<vmem>>, vector<1x128xf32>
    %255 = vector.broadcast %254 : vector<1x128xf32> to vector<16x128xf32>
    %256 = arith.mulf %253, %255 : vector<16x128xf32>
    %257 = arith.addf %252, %256 : vector<16x128xf32>
    %c9_181 = arith.constant 9 : index
    %c72_182 = arith.constant 72 : index
    %258 = vector.load %arg8[%c9_181, %c72_182] : memref<34x272xf32, #tpu.memory_space<vmem>>, vector<16x128xf32>
    %c24_183 = arith.constant 24 : index
    %c0_184 = arith.constant 0 : index
    %259 = vector.load %arg3[%c24_183, %c0_184] : memref<49x128xf32, #tpu.memory_space<vmem>>, vector<1x128xf32>
    %260 = vector.broadcast %259 : vector<1x128xf32> to vector<16x128xf32>
    %261 = arith.mulf %258, %260 : vector<16x128xf32>
    %262 = arith.addf %257, %261 : vector<16x128xf32>
    %c9_185 = arith.constant 9 : index
    %c96_186 = arith.constant 96 : index
    %263 = vector.load %arg8[%c9_185, %c96_186] : memref<34x272xf32, #tpu.memory_space<vmem>>, vector<16x128xf32>
    %c25 = arith.constant 25 : index
    %c0_187 = arith.constant 0 : index
    %264 = vector.load %arg3[%c25, %c0_187] : memref<49x128xf32, #tpu.memory_space<vmem>>, vector<1x128xf32>
    %265 = vector.broadcast %264 : vector<1x128xf32> to vector<16x128xf32>
    %266 = arith.mulf %263, %265 : vector<16x128xf32>
    %267 = arith.addf %262, %266 : vector<16x128xf32>
    %c9_188 = arith.constant 9 : index
    %c120_189 = arith.constant 120 : index
    %268 = vector.load %arg8[%c9_188, %c120_189] : memref<34x272xf32, #tpu.memory_space<vmem>>, vector<16x128xf32>
    %c26 = arith.constant 26 : index
    %c0_190 = arith.constant 0 : index
    %269 = vector.load %arg3[%c26, %c0_190] : memref<49x128xf32, #tpu.memory_space<vmem>>, vector<1x128xf32>
    %270 = vector.broadcast %269 : vector<1x128xf32> to vector<16x128xf32>
    %271 = arith.mulf %268, %270 : vector<16x128xf32>
    %272 = arith.addf %267, %271 : vector<16x128xf32>
    %c9_191 = arith.constant 9 : index
    %c144_192 = arith.constant 144 : index
    %273 = vector.load %arg8[%c9_191, %c144_192] : memref<34x272xf32, #tpu.memory_space<vmem>>, vector<16x128xf32>
    %c27 = arith.constant 27 : index
    %c0_193 = arith.constant 0 : index
    %274 = vector.load %arg3[%c27, %c0_193] : memref<49x128xf32, #tpu.memory_space<vmem>>, vector<1x128xf32>
    %275 = vector.broadcast %274 : vector<1x128xf32> to vector<16x128xf32>
    %276 = arith.mulf %273, %275 : vector<16x128xf32>
    %277 = arith.addf %272, %276 : vector<16x128xf32>
    %c12_194 = arith.constant 12 : index
    %c0_195 = arith.constant 0 : index
    %278 = vector.load %arg8[%c12_194, %c0_195] : memref<34x272xf32, #tpu.memory_space<vmem>>, vector<16x128xf32>
    %c28 = arith.constant 28 : index
    %c0_196 = arith.constant 0 : index
    %279 = vector.load %arg3[%c28, %c0_196] : memref<49x128xf32, #tpu.memory_space<vmem>>, vector<1x128xf32>
    %280 = vector.broadcast %279 : vector<1x128xf32> to vector<16x128xf32>
    %281 = arith.mulf %278, %280 : vector<16x128xf32>
    %282 = arith.addf %277, %281 : vector<16x128xf32>
    %c12_197 = arith.constant 12 : index
    %c24_198 = arith.constant 24 : index
    %283 = vector.load %arg8[%c12_197, %c24_198] : memref<34x272xf32, #tpu.memory_space<vmem>>, vector<16x128xf32>
    %c29 = arith.constant 29 : index
    %c0_199 = arith.constant 0 : index
    %284 = vector.load %arg3[%c29, %c0_199] : memref<49x128xf32, #tpu.memory_space<vmem>>, vector<1x128xf32>
    %285 = vector.broadcast %284 : vector<1x128xf32> to vector<16x128xf32>
    %286 = arith.mulf %283, %285 : vector<16x128xf32>
    %287 = arith.addf %282, %286 : vector<16x128xf32>
    %c12_200 = arith.constant 12 : index
    %c48_201 = arith.constant 48 : index
    %288 = vector.load %arg8[%c12_200, %c48_201] : memref<34x272xf32, #tpu.memory_space<vmem>>, vector<16x128xf32>
    %c30 = arith.constant 30 : index
    %c0_202 = arith.constant 0 : index
    %289 = vector.load %arg3[%c30, %c0_202] : memref<49x128xf32, #tpu.memory_space<vmem>>, vector<1x128xf32>
    %290 = vector.broadcast %289 : vector<1x128xf32> to vector<16x128xf32>
    %291 = arith.mulf %288, %290 : vector<16x128xf32>
    %292 = arith.addf %287, %291 : vector<16x128xf32>
    %c12_203 = arith.constant 12 : index
    %c72_204 = arith.constant 72 : index
    %293 = vector.load %arg8[%c12_203, %c72_204] : memref<34x272xf32, #tpu.memory_space<vmem>>, vector<16x128xf32>
    %c31 = arith.constant 31 : index
    %c0_205 = arith.constant 0 : index
    %294 = vector.load %arg3[%c31, %c0_205] : memref<49x128xf32, #tpu.memory_space<vmem>>, vector<1x128xf32>
    %295 = vector.broadcast %294 : vector<1x128xf32> to vector<16x128xf32>
    %296 = arith.mulf %293, %295 : vector<16x128xf32>
    %297 = arith.addf %292, %296 : vector<16x128xf32>
    %c12_206 = arith.constant 12 : index
    %c96_207 = arith.constant 96 : index
    %298 = vector.load %arg8[%c12_206, %c96_207] : memref<34x272xf32, #tpu.memory_space<vmem>>, vector<16x128xf32>
    %c32_208 = arith.constant 32 : index
    %c0_209 = arith.constant 0 : index
    %299 = vector.load %arg3[%c32_208, %c0_209] : memref<49x128xf32, #tpu.memory_space<vmem>>, vector<1x128xf32>
    %300 = vector.broadcast %299 : vector<1x128xf32> to vector<16x128xf32>
    %301 = arith.mulf %298, %300 : vector<16x128xf32>
    %302 = arith.addf %297, %301 : vector<16x128xf32>
    %c12_210 = arith.constant 12 : index
    %c120_211 = arith.constant 120 : index
    %303 = vector.load %arg8[%c12_210, %c120_211] : memref<34x272xf32, #tpu.memory_space<vmem>>, vector<16x128xf32>
    %c33 = arith.constant 33 : index
    %c0_212 = arith.constant 0 : index
    %304 = vector.load %arg3[%c33, %c0_212] : memref<49x128xf32, #tpu.memory_space<vmem>>, vector<1x128xf32>
    %305 = vector.broadcast %304 : vector<1x128xf32> to vector<16x128xf32>
    %306 = arith.mulf %303, %305 : vector<16x128xf32>
    %307 = arith.addf %302, %306 : vector<16x128xf32>
    %c12_213 = arith.constant 12 : index
    %c144_214 = arith.constant 144 : index
    %308 = vector.load %arg8[%c12_213, %c144_214] : memref<34x272xf32, #tpu.memory_space<vmem>>, vector<16x128xf32>
    %c34 = arith.constant 34 : index
    %c0_215 = arith.constant 0 : index
    %309 = vector.load %arg3[%c34, %c0_215] : memref<49x128xf32, #tpu.memory_space<vmem>>, vector<1x128xf32>
    %310 = vector.broadcast %309 : vector<1x128xf32> to vector<16x128xf32>
    %311 = arith.mulf %308, %310 : vector<16x128xf32>
    %312 = arith.addf %307, %311 : vector<16x128xf32>
    %c15_216 = arith.constant 15 : index
    %c0_217 = arith.constant 0 : index
    %313 = vector.load %arg8[%c15_216, %c0_217] : memref<34x272xf32, #tpu.memory_space<vmem>>, vector<16x128xf32>
    %c35 = arith.constant 35 : index
    %c0_218 = arith.constant 0 : index
    %314 = vector.load %arg3[%c35, %c0_218] : memref<49x128xf32, #tpu.memory_space<vmem>>, vector<1x128xf32>
    %315 = vector.broadcast %314 : vector<1x128xf32> to vector<16x128xf32>
    %316 = arith.mulf %313, %315 : vector<16x128xf32>
    %317 = arith.addf %312, %316 : vector<16x128xf32>
    %c15_219 = arith.constant 15 : index
    %c24_220 = arith.constant 24 : index
    %318 = vector.load %arg8[%c15_219, %c24_220] : memref<34x272xf32, #tpu.memory_space<vmem>>, vector<16x128xf32>
    %c36 = arith.constant 36 : index
    %c0_221 = arith.constant 0 : index
    %319 = vector.load %arg3[%c36, %c0_221] : memref<49x128xf32, #tpu.memory_space<vmem>>, vector<1x128xf32>
    %320 = vector.broadcast %319 : vector<1x128xf32> to vector<16x128xf32>
    %321 = arith.mulf %318, %320 : vector<16x128xf32>
    %322 = arith.addf %317, %321 : vector<16x128xf32>
    %c15_222 = arith.constant 15 : index
    %c48_223 = arith.constant 48 : index
    %323 = vector.load %arg8[%c15_222, %c48_223] : memref<34x272xf32, #tpu.memory_space<vmem>>, vector<16x128xf32>
    %c37 = arith.constant 37 : index
    %c0_224 = arith.constant 0 : index
    %324 = vector.load %arg3[%c37, %c0_224] : memref<49x128xf32, #tpu.memory_space<vmem>>, vector<1x128xf32>
    %325 = vector.broadcast %324 : vector<1x128xf32> to vector<16x128xf32>
    %326 = arith.mulf %323, %325 : vector<16x128xf32>
    %327 = arith.addf %322, %326 : vector<16x128xf32>
    %c15_225 = arith.constant 15 : index
    %c72_226 = arith.constant 72 : index
    %328 = vector.load %arg8[%c15_225, %c72_226] : memref<34x272xf32, #tpu.memory_space<vmem>>, vector<16x128xf32>
    %c38 = arith.constant 38 : index
    %c0_227 = arith.constant 0 : index
    %329 = vector.load %arg3[%c38, %c0_227] : memref<49x128xf32, #tpu.memory_space<vmem>>, vector<1x128xf32>
    %330 = vector.broadcast %329 : vector<1x128xf32> to vector<16x128xf32>
    %331 = arith.mulf %328, %330 : vector<16x128xf32>
    %332 = arith.addf %327, %331 : vector<16x128xf32>
    %c15_228 = arith.constant 15 : index
    %c96_229 = arith.constant 96 : index
    %333 = vector.load %arg8[%c15_228, %c96_229] : memref<34x272xf32, #tpu.memory_space<vmem>>, vector<16x128xf32>
    %c39 = arith.constant 39 : index
    %c0_230 = arith.constant 0 : index
    %334 = vector.load %arg3[%c39, %c0_230] : memref<49x128xf32, #tpu.memory_space<vmem>>, vector<1x128xf32>
    %335 = vector.broadcast %334 : vector<1x128xf32> to vector<16x128xf32>
    %336 = arith.mulf %333, %335 : vector<16x128xf32>
    %337 = arith.addf %332, %336 : vector<16x128xf32>
    %c15_231 = arith.constant 15 : index
    %c120_232 = arith.constant 120 : index
    %338 = vector.load %arg8[%c15_231, %c120_232] : memref<34x272xf32, #tpu.memory_space<vmem>>, vector<16x128xf32>
    %c40 = arith.constant 40 : index
    %c0_233 = arith.constant 0 : index
    %339 = vector.load %arg3[%c40, %c0_233] : memref<49x128xf32, #tpu.memory_space<vmem>>, vector<1x128xf32>
    %340 = vector.broadcast %339 : vector<1x128xf32> to vector<16x128xf32>
    %341 = arith.mulf %338, %340 : vector<16x128xf32>
    %342 = arith.addf %337, %341 : vector<16x128xf32>
    %c15_234 = arith.constant 15 : index
    %c144_235 = arith.constant 144 : index
    %343 = vector.load %arg8[%c15_234, %c144_235] : memref<34x272xf32, #tpu.memory_space<vmem>>, vector<16x128xf32>
    %c41 = arith.constant 41 : index
    %c0_236 = arith.constant 0 : index
    %344 = vector.load %arg3[%c41, %c0_236] : memref<49x128xf32, #tpu.memory_space<vmem>>, vector<1x128xf32>
    %345 = vector.broadcast %344 : vector<1x128xf32> to vector<16x128xf32>
    %346 = arith.mulf %343, %345 : vector<16x128xf32>
    %347 = arith.addf %342, %346 : vector<16x128xf32>
    %c18_237 = arith.constant 18 : index
    %c0_238 = arith.constant 0 : index
    %348 = vector.load %arg8[%c18_237, %c0_238] : memref<34x272xf32, #tpu.memory_space<vmem>>, vector<16x128xf32>
    %c42 = arith.constant 42 : index
    %c0_239 = arith.constant 0 : index
    %349 = vector.load %arg3[%c42, %c0_239] : memref<49x128xf32, #tpu.memory_space<vmem>>, vector<1x128xf32>
    %350 = vector.broadcast %349 : vector<1x128xf32> to vector<16x128xf32>
    %351 = arith.mulf %348, %350 : vector<16x128xf32>
    %352 = arith.addf %347, %351 : vector<16x128xf32>
    %c18_240 = arith.constant 18 : index
    %c24_241 = arith.constant 24 : index
    %353 = vector.load %arg8[%c18_240, %c24_241] : memref<34x272xf32, #tpu.memory_space<vmem>>, vector<16x128xf32>
    %c43 = arith.constant 43 : index
    %c0_242 = arith.constant 0 : index
    %354 = vector.load %arg3[%c43, %c0_242] : memref<49x128xf32, #tpu.memory_space<vmem>>, vector<1x128xf32>
    %355 = vector.broadcast %354 : vector<1x128xf32> to vector<16x128xf32>
    %356 = arith.mulf %353, %355 : vector<16x128xf32>
    %357 = arith.addf %352, %356 : vector<16x128xf32>
    %c18_243 = arith.constant 18 : index
    %c48_244 = arith.constant 48 : index
    %358 = vector.load %arg8[%c18_243, %c48_244] : memref<34x272xf32, #tpu.memory_space<vmem>>, vector<16x128xf32>
    %c44 = arith.constant 44 : index
    %c0_245 = arith.constant 0 : index
    %359 = vector.load %arg3[%c44, %c0_245] : memref<49x128xf32, #tpu.memory_space<vmem>>, vector<1x128xf32>
    %360 = vector.broadcast %359 : vector<1x128xf32> to vector<16x128xf32>
    %361 = arith.mulf %358, %360 : vector<16x128xf32>
    %362 = arith.addf %357, %361 : vector<16x128xf32>
    %c18_246 = arith.constant 18 : index
    %c72_247 = arith.constant 72 : index
    %363 = vector.load %arg8[%c18_246, %c72_247] : memref<34x272xf32, #tpu.memory_space<vmem>>, vector<16x128xf32>
    %c45 = arith.constant 45 : index
    %c0_248 = arith.constant 0 : index
    %364 = vector.load %arg3[%c45, %c0_248] : memref<49x128xf32, #tpu.memory_space<vmem>>, vector<1x128xf32>
    %365 = vector.broadcast %364 : vector<1x128xf32> to vector<16x128xf32>
    %366 = arith.mulf %363, %365 : vector<16x128xf32>
    %367 = arith.addf %362, %366 : vector<16x128xf32>
    %c18_249 = arith.constant 18 : index
    %c96_250 = arith.constant 96 : index
    %368 = vector.load %arg8[%c18_249, %c96_250] : memref<34x272xf32, #tpu.memory_space<vmem>>, vector<16x128xf32>
    %c46 = arith.constant 46 : index
    %c0_251 = arith.constant 0 : index
    %369 = vector.load %arg3[%c46, %c0_251] : memref<49x128xf32, #tpu.memory_space<vmem>>, vector<1x128xf32>
    %370 = vector.broadcast %369 : vector<1x128xf32> to vector<16x128xf32>
    %371 = arith.mulf %368, %370 : vector<16x128xf32>
    %372 = arith.addf %367, %371 : vector<16x128xf32>
    %c18_252 = arith.constant 18 : index
    %c120_253 = arith.constant 120 : index
    %373 = vector.load %arg8[%c18_252, %c120_253] : memref<34x272xf32, #tpu.memory_space<vmem>>, vector<16x128xf32>
    %c47 = arith.constant 47 : index
    %c0_254 = arith.constant 0 : index
    %374 = vector.load %arg3[%c47, %c0_254] : memref<49x128xf32, #tpu.memory_space<vmem>>, vector<1x128xf32>
    %375 = vector.broadcast %374 : vector<1x128xf32> to vector<16x128xf32>
    %376 = arith.mulf %373, %375 : vector<16x128xf32>
    %377 = arith.addf %372, %376 : vector<16x128xf32>
    %c18_255 = arith.constant 18 : index
    %c144_256 = arith.constant 144 : index
    %378 = vector.load %arg8[%c18_255, %c144_256] : memref<34x272xf32, #tpu.memory_space<vmem>>, vector<16x128xf32>
    %c48_257 = arith.constant 48 : index
    %c0_258 = arith.constant 0 : index
    %379 = vector.load %arg3[%c48_257, %c0_258] : memref<49x128xf32, #tpu.memory_space<vmem>>, vector<1x128xf32>
    %380 = vector.broadcast %379 : vector<1x128xf32> to vector<16x128xf32>
    %381 = arith.mulf %378, %380 : vector<16x128xf32>
    %382 = arith.addf %377, %381 : vector<16x128xf32>
    %c1_259 = arith.constant 1 : index
    %c0_260 = arith.constant 0 : index
    %383 = vector.load %arg5[%c1_259, %c0_260] : memref<3x128xf32, #tpu.memory_space<vmem>>, vector<1x128xf32>
    %384 = vector.broadcast %383 : vector<1x128xf32> to vector<16x128xf32>
    %385 = arith.addf %382, %384 : vector<16x128xf32>
    %cst_261 = arith.constant 0.000000e+00 : f32
    %386 = vector.broadcast %cst_261 : f32 to vector<16x142xf32>
    %c0_262 = arith.constant 0 : index
    %c0_263 = arith.constant 0 : index
    %387 = vector.load %arg9[%c0_262, %c0_263] : memref<16x142xf32, #tpu.memory_space<vmem>>, vector<16x142xf32>
    tpu.vector_store %arg9[%c0_262, %c0_263], %386 {strides = array<i32>} : memref<16x142xf32, #tpu.memory_space<vmem>>, vector<16x142xf32>,
    %c0_264 = arith.constant 0 : index
    %c7_265 = arith.constant 7 : index
    %388 = vector.load %arg9[%c0_264, %c7_265] : memref<16x142xf32, #tpu.memory_space<vmem>>, vector<16x128xf32>
    tpu.vector_store %arg9[%c0_264, %c7_265], %385 {strides = array<i32>} : memref<16x142xf32, #tpu.memory_space<vmem>>, vector<16x128xf32>,
    %cst_266 = arith.constant 0.000000e+00 : f32
    %389 = vector.broadcast %cst_266 : f32 to vector<16x128xf32>
    %c2_267 = arith.constant 2 : index
    %c0_268 = arith.constant 0 : index
    %390 = vector.load %arg5[%c2_267, %c0_268] : memref<3x128xf32, #tpu.memory_space<vmem>>, vector<1x128xf32>
    %391 = vector.broadcast %390 : vector<1x128xf32> to vector<16x128xf32>
    %392 = arith.addf %389, %391 : vector<16x128xf32>
    %c0_269 = arith.constant 0 : index
    %c0_270 = arith.constant 0 : index
    %393 = vector.load %arg9[%c0_269, %c0_270] : memref<16x142xf32, #tpu.memory_space<vmem>>, vector<16x128xf32>
    %c0_271 = arith.constant 0 : index
    %c0_272 = arith.constant 0 : index
    %394 = vector.load %arg4[%c0_271, %c0_272] : memref<15x128xf32, #tpu.memory_space<vmem>>, vector<1x128xf32>
    %395 = vector.broadcast %394 : vector<1x128xf32> to vector<16x128xf32>
    %396 = arith.mulf %393, %395 : vector<16x128xf32>
    %397 = arith.addf %392, %396 : vector<16x128xf32>
    %c0_273 = arith.constant 0 : index
    %c1_274 = arith.constant 1 : index
    %398 = vector.load %arg9[%c0_273, %c1_274] : memref<16x142xf32, #tpu.memory_space<vmem>>, vector<16x128xf32>
    %c1_275 = arith.constant 1 : index
    %c0_276 = arith.constant 0 : index
    %399 = vector.load %arg4[%c1_275, %c0_276] : memref<15x128xf32, #tpu.memory_space<vmem>>, vector<1x128xf32>
    %400 = vector.broadcast %399 : vector<1x128xf32> to vector<16x128xf32>
    %401 = arith.mulf %398, %400 : vector<16x128xf32>
    %402 = arith.addf %397, %401 : vector<16x128xf32>
    %c0_277 = arith.constant 0 : index
    %c2_278 = arith.constant 2 : index
    %403 = vector.load %arg9[%c0_277, %c2_278] : memref<16x142xf32, #tpu.memory_space<vmem>>, vector<16x128xf32>
    %c2_279 = arith.constant 2 : index
    %c0_280 = arith.constant 0 : index
    %404 = vector.load %arg4[%c2_279, %c0_280] : memref<15x128xf32, #tpu.memory_space<vmem>>, vector<1x128xf32>
    %405 = vector.broadcast %404 : vector<1x128xf32> to vector<16x128xf32>
    %406 = arith.mulf %403, %405 : vector<16x128xf32>
    %407 = arith.addf %402, %406 : vector<16x128xf32>
    %c0_281 = arith.constant 0 : index
    %c3_282 = arith.constant 3 : index
    %408 = vector.load %arg9[%c0_281, %c3_282] : memref<16x142xf32, #tpu.memory_space<vmem>>, vector<16x128xf32>
    %c3_283 = arith.constant 3 : index
    %c0_284 = arith.constant 0 : index
    %409 = vector.load %arg4[%c3_283, %c0_284] : memref<15x128xf32, #tpu.memory_space<vmem>>, vector<1x128xf32>
    %410 = vector.broadcast %409 : vector<1x128xf32> to vector<16x128xf32>
    %411 = arith.mulf %408, %410 : vector<16x128xf32>
    %412 = arith.addf %407, %411 : vector<16x128xf32>
    %c0_285 = arith.constant 0 : index
    %c4_286 = arith.constant 4 : index
    %413 = vector.load %arg9[%c0_285, %c4_286] : memref<16x142xf32, #tpu.memory_space<vmem>>, vector<16x128xf32>
    %c4_287 = arith.constant 4 : index
    %c0_288 = arith.constant 0 : index
    %414 = vector.load %arg4[%c4_287, %c0_288] : memref<15x128xf32, #tpu.memory_space<vmem>>, vector<1x128xf32>
    %415 = vector.broadcast %414 : vector<1x128xf32> to vector<16x128xf32>
    %416 = arith.mulf %413, %415 : vector<16x128xf32>
    %417 = arith.addf %412, %416 : vector<16x128xf32>
    %c0_289 = arith.constant 0 : index
    %c5_290 = arith.constant 5 : index
    %418 = vector.load %arg9[%c0_289, %c5_290] : memref<16x142xf32, #tpu.memory_space<vmem>>, vector<16x128xf32>
    %c5_291 = arith.constant 5 : index
    %c0_292 = arith.constant 0 : index
    %419 = vector.load %arg4[%c5_291, %c0_292] : memref<15x128xf32, #tpu.memory_space<vmem>>, vector<1x128xf32>
    %420 = vector.broadcast %419 : vector<1x128xf32> to vector<16x128xf32>
    %421 = arith.mulf %418, %420 : vector<16x128xf32>
    %422 = arith.addf %417, %421 : vector<16x128xf32>
    %c0_293 = arith.constant 0 : index
    %c6_294 = arith.constant 6 : index
    %423 = vector.load %arg9[%c0_293, %c6_294] : memref<16x142xf32, #tpu.memory_space<vmem>>, vector<16x128xf32>
    %c6_295 = arith.constant 6 : index
    %c0_296 = arith.constant 0 : index
    %424 = vector.load %arg4[%c6_295, %c0_296] : memref<15x128xf32, #tpu.memory_space<vmem>>, vector<1x128xf32>
    %425 = vector.broadcast %424 : vector<1x128xf32> to vector<16x128xf32>
    %426 = arith.mulf %423, %425 : vector<16x128xf32>
    %427 = arith.addf %422, %426 : vector<16x128xf32>
    %c0_297 = arith.constant 0 : index
    %c7_298 = arith.constant 7 : index
    %428 = vector.load %arg9[%c0_297, %c7_298] : memref<16x142xf32, #tpu.memory_space<vmem>>, vector<16x128xf32>
    %c7_299 = arith.constant 7 : index
    %c0_300 = arith.constant 0 : index
    %429 = vector.load %arg4[%c7_299, %c0_300] : memref<15x128xf32, #tpu.memory_space<vmem>>, vector<1x128xf32>
    %430 = vector.broadcast %429 : vector<1x128xf32> to vector<16x128xf32>
    %431 = arith.mulf %428, %430 : vector<16x128xf32>
    %432 = arith.addf %427, %431 : vector<16x128xf32>
    %c0_301 = arith.constant 0 : index
    %c8_302 = arith.constant 8 : index
    %433 = vector.load %arg9[%c0_301, %c8_302] : memref<16x142xf32, #tpu.memory_space<vmem>>, vector<16x128xf32>
    %c8_303 = arith.constant 8 : index
    %c0_304 = arith.constant 0 : index
    %434 = vector.load %arg4[%c8_303, %c0_304] : memref<15x128xf32, #tpu.memory_space<vmem>>, vector<1x128xf32>
    %435 = vector.broadcast %434 : vector<1x128xf32> to vector<16x128xf32>
    %436 = arith.mulf %433, %435 : vector<16x128xf32>
    %437 = arith.addf %432, %436 : vector<16x128xf32>
    %c0_305 = arith.constant 0 : index
    %c9_306 = arith.constant 9 : index
    %438 = vector.load %arg9[%c0_305, %c9_306] : memref<16x142xf32, #tpu.memory_space<vmem>>, vector<16x128xf32>
    %c9_307 = arith.constant 9 : index
    %c0_308 = arith.constant 0 : index
    %439 = vector.load %arg4[%c9_307, %c0_308] : memref<15x128xf32, #tpu.memory_space<vmem>>, vector<1x128xf32>
    %440 = vector.broadcast %439 : vector<1x128xf32> to vector<16x128xf32>
    %441 = arith.mulf %438, %440 : vector<16x128xf32>
    %442 = arith.addf %437, %441 : vector<16x128xf32>
    %c0_309 = arith.constant 0 : index
    %c10_310 = arith.constant 10 : index
    %443 = vector.load %arg9[%c0_309, %c10_310] : memref<16x142xf32, #tpu.memory_space<vmem>>, vector<16x128xf32>
    %c10_311 = arith.constant 10 : index
    %c0_312 = arith.constant 0 : index
    %444 = vector.load %arg4[%c10_311, %c0_312] : memref<15x128xf32, #tpu.memory_space<vmem>>, vector<1x128xf32>
    %445 = vector.broadcast %444 : vector<1x128xf32> to vector<16x128xf32>
    %446 = arith.mulf %443, %445 : vector<16x128xf32>
    %447 = arith.addf %442, %446 : vector<16x128xf32>
    %c0_313 = arith.constant 0 : index
    %c11_314 = arith.constant 11 : index
    %448 = vector.load %arg9[%c0_313, %c11_314] : memref<16x142xf32, #tpu.memory_space<vmem>>, vector<16x128xf32>
    %c11_315 = arith.constant 11 : index
    %c0_316 = arith.constant 0 : index
    %449 = vector.load %arg4[%c11_315, %c0_316] : memref<15x128xf32, #tpu.memory_space<vmem>>, vector<1x128xf32>
    %450 = vector.broadcast %449 : vector<1x128xf32> to vector<16x128xf32>
    %451 = arith.mulf %448, %450 : vector<16x128xf32>
    %452 = arith.addf %447, %451 : vector<16x128xf32>
    %c0_317 = arith.constant 0 : index
    %c12_318 = arith.constant 12 : index
    %453 = vector.load %arg9[%c0_317, %c12_318] : memref<16x142xf32, #tpu.memory_space<vmem>>, vector<16x128xf32>
    %c12_319 = arith.constant 12 : index
    %c0_320 = arith.constant 0 : index
    %454 = vector.load %arg4[%c12_319, %c0_320] : memref<15x128xf32, #tpu.memory_space<vmem>>, vector<1x128xf32>
    %455 = vector.broadcast %454 : vector<1x128xf32> to vector<16x128xf32>
    %456 = arith.mulf %453, %455 : vector<16x128xf32>
    %457 = arith.addf %452, %456 : vector<16x128xf32>
    %c0_321 = arith.constant 0 : index
    %c13_322 = arith.constant 13 : index
    %458 = vector.load %arg9[%c0_321, %c13_322] : memref<16x142xf32, #tpu.memory_space<vmem>>, vector<16x128xf32>
    %c13_323 = arith.constant 13 : index
    %c0_324 = arith.constant 0 : index
    %459 = vector.load %arg4[%c13_323, %c0_324] : memref<15x128xf32, #tpu.memory_space<vmem>>, vector<1x128xf32>
    %460 = vector.broadcast %459 : vector<1x128xf32> to vector<16x128xf32>
    %461 = arith.mulf %458, %460 : vector<16x128xf32>
    %462 = arith.addf %457, %461 : vector<16x128xf32>
    %c0_325 = arith.constant 0 : index
    %c14_326 = arith.constant 14 : index
    %463 = vector.load %arg9[%c0_325, %c14_326] : memref<16x142xf32, #tpu.memory_space<vmem>>, vector<16x128xf32>
    %c14_327 = arith.constant 14 : index
    %c0_328 = arith.constant 0 : index
    %464 = vector.load %arg4[%c14_327, %c0_328] : memref<15x128xf32, #tpu.memory_space<vmem>>, vector<1x128xf32>
    %465 = vector.broadcast %464 : vector<1x128xf32> to vector<16x128xf32>
    %466 = arith.mulf %463, %465 : vector<16x128xf32>
    %467 = arith.addf %462, %466 : vector<16x128xf32>
    %468 = arith.mulf %1, %467 : vector<16x128xf32>
    %c0_329 = arith.constant 0 : index
    %c0_330 = arith.constant 0 : index
    %c0_331 = arith.constant 0 : index
    %469 = vector.load %arg6[%c0_329, %c0_330, %c0_331] : memref<1x16x128xf32, #tpu.memory_space<vmem>>, vector<1x16x128xf32>
    %470 = vector.shape_cast %469 : vector<1x16x128xf32> to vector<16x128xf32>
    %471 = vector.shape_cast %468 : vector<16x128xf32> to vector<1x16x128xf32>
    tpu.vector_store %arg6[%c0_329, %c0_330, %c0_331], %471 {strides = array<i32>} : memref<1x16x128xf32, #tpu.memory_space<vmem>>, vector<1x16x128xf32>,
    return
  }
  func.func @transform_0(%arg0: i32) -> (i32, i32, i32) {
    %c0_i32 = arith.constant 0 : i32
    %c0_i32_0 = arith.constant 0 : i32
    %c0_i32_1 = arith.constant 0 : i32
    return %arg0, %c0_i32, %c0_i32_0 : i32, i32, i32
  }
  func.func @transform_1(%arg0: i32) -> (i32, i32) {
    %c0_i32 = arith.constant 0 : i32
    %c0_i32_0 = arith.constant 0 : i32
    %c0_i32_1 = arith.constant 0 : i32
    return %c0_i32, %c0_i32_0 : i32, i32
  }
  func.func @transform_2(%arg0: i32) -> (i32, i32) {
    %c0_i32 = arith.constant 0 : i32
    %c0_i32_0 = arith.constant 0 : i32
    %c0_i32_1 = arith.constant 0 : i32
    return %c0_i32, %c0_i32_0 : i32, i32
  }
  func.func @transform_3(%arg0: i32) -> (i32, i32) {
    %c0_i32 = arith.constant 0 : i32
    %c0_i32_0 = arith.constant 0 : i32
    %c0_i32_1 = arith.constant 0 : i32
    return %c0_i32, %c0_i32_0 : i32, i32
  }
  func.func @transform_4(%arg0: i32) -> (i32, i32) {
    %c0_i32 = arith.constant 0 : i32
    %c0_i32_0 = arith.constant 0 : i32
    %c0_i32_1 = arith.constant 0 : i32
    return %c0_i32, %c0_i32_0 : i32, i32
  }
  func.func @transform_5(%arg0: i32) -> (i32, i32, i32) {
    %c0_i32 = arith.constant 0 : i32
    %c0_i32_0 = arith.constant 0 : i32
    %c0_i32_1 = arith.constant 0 : i32
    return %arg0, %c0_i32, %c0_i32_0 : i32, i32, i32
  }
}

</mosaic_0001>

<bundles_post_ra>
// kernel: tile.34
= control target key start
LH: loop header
LB: loop body
LE: loop exit
PB: predicated region body
PF: predicated region fallthrough
CT: control target
= control target key end

     0   :  { %s28_s0 = inlined_call_operand.vmem [shape: f32[8], index: 0, kind: input, shape index: {}]   ;;  %s29_s1 = inlined_call_operand.vmem [shape: f32[16,8], index: 1, kind: output, shape index: {}]  }
   0x1   :  { %v4_v0 = vld [vmem:[%s28_s0] ss:$0 sm:$0xff] }
   0x2   :  { %5 = vst [vmem:[%s29_s1] sm:$0xff] %v4_v0  ;;  %8 = vst [vmem:[%s29_s1 + $0x8] sm:$0xff] %v4_v0 }

// kernel: tile.43
= control target key start
LH: loop header
LB: loop body
LE: loop exit
PB: predicated region body
PF: predicated region fallthrough
CT: control target
= control target key end

     0   :  { %s131_s10 = smov 120   ;;  %s132_s11 = smov 104   ;;  %vm3_vm0 = vcmask 64512   ;;  %vm9_vm1 = vcmask 1048512   ;;  %vm15_vm2 = vcmask 982912   ;;  %vm21_vm3 = vcmask 917312   ;;  %s207_s0 = inlined_call_operand.vmem [shape: f32[16,8], index: 0, kind: input, shape index: {}]   ;;  %s208_s1 = inlined_call_operand.vmem [shape: f32[1,128], index: 1, kind: output, shape index: {}]  }
   0x1   :  { %v101_v0 = vld [vmem:[%s207_s0 + $0xf] sm:$0x1]   ;;  %v103_v1 = vld [vmem:[%s207_s0 + $0xd] sm:$0x1]   ;;  %v102_v2 = vld [vmem:[%s207_s0 + $0xe] sm:$0x1]  }
   0x2   :  { %7 = vrot.lane.b32.xlu0 %v101_v0, %s131_s10  ;;  %19 = vrot.lane.b32.xlu1 %v103_v1, %s132_s11  ;;  %v104_v3 = vld [vmem:[%s207_s0 + $0xc] sm:$0x1]   ;;  %s133_s16 = smov 112   ;;  %s134_s17 = smov 96   ;;  %v105_v4 = vld [vmem:[%s207_s0 + $0xb] sm:$0x1]  }
   0x3   :  { %v106_v5 = vld [vmem:[%s207_s0 + $0xa] sm:$0x1]   ;;  %v2_v6 = vld [vmem:[%s207_s0] sm:$0x1]   ;;  %s135_s24 = smov 88   ;;  %s136_s25 = smov 80  }
   0x4   :  { %4 = vst.msk [vmem:[#allocation0] sm:$0x1] %vm3_vm0, %v2_v6   ;;  %v107_v7 = vld [vmem:[%s207_s0 + $0x9] sm:$0x1]   ;;  %v108_v8 = vld [vmem:[%s207_s0 + $0x8] sm:$0x1]  }
   0x5   :  { %s137_s30 = smov 72   ;;  %s138_s2 = smov 64   ;;  %v109_v9 = vld [vmem:[%s207_s0 + $0x7] sm:$0x1]   ;;  %v110_v10 = vld [vmem:[%s207_s0 + $0x6] sm:$0x1]  }
   0x6   :  { %13 = vrot.lane.b32.xlu0 %v102_v2, %s133_s16  ;;  %25 = vrot.lane.b32.xlu1 %v104_v3, %s134_s17  ;;  %s139_s7 = smov 56   ;;  %s140_s8 = smov 48   ;;  %v111_v11 = vld [vmem:[%s207_s0 + $0x5] sm:$0x1]   ;;  %v112_v12 = vld [vmem:[%s207_s0 + $0x4] sm:$0x1]  }
   0x7   :  { %s141_s13 = smov 40   ;;  %s142_s14 = smov 32   ;;  %v113_v13 = vld [vmem:[%s207_s0 + $0x3] sm:$0x1]   ;;  %v114_v14 = vld [vmem:[%s207_s0 + $0x2] sm:$0x1]  }
   0x8   :  { %s143_s19 = smov 24   ;;  %s144_s20 = smov 16   ;;  %v115_v15 = vld [vmem:[%s207_s0 + $0x1] sm:$0x1]   ;;  %vm27_vm4 = vcmask 851712   ;;  %vm33_vm5 = vcmask 786112  }
   0x9   :  { %s145_s0 = smov 8   ;;  %vm39_vm6 = vcmask 720512   ;;  %vm45_vm7 = vcmask 654912   ;;  %vm51_vm8 = vcmask 589312   ;;  %vm57_vm9 = vcmask 523712  }
   0xa   :  { %31 = vrot.lane.b32.xlu0 %v105_v4, %s135_s24  ;;  %37 = vrot.lane.b32.xlu1 %v106_v5, %s136_s25  ;;  %vm63_vm10 = vcmask 458112   ;;  %vm69_vm11 = vcmask 392512   ;;  %vm75_vm12 = vcmask 326912   ;;  %vm81_vm13 = vcmask 261312  }
   0xb   :  { %vm87_vm14 = vcmask 195712   ;;  %vm93_vm15 = vcmask 130112  }
   0xe   :  { %43 = vrot.lane.b32.xlu0 %v107_v7, %s137_s30  ;;  %49 = vrot.lane.b32.xlu1 %v108_v8, %s138_s2 }
  0x12   :  { %55 = vrot.lane.b32.xlu0 %v109_v9, %s139_s7  ;;  %61 = vrot.lane.b32.xlu1 %v110_v10, %s140_s8 }
  0x16   :  { %67 = vrot.lane.b32.xlu0 %v111_v11, %s141_s13  ;;  %73 = vrot.lane.b32.xlu1 %v112_v12, %s142_s14 }
  0x1a   :  { %79 = vrot.lane.b32.xlu0 %v113_v13, %s143_s19  ;;  %85 = vrot.lane.b32.xlu1 %v114_v14, %s144_s20 }
  0x1e   :  { %91 = vrot.lane.b32.xlu0 %v115_v15, %s145_s0 }
  0x74   :  { %v8_v16 = vpop.permute.xlu0 %7   ;;  %v20_v17 = vpop.permute.xlu1 %19  }
  0x75   :  { %10 = vst.msk [vmem:[#allocation0] sm:$0x1] %vm9_vm1, %v8_v16  }
  0x78   :  { %v14_v18 = vpop.permute.xlu0 %13   ;;  %v26_v19 = vpop.permute.xlu1 %25  }
  0x79   :  { %16 = vst.msk [vmem:[#allocation0] sm:$0x1] %vm15_vm2, %v14_v18  }
  0x7a   :  { %22 = vst.msk [vmem:[#allocation0] sm:$0x1] %vm21_vm3, %v20_v17  }
  0x7b   :  { %28 = vst.msk [vmem:[#allocation0] sm:$0x1] %vm27_vm4, %v26_v19  }
  0x7c   :  { %v32_v20 = vpop.permute.xlu0 %31   ;;  %v38_v21 = vpop.permute.xlu1 %37  }
  0x7d   :  { %34 = vst.msk [vmem:[#allocation0] sm:$0x1] %vm33_vm5, %v32_v20  }
  0x7e   :  { %40 = vst.msk [vmem:[#allocation0] sm:$0x1] %vm39_vm6, %v38_v21  }
  0x80   :  { %v44_v22 = vpop.permute.xlu0 %43   ;;  %v50_v23 = vpop.permute.xlu1 %49  }
  0x81   :  { %46 = vst.msk [vmem:[#allocation0] sm:$0x1] %vm45_vm7, %v44_v22  }
  0x82   :  { %52 = vst.msk [vmem:[#allocation0] sm:$0x1] %vm51_vm8, %v50_v23  }
  0x84   :  { %v56_v24 = vpop.permute.xlu0 %55   ;;  %v62_v25 = vpop.permute.xlu1 %61  }
  0x85   :  { %58 = vst.msk [vmem:[#allocation0] sm:$0x1] %vm57_vm9, %v56_v24  }
  0x86   :  { %64 = vst.msk [vmem:[#allocation0] sm:$0x1] %vm63_vm10, %v62_v25  }
  0x88   :  { %v68_v26 = vpop.permute.xlu0 %67   ;;  %v74_v27 = vpop.permute.xlu1 %73  }
  0x89   :  { %70 = vst.msk [vmem:[#allocation0] sm:$0x1] %vm69_vm11, %v68_v26  }
  0x8a   :  { %76 = vst.msk [vmem:[#allocation0] sm:$0x1] %vm75_vm12, %v74_v27  }
  0x8c   :  { %v80_v28 = vpop.permute.xlu0 %79   ;;  %v86_v29 = vpop.permute.xlu1 %85  }
  0x8d   :  { %82 = vst.msk [vmem:[#allocation0] sm:$0x1] %vm81_vm13, %v80_v28  }
  0x8e   :  { %88 = vst.msk [vmem:[#allocation0] sm:$0x1] %vm87_vm14, %v86_v29  }
  0x90   :  { %v92_v30 = vpop.permute.xlu0 %91  }
  0x91   :  { %94 = vst.msk [vmem:[#allocation0] sm:$0x1] %vm93_vm15, %v92_v30  }
  0x98   :  { %v98_v31 = vld [vmem:[#allocation0] sm:$0x1] }
  0x99   :  { %100 = vst [vmem:[%s208_s1] sm:$0x1] %v98_v31 }

// kernel: attention_module.1
= control target key start
LH: loop header
LB: loop body
LE: loop exit
PB: predicated region body
PF: predicated region fallthrough
CT: control target
= control target key end

     0   :  { %s4046_s18 = smov 0   ;;  %s6508_s0 = inlined_call_operand.vmem [shape: f32[2,16,128], index: 0, kind: input, shape index: {}]   ;;  %s6509_s1 = inlined_call_operand.vmem [shape: f32[25,128], index: 1, kind: input, shape index: {}]   ;;  %s6510_s2 = inlined_call_operand.vmem [shape: f32[49,128], index: 2, kind: input, shape index: {}]   ;;  %s6511_s3 = inlined_call_operand.vmem [shape: f32[15,128], index: 3, kind: input, shape index: {}]   ;;  %s6512_s4 = inlined_call_operand.vmem [shape: f32[3,128], index: 4, kind: input, shape index: {}]   ;;  %s6513_s5 = inlined_call_operand.vmem [shape: f32[2,16,128], index: 5, kind: output, shape index: {}]  }
   0x1 LB: > { %s3809_s19 = sadd.s32 4294967295, %s3975_s18   ;;  %p3813_p0 = scmp.ge.s32.totalorder %s3975_s18, 1  ;;  %s3975_s18 = sphi %s4046_s18, %s15_s18  }
   0x2   : > { %p187_p1 = scmp.lt.s32.totalorder %s3975_s18, 3 }
   0x4   : > { %p188_p2 = pnand %p3813_p0, %p187_p1 }
   0x6   : > { %191 = sbr.rel (%p188_p2) target bundleno = 3279 (0xccf), region = 40 }
   0xd   : > { %v3819_v0 = vld [vmem:[%s6509_s1 + $0x1] ss:$0 sm:$0xff]  ;;  %s3977_s22 = smov 8   ;;  %v3820_v1 = vld [vmem:[%s6509_s1 + $0x2] ss:$0 sm:$0xff]  ;;  %p215_p3 = scmp.lt.s32.totalorder %s3809_s19, 1 }
   0xe   : > { %281 = vrot.lane.b32.xlu1 %v3819_v0, %s3977_s22  ;;  %v3821_v2 = vld [vmem:[%s6509_s1 + $0x3] ss:$0 sm:$0xff]  ;;  %s3978_s27 = smov 16   ;;  %v3979_v3 = vmov 0.0   ;;  %s3980_s28 = smov 24   ;;  %vm233_vm0 = vcmask 257024  }
   0xf   : > { %313 = vrot.lane.b32.xlu0 %v3820_v1, %s3978_s27  ;;  %s6638_s19 = smov (!%p215_p3, %s3809_s19), 1  ;;  %232 = vst [vmem:[#allocation2 + $0x20] sm:$0xf] %v3979_v3  ;;  %227 = vst [vmem:[#allocation2] sm:$0xff] %v3979_v3  ;;  %vm260_vm1 = vcmask 123904   ;;  %vm228_vm2 = vcmask 261120  }
  0x10   : > { %230 = vst [vmem:[#allocation2 + $0x10] sm:$0xff] %v3979_v3  ;;  %1230 = vst [vmem:[#allocation3] sm:$0xff] %v3979_v3  ;;  %s3912_s29 = sshll.u32 %s6638_s19, 4  ;;  %vm256_vm3 = vcmask 130048   ;;  %vm237_vm4 = vcmask 1041408   ;;  %s3981_s14 = smov 32  }
  0x11   : > { %1231 = vst [vmem:[#allocation3 + $0x8] sm:$0xff] %v3979_v3  ;;  %1233 = vst [vmem:[#allocation3 + $0x18] sm:$0xff] %v3979_v3  ;;  %s4074_s7 = scalar_lea.vmem %s6508_s0, %s3912_s29  ;;  %v3824_v8 = vld [vmem:[%s6509_s1 + $0x6] ss:$0 sm:$0xff]  ;;  %v3826_v10 = vld [vmem:[%s6509_s1 + $0x8] ss:$0 sm:$0xff] }
  0x12   : > { %1234 = vst [vmem:[#allocation3 + $0x20] sm:$0xff] %v3979_v3  ;;  %1236 = vst [vmem:[#allocation3 + $0x30] sm:$0xff] %v3979_v3  ;;  %345 = vrot.lane.b32.xlu1 %v3821_v2, %s3980_s28  ;;  %v226_v4 = vld [vmem:[%s4074_s7 + $0x8] sm:$0xff]  ;;  %v225_v5 = vld [vmem:[%s4074_s7] sm:$0xff]  ;;  %vm258_vm5 = vcmask 1041536   ;;  %vm250_vm6 = vcmask 1047682  }
  0x13   : > { %1237 = vst [vmem:[#allocation3 + $0x38] sm:$0xff] %v3979_v3  ;;  %1239 = vst [vmem:[#allocation3 + $0x48] sm:$0xff] %v3979_v3  ;;  %v239_v6 = vrot.slane %v226_v4, 6  ;;  %v238_v7 = vrot.slane %v225_v5, 6  ;;  %v3822_v11 = vld [vmem:[%s6509_s1 + $0x4] ss:$0 sm:$0xff] }
  0x14   : > { %1240 = vst [vmem:[#allocation3 + $0x50] sm:$0xff] %v3979_v3  ;;  %1242 = vst [vmem:[#allocation3 + $0x60] sm:$0x3] %v3979_v3  ;;  %v3829_v12 = vld [vmem:[%s6509_s1 + $0xb] ss:$0 sm:$0xff]  ;;  %vm252_vm7 = vcmask 130050  }
  0x15   : > { %1243 = vst [vmem:[#allocation3 + $0x68] sm:$0x3] %v3979_v3  ;;  %3265 = vst [vmem:[#allocation4] sm:$0xff] %v3979_v3  ;;  %241 = vrot.lane.b32.xlu0 %v238_v7, %s3978_s27  ;;  %v240_v9 = vsel %vm237_vm4, %v238_v7, %v239_v6  ;;  %v3825_v13 = vld [vmem:[%s6509_s1 + $0x7] ss:$0 sm:$0xff]  ;;  %vm254_vm8 = vcmask 1047680  }
  0x16   : > { %3268 = vst [vmem:[#allocation4 + $0x10] sm:$0xff] %v3979_v3  ;;  %234 = vst.msk [vmem:[#allocation2 + $0x28] sm:$0xf] %vm233_vm0, %v3979_v3  ;;  %245 = vrot.lane.b32.xlu1 %v239_v6, %s3978_s27  ;;  %v3831_v14 = vld [vmem:[%s6509_s1 + $0xd] ss:$0 sm:$0xff]  ;;  %s3982_s13 = smov 120  }
  0x17   : > { %1244 = vst.msk [vmem:[#allocation3 + $0x70] sm:$0x3] %vm260_vm1, %v3979_v3  ;;  %v3827_v15 = vld [vmem:[%s6509_s1 + $0x9] ss:$0 sm:$0xff]  ;;  %v3834_v16 = vld [vmem:[%s6509_s1 + $0x10] ss:$0 sm:$0xff] }
  0x18   : > { %229 = vst.msk [vmem:[#allocation2 + $0x8] sm:$0xff] %vm228_vm2, %v3979_v3  ;;  %231 = vst.msk [vmem:[#allocation2 + $0x18] sm:$0xff] %vm228_vm2, %v3979_v3  ;;  %v3830_v17 = vld [vmem:[%s6509_s1 + $0xc] ss:$0 sm:$0xff]  ;;  %v3832_v18 = vld [vmem:[%s6509_s1 + $0xe] ss:$0 sm:$0xff] }
  0x19   : > { %1232 = vst.msk [vmem:[#allocation3 + $0x10] sm:$0xff] %vm256_vm3, %v3979_v3  ;;  %1235 = vst.msk [vmem:[#allocation3 + $0x28] sm:$0xff] %vm256_vm3, %v3979_v3  ;;  %243 = vrot.lane.b32.xlu0 %v240_v9, %s3978_s27  ;;  %v3835_v19 = vld [vmem:[%s6509_s1 + $0x11] ss:$0 sm:$0xff]  ;;  %s3983_s15 = smov 112   ;;  %s3984_s16 = smov 104  }
  0x1a   : > { %1238 = vst.msk [vmem:[#allocation3 + $0x40] sm:$0xff] %vm256_vm3, %v3979_v3  ;;  %1241 = vst.msk [vmem:[#allocation3 + $0x58] sm:$0xff] %vm256_vm3, %v3979_v3  ;;  %434 = vrot.lane.b32.xlu1 %v3824_v8, %s3977_s22  ;;  %s3985_s17 = smov 96   ;;  %vm416_vm9 = vcmask 1046528   ;;  %vm621_vm10 = vcmask 1045504   ;;  %vm826_vm11 = vcmask 1044480  }
  0x1b   : > { %vm300_vm12 = vcmask 982016   ;;  %vm332_vm13 = vcmask 916480   ;;  %vm364_vm14 = vcmask 850944   ;;  %vm396_vm15 = vcmask 785408   ;;  %s3986_s9 = smov 48   ;;  %s3987_s10 = smov 80  }
  0x1c   : > { %vm1031_vm0 = vcmask 1043456   ;;  %s3988_s20 = smov 72   ;;  %s3989_s21 = smov 56  }
  0x1d   : > { %377 = vrot.lane.b32.xlu0 %v3822_v11, %s3981_s14  ;;  %s3992_s8 = smov 7   ;;  %s3993_s12 = smov 1  }
  0x1e   : > { %524 = vrot.lane.b32.xlu1 %v3826_v10, %s3980_s28  ;;  %s3996_s24 = smov 5   ;;  %s3997_s11 = smov 10  }
  0x1f   : > { %s4003_s25 = smov 127   ;;  %s4004_s26 = smov 126  }
  0x20   : > { %s4005_s30 = smov 125   ;;  %s4006_s6 = smov 124  }
  0x21   : > { %479 = vrot.lane.b32.xlu0 %v3825_v13, %s3978_s27  ;;  %s4010_s23 = smov 119  }
  0x22   : > { %639 = vrot.lane.b32.xlu1 %v3829_v12, %s3977_s22 }
  0x25   : > { %569 = vrot.lane.b32.xlu0 %v3827_v15, %s3981_s14 }
  0x26   : > { %729 = vrot.lane.b32.xlu1 %v3831_v14, %s3980_s28 }
  0x29   : > { %684 = vrot.lane.b32.xlu0 %v3830_v17, %s3978_s27 }
  0x2a   : > { %844 = vrot.lane.b32.xlu1 %v3834_v16, %s3977_s22 }
  0x2d   : > { %774 = vrot.lane.b32.xlu0 %v3832_v18, %s3981_s14 }
  0x31   : > { %889 = vrot.lane.b32.xlu0 %v3835_v19, %s3978_s27 }
  0x80   : > { %v282_v20 = vpop.permute.xlu1 %281 }
  0x81   : > { %v314_v21 = vpop.permute.xlu0 %313 }
  0x84   : > { %v346_v22 = vpop.permute.xlu1 %345 }
  0x87   : > { %v242_v24 = vpop.permute.xlu0 %241 }
  0x88   : > { %v246_v23 = vpop.permute.xlu1 %245  ;;  %251 = vst.msk [vmem:[#allocation2] sm:$0xfc] %vm250_vm6, %v242_v24  ;;  %vm1260_vm6 = vcmask 1048129  }
  0x89   : > { %259 = vst.msk [vmem:[#allocation2 + $0x20] sm:$0x3] %vm258_vm5, %v246_v23  ;;  %vm1266_vm5 = vcmask 588800  }
  0x8a   : > { %261 = vst.msk [vmem:[#allocation2 + $0x28] sm:$0x3] %vm260_vm1, %v246_v23  ;;  %vm1247_vm1 = vcmask 1040384  }
  0x8b   : > { %253 = vst.msk [vmem:[#allocation2 + $0x8] sm:$0xfc] %vm252_vm7, %v242_v24  ;;  %v244_v25 = vpop.permute.xlu0 %243  ;;  %vm1262_vm7 = vcmask 588801  }
  0x8c   : > { %255 = vst.msk [vmem:[#allocation2 + $0x10] sm:$0xff] %vm254_vm8, %v244_v25  ;;  %v435_v43 = vpop.permute.xlu1 %434  ;;  %vm1268_vm8 = vcmask 1040960  }
  0x8d   : > { %257 = vst.msk [vmem:[#allocation2 + $0x18] sm:$0xff] %vm256_vm3, %v244_v25  ;;  %vm1264_vm3 = vcmask 1048128  }
  0x8f   : > { %v4135_v27 = vld [vmem:[#allocation2] sm:$0xff]  ;;  %v378_v34 = vpop.permute.xlu0 %377 }
  0x90   : > { %v284_v29 = vmul.f32 %v282_v20, %v4135_v27  ;;  %v316_v30 = vmul.f32 %v314_v21, %v4135_v27  ;;  %v348_v33 = vmul.f32 %v346_v22, %v4135_v27  ;;  %v380_v36 = vmul.f32 %v378_v34, %v4135_v27  ;;  %v4163_v46 = vld [vmem:[#allocation2] sm:$0xfe]  ;;  %v4169_v50 = vld [vmem:[#allocation2 + $0x20] sm:$0x1]  ;;  %v525_v15 = vpop.permute.xlu1 %524 }
  0x91   : > { %v4171_v51 = vld [vmem:[#allocation2 + $0x28] sm:$0x1]  ;;  %v437_v52 = vmul.f32 %v435_v43, %v4163_v46  ;;  %v441_v56 = vmul.f32 %v435_v43, %v4169_v50  ;;  %v531_v25 = vmul.f32 %v525_v15, %v4169_v50 }
  0x92   : > { %v273_v26 = vld [vmem:[#allocation2 + $0x8] sm:$0xff]  ;;  %292 = vrot.lane.b32.xlu0 %v284_v29, %s3982_s13  ;;  %v442_v57 = vmul.f32 %v435_v43, %v4171_v51 }
  0x93   : > { %v285_v28 = vmul.f32 %v282_v20, %v273_v26  ;;  %v317_v31 = vmul.f32 %v314_v21, %v273_v26  ;;  %v349_v32 = vmul.f32 %v346_v22, %v273_v26  ;;  %v381_v35 = vmul.f32 %v378_v34, %v273_v26  ;;  %v4147_v37 = vld [vmem:[#allocation2 + $0x10] sm:$0xff]  ;;  %v4165_v47 = vld [vmem:[#allocation2 + $0x8] sm:$0xfe]  ;;  %v480_v58 = vpop.permute.xlu0 %479 }
  0x94   : > { %v4149_v38 = vld [vmem:[#allocation2 + $0x18] sm:$0xff]  ;;  %v286_v39 = vmul.f32 %v282_v20, %v4147_v37  ;;  %v318_v42 = vmul.f32 %v314_v21, %v4147_v37  ;;  %v350_v44 = vmul.f32 %v346_v22, %v4147_v37  ;;  %v439_v48 = vmul.f32 %v435_v43, %v4147_v37 }
  0x95   : > { %294 = vrot.lane.b32.xlu1 %v285_v28, %s3982_s13  ;;  %v287_v40 = vmul.f32 %v282_v20, %v4149_v38  ;;  %v319_v41 = vmul.f32 %v314_v21, %v4149_v38  ;;  %v351_v45 = vmul.f32 %v346_v22, %v4149_v38  ;;  %v440_v49 = vmul.f32 %v435_v43, %v4149_v38 }
  0x96   : > { %326 = vrot.lane.b32.xlu0 %v317_v31, %s3983_s15  ;;  %v438_v53 = vmul.f32 %v435_v43, %v4165_v47  ;;  %v383_v54 = vmul.f32 %v378_v34, %v4149_v38  ;;  %v382_v55 = vmul.f32 %v378_v34, %v4147_v37  ;;  %v450_v59 = vrot.slane %v439_v48, 1 }
  0x97   : > { %v453_v60 = vrot.slane %v440_v49, 1  ;;  %v449_v61 = vrot.slane %v437_v52, 1  ;;  %v455_v63 = vrot.slane %v441_v56, 1  ;;  %v457_v0 = vrot.slane %v442_v57, 1  ;;  %v570_v26 = vpop.permute.xlu0 %569  ;;  %v640_v49 = vpop.permute.xlu1 %639  ;;  %v4225_v56 = vld [vmem:[#allocation2] sm:$0xfc] }
  0x98   : > { %v452_v62 = vrot.slane %v438_v53, 1  ;;  %v483_v1 = vmul.f32 %v480_v58, %v4165_v47  ;;  %v485_v2 = vmul.f32 %v480_v58, %v4149_v38  ;;  %v482_v5 = vmul.f32 %v480_v58, %v4163_v46 }
  0x99   : > { %324 = vrot.lane.b32.xlu1 %v316_v30, %s3983_s15  ;;  %v451_v3 = vsel %vm416_vm9, %v449_v61, %v450_v59  ;;  %v484_v6 = vmul.f32 %v480_v58, %v4147_v37  ;;  %v487_v9 = vmul.f32 %v480_v58, %v4171_v51  ;;  %v486_v10 = vmul.f32 %v480_v58, %v4169_v50  ;;  %v4231_v61 = vld [vmem:[#allocation2 + $0x8] sm:$0xfc] }
  0x9a   : > { %356 = vrot.lane.b32.xlu0 %v348_v33, %s3984_s16  ;;  %v454_v4 = vsel %vm416_vm9, %v452_v62, %v453_v60  ;;  %v497_v7 = vrot.slane %v483_v1, 1  ;;  %v498_v8 = vrot.slane %v485_v2, 1  ;;  %v456_v11 = vsel %vm416_vm9, %v450_v59, %v455_v63  ;;  %v4235_v1 = vld [vmem:[#allocation2 + $0x20] sm:$0x3]  ;;  %v4237_v2 = vld [vmem:[#allocation2 + $0x28] sm:$0x3] }
  0x9b   : > { %v458_v12 = vsel %vm416_vm9, %v453_v60, %v457_v0  ;;  %v494_v13 = vrot.slane %v482_v5, 1  ;;  %v495_v14 = vrot.slane %v484_v6, 1  ;;  %v502_v17 = vrot.slane %v487_v9, 1 }
  0x9c   : > { %v499_v16 = vsel %vm416_vm9, %v497_v7, %v498_v8  ;;  %v500_v19 = vrot.slane %v486_v10, 1  ;;  %v529_v20 = vmul.f32 %v525_v15, %v4147_v37  ;;  %v530_v21 = vmul.f32 %v525_v15, %v4149_v38  ;;  %v685_v7 = vpop.permute.xlu0 %684 }
  0x9d   : > { %358 = vrot.lane.b32.xlu1 %v349_v32, %s3984_s16  ;;  %v496_v18 = vsel %vm416_vm9, %v494_v13, %v495_v14  ;;  %v527_v22 = vmul.f32 %v525_v15, %v4163_v46  ;;  %v528_v23 = vmul.f32 %v525_v15, %v4165_v47  ;;  %v503_v24 = vsel %vm416_vm9, %v498_v8, %v502_v17 }
  0x9e   : > { %390 = vrot.lane.b32.xlu0 %v381_v35, %s3985_s17  ;;  %v501_v28 = vsel %vm416_vm9, %v495_v14, %v500_v19  ;;  %v540_v29 = vrot.slane %v529_v20, 1  ;;  %v543_v30 = vrot.slane %v530_v21, 1  ;;  %v532_v31 = vmul.f32 %v525_v15, %v4171_v51 }
  0x9f   : > { %v539_v32 = vrot.slane %v527_v22, 1  ;;  %v542_v33 = vrot.slane %v528_v23, 1  ;;  %v573_v34 = vmul.f32 %v570_v26, %v4165_v47  ;;  %v575_v35 = vmul.f32 %v570_v26, %v4149_v38 }
  0xa0   : > { %v547_v43 = vrot.slane %v532_v31, 1  ;;  %v642_v59 = vmul.f32 %v640_v49, %v4225_v56  ;;  %v644_v60 = vmul.f32 %v640_v49, %v4147_v37  ;;  %v643_v63 = vmul.f32 %v640_v49, %v4231_v61 }
  0xa1   : > { %388 = vrot.lane.b32.xlu1 %v380_v36, %s3985_s17  ;;  %v572_v36 = vmul.f32 %v570_v26, %v4163_v46  ;;  %v645_v0 = vmul.f32 %v640_v49, %v4149_v38  ;;  %v646_v5 = vmul.f32 %v640_v49, %v4235_v1  ;;  %v647_v6 = vmul.f32 %v640_v49, %v4237_v2 }
  0xa2   : > { %296 = vrot.lane.b32.xlu0 %v286_v39, %s3982_s13  ;;  %v574_v39 = vmul.f32 %v570_v26, %v4147_v37  ;;  %v548_v53 = vsel %vm416_vm9, %v543_v30, %v547_v43  ;;  %v657_v10 = vrot.slane %v643_v63, 2  ;;  %v688_v15 = vmul.f32 %v685_v7, %v4231_v61 }
  0xa3   : > { %v584_v48 = vrot.slane %v572_v36, 1  ;;  %v660_v13 = vrot.slane %v646_v5, 2  ;;  %v662_v14 = vrot.slane %v647_v6, 2  ;;  %v690_v17 = vmul.f32 %v685_v7, %v4149_v38 }
  0xa4   : > { %v585_v47 = vrot.slane %v574_v39, 1  ;;  %v689_v19 = vmul.f32 %v685_v7, %v4147_v37  ;;  %v702_v22 = vrot.slane %v688_v15, 2  ;;  %v692_v23 = vmul.f32 %v685_v7, %v4237_v2 }
  0xa5   : > { %298 = vrot.lane.b32.xlu1 %v287_v40, %s3982_s13  ;;  %v541_v40 = vsel %vm416_vm9, %v539_v32, %v540_v29 }
  0xa6   : > { %330 = vrot.lane.b32.xlu0 %v319_v41, %s3983_s15  ;;  %v544_v41 = vsel %vm416_vm9, %v542_v33, %v543_v30  ;;  %v586_v58 = vsel %vm416_vm9, %v584_v48, %v585_v47  ;;  %v707_v30 = vrot.slane %v692_v23, 2 }
  0xa9   : > { %328 = vrot.lane.b32.xlu1 %v318_v42, %s3983_s15  ;;  %v545_v42 = vrot.slane %v531_v25, 1  ;;  %v703_v25 = vrot.slane %v690_v17, 2  ;;  %v4303_v17 = vld [vmem:[#allocation2 + $0x28] sm:$0x7] }
  0xaa   : > { %360 = vrot.lane.b32.xlu0 %v350_v44, %s3984_s16  ;;  %v587_v44 = vrot.slane %v573_v34, 1 }
  0xab   : > { %v546_v52 = vsel %vm416_vm9, %v540_v29, %v545_v42  ;;  %v691_v29 = vmul.f32 %v685_v7, %v4235_v1  ;;  %v704_v34 = vsel %vm621_vm10, %v702_v22, %v703_v25 }
  0xad   : > { %362 = vrot.lane.b32.xlu1 %v351_v45, %s3984_s16  ;;  %v588_v45 = vrot.slane %v575_v35, 1  ;;  %v705_v36 = vrot.slane %v691_v29, 2 }
  0xae   : > { %394 = vrot.lane.b32.xlu0 %v383_v54, %s3985_s17  ;;  %v577_v54 = vmul.f32 %v570_v26, %v4171_v51 }
  0xaf   : > { %v589_v57 = vsel %vm416_vm9, %v587_v44, %v588_v45  ;;  %v775_v44 = vpop.permute.xlu0 %774 }
  0xb0   : > { %v592_v62 = vrot.slane %v577_v54, 1  ;;  %v780_v54 = vmul.f32 %v775_v44, %v4149_v38  ;;  %v781_v6 = vmul.f32 %v775_v44, %v4235_v1 }
  0xb1   : > { %392 = vrot.lane.b32.xlu1 %v382_v55, %s3985_s17  ;;  %v576_v55 = vmul.f32 %v570_v26, %v4169_v50 }
  0xb2   : > { %459 = vrot.lane.b32.xlu0 %v451_v3, %s3982_s13  ;;  %v654_v3 = vrot.slane %v642_v59, 2  ;;  %v593_v8 = vsel %vm416_vm9, %v588_v45, %v592_v62 }
  0xb3   : > { %v590_v51 = vrot.slane %v576_v55, 1  ;;  %v777_v55 = vmul.f32 %v775_v44, %v4225_v56  ;;  %v890_v22 = vpop.permute.xlu0 %889 }
  0xb5   : > { %461 = vrot.lane.b32.xlu1 %v454_v4, %s3982_s13  ;;  %v655_v4 = vrot.slane %v644_v60, 2  ;;  %v591_v9 = vsel %vm416_vm9, %v585_v47, %v590_v51  ;;  %v779_v60 = vmul.f32 %v775_v44, %v4147_v37  ;;  %v793_v51 = vrot.slane %v780_v54, 2 }
  0xb6   : > { %463 = vrot.lane.b32.xlu0 %v456_v11, %s3982_s13  ;;  %v658_v11 = vrot.slane %v645_v0, 2  ;;  %v789_v63 = vrot.slane %v777_v55, 2  ;;  %v782_v0 = vmul.f32 %v775_v44, %v4237_v2  ;;  %v3836_v55 = vld [vmem:[%s6509_s1 + $0x12] ss:$0 sm:$0xff] }
  0xb7   : > { %v661_v20 = vsel %vm621_vm10, %v655_v4, %v660_v13  ;;  %v790_v5 = vrot.slane %v779_v60, 2  ;;  %v795_v13 = vrot.slane %v781_v6, 2 }
  0xb8   : > { %v663_v21 = vsel %vm621_vm10, %v658_v11, %v662_v14 }
  0xb9   : > { %465 = vrot.lane.b32.xlu1 %v458_v12, %s3982_s13  ;;  %v656_v12 = vsel %vm621_vm10, %v654_v3, %v655_v4  ;;  %v796_v23 = vsel %vm621_vm10, %v790_v5, %v795_v13 }
  0xba   : > { %506 = vrot.lane.b32.xlu0 %v499_v16, %s3983_s15  ;;  %v659_v16 = vsel %vm621_vm10, %v657_v10, %v658_v11  ;;  %v4294_v11 = vld [vmem:[#allocation2 + $0x8] sm:$0xf8] }
  0xbd   : > { %504 = vrot.lane.b32.xlu1 %v496_v18, %s3983_s15  ;;  %v687_v18 = vmul.f32 %v685_v7, %v4225_v56  ;;  %v4289_v7 = vld [vmem:[#allocation2] sm:$0xf8] }
  0xbe   : > { %510 = vrot.lane.b32.xlu0 %v503_v24, %s3983_s15  ;;  %v730_v24 = vpop.permute.xlu1 %729 }
  0xbf   : > { %v699_v26 = vrot.slane %v687_v18, 2  ;;  %v732_v31 = vmul.f32 %v730_v24, %v4225_v56  ;;  %v734_v32 = vmul.f32 %v730_v24, %v4147_v37  ;;  %v733_v33 = vmul.f32 %v730_v24, %v4231_v61 }
  0xc0   : > { %v735_v39 = vmul.f32 %v730_v24, %v4149_v38  ;;  %v736_v47 = vmul.f32 %v730_v24, %v4235_v1  ;;  %v737_v49 = vmul.f32 %v730_v24, %v4237_v2 }
  0xc1   : > { %508 = vrot.lane.b32.xlu1 %v501_v28, %s3983_s15  ;;  %v700_v28 = vrot.slane %v689_v19, 2  ;;  %v745_v42 = vrot.slane %v734_v32, 2  ;;  %v747_v43 = vrot.slane %v733_v33, 2 }
  0xc2   : > { %549 = vrot.lane.b32.xlu0 %v541_v40, %s3984_s16  ;;  %v708_v40 = vsel %vm621_vm10, %v703_v25, %v707_v30  ;;  %v748_v48 = vrot.slane %v735_v39, 2  ;;  %v752_v59 = vrot.slane %v737_v49, 2  ;;  %v893_v30 = vmul.f32 %v890_v22, %v4294_v11 }
  0xc3   : > { %v701_v35 = vsel %vm621_vm10, %v699_v26, %v700_v28  ;;  %v706_v45 = vsel %vm621_vm10, %v700_v28, %v705_v36 }
  0xc4   : > { %v753_v4 = vsel %vm621_vm10, %v748_v48, %v752_v59  ;;  %v907_v39 = vrot.slane %v893_v30, 3  ;;  %v3818_v59 = vld [vmem:[%s6509_s1] ss:$0 sm:$0xff] }
  0xc5   : > { %551 = vrot.lane.b32.xlu1 %v544_v41, %s3984_s16  ;;  %v744_v41 = vrot.slane %v732_v31, 2  ;;  %v895_v31 = vmul.f32 %v890_v22, %v4149_v38 }
  0xc6   : > { %553 = vrot.lane.b32.xlu0 %v546_v52, %s3984_s16 }
  0xc7   : > { %v746_v52 = vsel %vm621_vm10, %v744_v41, %v745_v42  ;;  %v897_v41 = vmul.f32 %v890_v22, %v4303_v17 }
  0xc9   : > { %555 = vrot.lane.b32.xlu1 %v548_v53, %s3984_s16  ;;  %v778_v53 = vmul.f32 %v775_v44, %v4231_v61  ;;  %v845_v61 = vpop.permute.xlu1 %844  ;;  %v912_v49 = vrot.slane %v897_v41, 3 }
  0xca   : > { %596 = vrot.lane.b32.xlu0 %v589_v57, %s3985_s17  ;;  %v749_v57 = vsel %vm621_vm10, %v747_v43, %v748_v48  ;;  %v847_v10 = vmul.f32 %v845_v61, %v4289_v7  ;;  %v849_v2 = vmul.f32 %v845_v61, %v4147_v37  ;;  %v848_v14 = vmul.f32 %v845_v61, %v4294_v11 }
  0xcb   : > { %v792_v62 = vrot.slane %v778_v53, 2  ;;  %v850_v15 = vmul.f32 %v845_v61, %v4149_v38  ;;  %v852_v26 = vmul.f32 %v845_v61, %v4303_v17 }
  0xcc   : > { %v859_v19 = vrot.slane %v847_v10, 3  ;;  %v862_v24 = vrot.slane %v848_v14, 3 }
  0xcd   : > { %594 = vrot.lane.b32.xlu1 %v586_v58, %s3985_s17  ;;  %v750_v58 = vrot.slane %v736_v47, 2  ;;  %v863_v25 = vrot.slane %v850_v15, 3  ;;  %v867_v33 = vrot.slane %v852_v26, 3 }
  0xce   : > { %600 = vrot.lane.b32.xlu0 %v593_v8, %s3985_s17  ;;  %v794_v8 = vsel %vm621_vm10, %v792_v62, %v793_v51 }
  0xcf   : > { %v751_v3 = vsel %vm621_vm10, %v745_v42, %v750_v58  ;;  %v864_v32 = vsel %vm826_vm11, %v862_v24, %v863_v25  ;;  %v868_v42 = vsel %vm826_vm11, %v863_v25, %v867_v33 }
  0xd1   : > { %598 = vrot.lane.b32.xlu1 %v591_v9, %s3985_s17  ;;  %v797_v9 = vrot.slane %v782_v0, 2  ;;  %v3823_v0 = vld [vmem:[%s6509_s1 + $0x5] ss:$0 sm:$0xff] }
  0xd2   : > { %664 = vrot.lane.b32.xlu0 %v656_v12, %s3982_s13  ;;  %v791_v12 = vsel %vm621_vm10, %v789_v63, %v790_v5  ;;  %v269_v63 = vmul.f32 %v3818_v59, %v4135_v27 }
  0xd3   : > { %v798_v18 = vsel %vm621_vm10, %v793_v51, %v797_v9  ;;  %v410_v9 = vmul.f32 %v3823_v0, %v4163_v46 }
  0xd5   : > { %666 = vrot.lane.b32.xlu1 %v659_v16, %s3982_s13  ;;  %v4299_v16 = vld [vmem:[#allocation2 + $0x20] sm:$0x7]  ;;  %v417_v15 = vrot.slane %v410_v9, 1 }
  0xd6   : > { %668 = vrot.lane.b32.xlu0 %v661_v20, %s3982_s13  ;;  %v860_v20 = vrot.slane %v849_v2, 3 }
  0xd8   : > { %v861_v28 = vsel %vm826_vm11, %v859_v19, %v860_v20 }
  0xd9   : > { %670 = vrot.lane.b32.xlu1 %v663_v21, %s3982_s13  ;;  %v851_v21 = vmul.f32 %v845_v61, %v4299_v16 }
  0xda   : > { %711 = vrot.lane.b32.xlu0 %v704_v34, %s3983_s15  ;;  %v892_v34 = vmul.f32 %v890_v22, %v4289_v7 }
  0xdb   : > { %v865_v29 = vrot.slane %v851_v21, 3 }
  0xdc   : > { %v904_v43 = vrot.slane %v892_v34, 3 }
  0xdd   : > { %709 = vrot.lane.b32.xlu1 %v701_v35, %s3983_s15  ;;  %v894_v35 = vmul.f32 %v890_v22, %v4147_v37  ;;  %v866_v36 = vsel %vm826_vm11, %v860_v20, %v865_v29 }
  0xde   : > { %715 = vrot.lane.b32.xlu0 %v708_v40, %s3983_s15  ;;  %v908_v40 = vrot.slane %v895_v31, 3 }
  0xdf   : > { %v905_v44 = vrot.slane %v894_v35, 3 }
  0xe0   : > { %v909_v48 = vsel %vm826_vm11, %v907_v39, %v908_v40  ;;  %v913_v53 = vsel %vm826_vm11, %v908_v40, %v912_v49 }
  0xe1   : > { %713 = vrot.lane.b32.xlu1 %v706_v45, %s3983_s15  ;;  %v896_v45 = vmul.f32 %v890_v22, %v4299_v16  ;;  %v906_v47 = vsel %vm826_vm11, %v904_v43, %v905_v44 }
  0xe2   : > { %754 = vrot.lane.b32.xlu0 %v746_v52, %s3984_s16 }
  0xe3   : > { %v910_v52 = vrot.slane %v896_v45, 3 }
  0xe5   : > { %756 = vrot.lane.b32.xlu1 %v749_v57, %s3984_s16  ;;  %v911_v54 = vsel %vm826_vm11, %v905_v44, %v910_v52  ;;  %v412_v44 = vmul.f32 %v3823_v0, %v4169_v50 }
  0xe6   : > { %758 = vrot.lane.b32.xlu0 %v751_v3, %s3984_s16  ;;  %v411_v3 = vmul.f32 %v3823_v0, %v4147_v37 }
  0xe8   : > { %v418_v2 = vrot.slane %v411_v3, 1 }
  0xe9   : > { %760 = vrot.lane.b32.xlu1 %v753_v4, %s3984_s16 }
  0xea   : > { %801 = vrot.lane.b32.xlu0 %v794_v8, %s3985_s17  ;;  %v419_v19 = vsel %vm416_vm9, %v417_v15, %v418_v2 }
  0xed   : > { %799 = vrot.lane.b32.xlu1 %v791_v12, %s3985_s17 }
  0xee   : > { %805 = vrot.lane.b32.xlu0 %v798_v18, %s3985_s17 }
  0xf1   : > { %803 = vrot.lane.b32.xlu1 %v796_v23, %s3985_s17 }
  0xf2   : > { %869 = vrot.lane.b32.xlu0 %v861_v28, %s3982_s13 }
  0xf5   : > { %871 = vrot.lane.b32.xlu1 %v864_v32, %s3982_s13 }
  0xf6   : > { %873 = vrot.lane.b32.xlu0 %v866_v36, %s3982_s13  ;;  %v270_v36 = vmul.f32 %v3818_v59, %v4147_v37 }
  0xf9   : > { %875 = vrot.lane.b32.xlu1 %v868_v42, %s3982_s13 }
  0xfa   : > { %916 = vrot.lane.b32.xlu0 %v909_v48, %s3983_s15 }
  0xfd   : > { %914 = vrot.lane.b32.xlu1 %v906_v47, %s3983_s15 }
  0xfe   : > { %920 = vrot.lane.b32.xlu0 %v913_v53, %s3983_s15 }
 0x101   : > { %918 = vrot.lane.b32.xlu1 %v911_v54, %s3983_s15  ;;  %v420_v54 = vrot.slane %v412_v44, 1 }
 0x104   : > { %v293_v58 = vpop.permute.xlu0 %292 }
 0x105   : > { %934 = vrot.lane.b32.xlu1 %v3836_v55, %s3980_s28 }
 0x107   : > { %v295_v57 = vpop.permute.xlu1 %294 }
 0x108   : > { %v327_v62 = vpop.permute.xlu0 %326  ;;  %v301_v51 = vsel %vm300_vm12, %v293_v58, %v295_v57  ;;  %v3828_v57 = vld [vmem:[%s6509_s1 + $0xa] ss:$0 sm:$0xff] }
 0x109   : > { %v305_v4 = vadd.f32 %v301_v51, %v269_v63  ;;  %v616_v59 = vmul.f32 %v3828_v57, %v4147_v37  ;;  %v421_v51 = vsel %vm416_vm9, %v418_v2, %v420_v54 }
 0x10b   : > { %v325_v60 = vpop.permute.xlu1 %324 }
 0x10c   : > { %v333_v61 = vsel %vm332_vm13, %v325_v60, %v327_v62  ;;  %v357_v6 = vpop.permute.xlu0 %356 }
 0x10d   : > { %v337_v10 = vadd.f32 %v333_v61, %v305_v4  ;;  %v615_v61 = vmul.f32 %v3828_v57, %v4225_v56 }
 0x10f   : > { %v359_v5 = vpop.permute.xlu1 %358 }
 0x110   : > { %v365_v8 = vsel %vm364_vm14, %v357_v6, %v359_v5  ;;  %v391_v13 = vpop.permute.xlu0 %390  ;;  %v623_v6 = vrot.slane %v616_v59, 2 }
 0x111   : > { %v369_v27 = vadd.f32 %v365_v8, %v337_v10  ;;  %v617_v8 = vmul.f32 %v3828_v57, %v4235_v1 }
 0x113   : > { %v389_v12 = vpop.permute.xlu1 %388 }
 0x114   : > { %v397_v14 = vsel %vm396_vm15, %v389_v12, %v391_v13  ;;  %v297_v21 = vpop.permute.xlu0 %296 }
 0x115   : > { %v401_v18 = vadd.f32 %v397_v14, %v369_v27  ;;  %v622_v14 = vrot.slane %v615_v61, 2 }
 0x117   : > { %v299_v20 = vpop.permute.xlu1 %298  ;;  %v424_v22 = vadd.f32 %v419_v19, %v401_v18  ;;  %v624_v56 = vsel %vm621_vm10, %v622_v14, %v623_v6  ;;  %v625_v19 = vrot.slane %v617_v8, 2 }
 0x118   : > { %v331_v24 = vpop.permute.xlu0 %330  ;;  %v302_v35 = vsel %vm300_vm12, %v297_v21, %v299_v20 }
 0x119   : > { %v306_v40 = vadd.f32 %v302_v35, %v270_v36 }
 0x11b   : > { %v329_v23 = vpop.permute.xlu1 %328 }
 0x11c   : > { %v361_v26 = vpop.permute.xlu0 %360  ;;  %v334_v39 = vsel %vm332_vm13, %v329_v23, %v331_v24 }
 0x11d   : > { %v338_v45 = vadd.f32 %v334_v39, %v306_v40 }
 0x11f   : > { %v363_v25 = vpop.permute.xlu1 %362 }
 0x120   : > { %v395_v28 = vpop.permute.xlu0 %394  ;;  %v366_v43 = vsel %vm364_vm14, %v361_v26, %v363_v25  ;;  %v626_v25 = vsel %vm621_vm10, %v623_v6, %v625_v19 }
 0x121   : > { %v370_v47 = vadd.f32 %v366_v43, %v338_v45 }
 0x123   : > { %v393_v46 = vpop.permute.xlu1 %392 }
 0x124   : > { %v460_v30 = vpop.permute.xlu0 %459  ;;  %v398_v48 = vsel %vm396_vm15, %v393_v46, %v395_v28 }
 0x125   : > { %v402_v55 = vadd.f32 %v398_v48, %v370_v47 }
 0x127   : > { %v462_v29 = vpop.permute.xlu1 %461  ;;  %v425_v3 = vadd.f32 %v421_v51, %v402_v55 }
 0x128   : > { %v464_v32 = vpop.permute.xlu0 %463  ;;  %v467_v53 = vsel %vm300_vm12, %v460_v30, %v462_v29 }
 0x129   : > { %v471_v60 = vadd.f32 %v467_v53, %v424_v22 }
 0x12b   : > { %v466_v31 = vpop.permute.xlu1 %465 }
 0x12c   : > { %v507_v34 = vpop.permute.xlu0 %506  ;;  %v468_v63 = vsel %vm300_vm12, %v464_v32, %v466_v31 }
 0x12d   : > { %v472_v9 = vadd.f32 %v468_v63, %v425_v3 }
 0x12f   : > { %v505_v33 = vpop.permute.xlu1 %504 }
 0x130   : > { %v511_v42 = vpop.permute.xlu0 %510  ;;  %v512_v58 = vsel %vm332_vm13, %v505_v33, %v507_v34 }
 0x131   : > { %v516_v4 = vadd.f32 %v512_v58, %v471_v60 }
 0x133   : > { %v509_v41 = vpop.permute.xlu1 %508 }
 0x134   : > { %v550_v52 = vpop.permute.xlu0 %549  ;;  %v513_v5 = vsel %vm332_vm13, %v509_v41, %v511_v42 }
 0x135   : > { %v517_v15 = vadd.f32 %v513_v5, %v472_v9 }
 0x137   : > { %v552_v49 = vpop.permute.xlu1 %551 }
 0x138   : > { %v554_v62 = vpop.permute.xlu0 %553  ;;  %v557_v0 = vsel %vm364_vm14, %v550_v52, %v552_v49 }
 0x139   : > { %v561_v10 = vadd.f32 %v557_v0, %v516_v4 }
 0x13b   : > { %v556_v50 = vpop.permute.xlu1 %555 }
 0x13c   : > { %v597_v12 = vpop.permute.xlu0 %596  ;;  %v558_v13 = vsel %vm364_vm14, %v554_v62, %v556_v50  ;;  %v3837_v62 = vld [vmem:[%s6509_s1 + $0x13] ss:$0 sm:$0xff] }
 0x13d   : > { %v562_v20 = vadd.f32 %v558_v13, %v517_v15 }
 0x13f   : > { %v595_v27 = vpop.permute.xlu1 %594 }
 0x140   : > { %v602_v2 = vsel %vm396_vm15, %v595_v27, %v597_v12  ;;  %v601_v22 = vpop.permute.xlu0 %600 }
 0x141   : > { %v606_v18 = vadd.f32 %v602_v2, %v561_v10 }
 0x143   : > { %v599_v21 = vpop.permute.xlu1 %598  ;;  %v4372_v23 = vadd.f32 %v624_v56, %v606_v18 }
 0x144   : > { %v603_v1 = vsel %vm396_vm15, %v599_v21, %v601_v22  ;;  %v4420_v51 = vpop.permute.xlu0 %664 }
 0x145   : > { %v607_v24 = vadd.f32 %v603_v1, %v562_v20 }
 0x147   : > { %v4376_v26 = vpop.permute.xlu1 %666  ;;  %v4378_v46 = vadd.f32 %v626_v25, %v607_v24 }
 0x148   : > { %v4422_v63 = vpop.permute.xlu0 %668 }
 0x14b   : > { %v4380_v28 = vpop.permute.xlu1 %670 }
 0x14c   : > { %v4424_v0 = vpop.permute.xlu0 %711 }
 0x14f   : > { %v4382_v29 = vpop.permute.xlu1 %709 }
 0x150   : > { %v4426_v61 = vpop.permute.xlu0 %715 }
 0x153   : > { %v4384_v30 = vpop.permute.xlu1 %713 }
 0x154   : > { %v4428_v3 = vpop.permute.xlu0 %754 }
 0x157   : > { %v4386_v31 = vpop.permute.xlu1 %756 }
 0x158   : > { %v4430_v4 = vpop.permute.xlu0 %758 }
 0x15b   : > { %v4388_v32 = vpop.permute.xlu1 %760 }
 0x15c   : > { %v4432_v5 = vpop.permute.xlu0 %801 }
 0x15f   : > { %v4390_v33 = vpop.permute.xlu1 %799 }
 0x160   : > { %v4434_v6 = vpop.permute.xlu0 %805 }
 0x163   : > { %v4392_v34 = vpop.permute.xlu1 %803 }
 0x164   : > { %v4436_v8 = vpop.permute.xlu0 %869 }
 0x167   : > { %v4394_v35 = vpop.permute.xlu1 %871 }
 0x168   : > { %v4438_v9 = vpop.permute.xlu0 %873 }
 0x16b   : > { %v4396_v36 = vpop.permute.xlu1 %875 }
 0x16c   : > { %v4440_v10 = vpop.permute.xlu0 %916 }
 0x16f   : > { %v4398_v39 = vpop.permute.xlu1 %914 }
 0x170   : > { %v4442_v27 = vpop.permute.xlu0 %920 }
 0x173   : > { %v4400_v40 = vpop.permute.xlu1 %918 }
 0x177   : > { %v935_v41 = vpop.permute.xlu1 %934 }
 0x178   : > { %v938_v42 = vmul.f32 %v935_v41, %v4294_v11  ;;  %v940_v43 = vmul.f32 %v935_v41, %v4149_v38  ;;  %v937_v44 = vmul.f32 %v935_v41, %v4289_v7  ;;  %v939_v45 = vmul.f32 %v935_v41, %v4147_v37 }
 0x179   : > { %v942_v48 = vmul.f32 %v935_v41, %v4303_v17  ;;  %v941_v47 = vmul.f32 %v935_v41, %v4299_v16 }
 0x17a   : > { %v952_v49 = vrot.slane %v938_v42, 3  ;;  %v953_v52 = vrot.slane %v940_v43, 3  ;;  %v949_v53 = vrot.slane %v937_v44, 3  ;;  %v950_v54 = vrot.slane %v939_v45, 3  ;;  %v3839_v44 = vld [vmem:[%s6509_s1 + $0x15] ss:$0 sm:$0xff] }
 0x17b   : > { %v957_v58 = vrot.slane %v942_v48, 3  ;;  %v955_v59 = vrot.slane %v941_v47, 3 }
 0x17c   : > { %v954_v55 = vsel %vm826_vm11, %v952_v49, %v953_v52  ;;  %v951_v57 = vsel %vm826_vm11, %v949_v53, %v950_v54  ;;  %v4474_v53 = vld [vmem:[#allocation2 + $0x8] sm:$0xf0] }
 0x17d   : > { %961 = vrot.lane.b32.xlu1 %v954_v55, %s3984_s16  ;;  %959 = vrot.lane.b32.xlu0 %v951_v57, %s3984_s16  ;;  %v958_v60 = vsel %vm826_vm11, %v953_v52, %v957_v58  ;;  %v956_v50 = vsel %vm826_vm11, %v950_v54, %v955_v59  ;;  %v4476_v54 = vld [vmem:[#allocation2] sm:$0xf0] }
 0x181   : > { %965 = vrot.lane.b32.xlu1 %v958_v60, %s3984_s16  ;;  %963 = vrot.lane.b32.xlu0 %v956_v50, %s3984_s16  ;;  %v4482_v60 = vld [vmem:[#allocation2 + $0x28] sm:$0xf]  ;;  %v4484_v50 = vld [vmem:[#allocation2 + $0x20] sm:$0xf] }
 0x185   : > { %979 = vrot.lane.b32.xlu0 %v3837_v62, %s3981_s14 }
 0x1ef   : > { %v4444_v12 = vpop.permute.xlu0 %959  ;;  %v4466_v45 = vpop.permute.xlu1 %961 }
 0x1f3   : > { %v4446_v13 = vpop.permute.xlu0 %963  ;;  %v4468_v48 = vpop.permute.xlu1 %965 }
 0x1f7   : > { %v980_v2 = vpop.permute.xlu0 %979 }
 0x1f8   : > { %v983_v14 = vmul.f32 %v980_v2, %v4294_v11  ;;  %v985_v15 = vmul.f32 %v980_v2, %v4149_v38  ;;  %v982_v18 = vmul.f32 %v980_v2, %v4289_v7  ;;  %v984_v56 = vmul.f32 %v980_v2, %v4147_v37 }
 0x1f9   : > { %v987_v19 = vmul.f32 %v980_v2, %v4303_v17  ;;  %v986_v20 = vmul.f32 %v980_v2, %v4299_v16 }
 0x1fa   : > { %v997_v21 = vrot.slane %v983_v14, 3  ;;  %v998_v22 = vrot.slane %v985_v15, 3  ;;  %v994_v1 = vrot.slane %v982_v18, 3  ;;  %v995_v24 = vrot.slane %v984_v56, 3 }
 0x1fb   : > { %v1002_v42 = vrot.slane %v987_v19, 3  ;;  %v1000_v11 = vrot.slane %v986_v20, 3 }
 0x1fc   : > { %v999_v25 = vsel %vm826_vm11, %v997_v21, %v998_v22  ;;  %v996_v41 = vsel %vm826_vm11, %v994_v1, %v995_v24 }
 0x1fd   : > { %1006 = vrot.lane.b32.xlu0 %v999_v25, %s3985_s17  ;;  %1004 = vrot.lane.b32.xlu1 %v996_v41, %s3985_s17  ;;  %v1003_v43 = vsel %vm826_vm11, %v998_v22, %v1002_v42  ;;  %v1001_v17 = vsel %vm826_vm11, %v995_v24, %v1000_v11  ;;  %v3840_v25 = vld [vmem:[%s6509_s1 + $0x16] ss:$0 sm:$0xff] }
 0x201   : > { %1010 = vrot.lane.b32.xlu0 %v1003_v43, %s3985_s17  ;;  %1008 = vrot.lane.b32.xlu1 %v1001_v17, %s3985_s17 }
 0x205   : > { %1049 = vrot.lane.b32.xlu1 %v3839_v44, %s3977_s22 }
 0x26f   : > { %v4470_v47 = vpop.permute.xlu1 %1004  ;;  %v4500_v41 = vpop.permute.xlu0 %1006 }
 0x273   : > { %v4472_v49 = vpop.permute.xlu1 %1008  ;;  %v4502_v42 = vpop.permute.xlu0 %1010 }
 0x277   : > { %v1050_v52 = vpop.permute.xlu1 %1049 }
 0x278   : > { %v1053_v55 = vmul.f32 %v1050_v52, %v4474_v53  ;;  %v1055_v57 = vmul.f32 %v1050_v52, %v4149_v38  ;;  %v1052_v58 = vmul.f32 %v1050_v52, %v4476_v54  ;;  %v1054_v59 = vmul.f32 %v1050_v52, %v4147_v37 }
 0x279   : > { %v1057_v62 = vmul.f32 %v1050_v52, %v4482_v60  ;;  %v1056_v2 = vmul.f32 %v1050_v52, %v4484_v50 }
 0x27a   : > { %v1067_v14 = vrot.slane %v1053_v55, 4  ;;  %v1068_v15 = vrot.slane %v1055_v57, 4  ;;  %v1064_v18 = vrot.slane %v1052_v58, 4  ;;  %v1065_v56 = vrot.slane %v1054_v59, 4 }
 0x27b   : > { %v1072_v21 = vrot.slane %v1057_v62, 4  ;;  %v1070_v22 = vrot.slane %v1056_v2, 4 }
 0x27c   : > { %v1069_v19 = vsel %vm1031_vm0, %v1067_v14, %v1068_v15  ;;  %v1066_v20 = vsel %vm1031_vm0, %v1064_v18, %v1065_v56 }
 0x27d   : > { %1076 = vrot.lane.b32.xlu1 %v1069_v19, %s3982_s13  ;;  %1074 = vrot.lane.b32.xlu0 %v1066_v20, %s3982_s13  ;;  %v1073_v1 = vsel %vm1031_vm0, %v1068_v15, %v1072_v21  ;;  %v1071_v24 = vsel %vm1031_vm0, %v1065_v56, %v1070_v22 }
 0x281   : > { %1080 = vrot.lane.b32.xlu1 %v1073_v1, %s3982_s13  ;;  %1078 = vrot.lane.b32.xlu0 %v1071_v24, %s3982_s13  ;;  %v3841_v1 = vld [vmem:[%s6509_s1 + $0x17] ss:$0 sm:$0xff] }
 0x285   : > { %1094 = vrot.lane.b32.xlu0 %v3840_v25, %s3978_s27 }
 0x2ef   : > { %v4504_v11 = vpop.permute.xlu0 %1074  ;;  %v4526_v24 = vpop.permute.xlu1 %1076 }
 0x2f3   : > { %v4506_v43 = vpop.permute.xlu0 %1078  ;;  %v4528_v25 = vpop.permute.xlu1 %1080 }
 0x2f7   : > { %v1095_v17 = vpop.permute.xlu0 %1094 }
 0x2f8   : > { %v1098_v44 = vmul.f32 %v1095_v17, %v4474_v53  ;;  %v1100_v52 = vmul.f32 %v1095_v17, %v4149_v38  ;;  %v1097_v55 = vmul.f32 %v1095_v17, %v4476_v54  ;;  %v1099_v57 = vmul.f32 %v1095_v17, %v4147_v37 }
 0x2f9   : > { %v1102_v58 = vmul.f32 %v1095_v17, %v4482_v60  ;;  %v1101_v59 = vmul.f32 %v1095_v17, %v4484_v50 }
 0x2fa   : > { %v1112_v62 = vrot.slane %v1098_v44, 4  ;;  %v1113_v2 = vrot.slane %v1100_v52, 4  ;;  %v1109_v14 = vrot.slane %v1097_v55, 4  ;;  %v1110_v15 = vrot.slane %v1099_v57, 4 }
 0x2fb   : > { %v1117_v19 = vrot.slane %v1102_v58, 4  ;;  %v1115_v20 = vrot.slane %v1101_v59, 4 }
 0x2fc   : > { %v1114_v18 = vsel %vm1031_vm0, %v1112_v62, %v1113_v2  ;;  %v1111_v56 = vsel %vm1031_vm0, %v1109_v14, %v1110_v15 }
 0x2fd   : > { %1121 = vrot.lane.b32.xlu0 %v1114_v18, %s3983_s15  ;;  %1119 = vrot.lane.b32.xlu1 %v1111_v56, %s3983_s15  ;;  %v1118_v21 = vsel %vm1031_vm0, %v1113_v2, %v1117_v19  ;;  %v1116_v22 = vsel %vm1031_vm0, %v1110_v15, %v1115_v20 }
 0x301   : > { %1125 = vrot.lane.b32.xlu0 %v1118_v21, %s3983_s15  ;;  %1123 = vrot.lane.b32.xlu1 %v1116_v22, %s3983_s15 }
 0x305   : > { %1139 = vrot.lane.b32.xlu1 %v3841_v1, %s3980_s28 }
 0x36f   : > { %v4530_v17 = vpop.permute.xlu1 %1119 }
 0x370   : > { %6542 = vst [vmem:[#allocation5_spill] sm:$0xff] %v4530_v17 }
 0x373   : > { %v4532_v44 = vpop.permute.xlu1 %1123 }
 0x377   : > { %v1140_v52 = vpop.permute.xlu1 %1139 }
 0x378   : > { %v1143_v55 = vmul.f32 %v1140_v52, %v4474_v53  ;;  %v1145_v57 = vmul.f32 %v1140_v52, %v4149_v38  ;;  %v1142_v58 = vmul.f32 %v1140_v52, %v4476_v54  ;;  %v1144_v59 = vmul.f32 %v1140_v52, %v4147_v37 }
 0x379   : > { %v1147_v62 = vmul.f32 %v1140_v52, %v4482_v60  ;;  %v1146_v2 = vmul.f32 %v1140_v52, %v4484_v50  ;;  %v3842_v52 = vld [vmem:[%s6509_s1 + $0x18] ss:$0 sm:$0xff] }
 0x37a   : > { %v1157_v14 = vrot.slane %v1143_v55, 4  ;;  %v1158_v15 = vrot.slane %v1145_v57, 4  ;;  %v1154_v18 = vrot.slane %v1142_v58, 4  ;;  %v1155_v56 = vrot.slane %v1144_v59, 4  ;;  %v4552_v55 = vpop.permute.xlu0 %1121 }
 0x37b   : > { %v1162_v21 = vrot.slane %v1147_v62, 4  ;;  %v1160_v22 = vrot.slane %v1146_v2, 4 }
 0x37c   : > { %v1159_v19 = vsel %vm1031_vm0, %v1157_v14, %v1158_v15  ;;  %v1156_v20 = vsel %vm1031_vm0, %v1154_v18, %v1155_v56 }
 0x37d   : > { %1166 = vrot.lane.b32.xlu1 %v1159_v19, %s3984_s16  ;;  %1164 = vrot.lane.b32.xlu0 %v1156_v20, %s3984_s16  ;;  %v1163_v1 = vsel %vm1031_vm0, %v1158_v15, %v1162_v21  ;;  %v1161_v17 = vsel %vm1031_vm0, %v1155_v56, %v1160_v22 }
 0x37e   : > { %v4554_v57 = vpop.permute.xlu0 %1125 }
 0x381   : > { %1170 = vrot.lane.b32.xlu1 %v1163_v1, %s3984_s16  ;;  %1168 = vrot.lane.b32.xlu0 %v1161_v17, %s3984_s16 }
 0x385   : > { %1184 = vrot.lane.b32.xlu0 %v3842_v52, %s3981_s14 }
 0x3ef   : > { %v4556_v58 = vpop.permute.xlu0 %1164 }
 0x3f0   : > { %6543 = vst [vmem:[#allocation6_spill] sm:$0xff] %v4556_v58 }
 0x3f3   : > { %v4558_v59 = vpop.permute.xlu0 %1168 }
 0x3f7   : > { %v1185_v62 = vpop.permute.xlu0 %1184 }
 0x3f8   : > { %v1188_v2 = vmul.f32 %v1185_v62, %v4474_v53  ;;  %v1190_v14 = vmul.f32 %v1185_v62, %v4149_v38  ;;  %v1187_v17 = vmul.f32 %v1185_v62, %v4476_v54  ;;  %v1189_v15 = vmul.f32 %v1185_v62, %v4147_v37 }
 0x3f9   : > { %v1192_v18 = vmul.f32 %v1185_v62, %v4482_v60  ;;  %v1191_v56 = vmul.f32 %v1185_v62, %v4484_v50  ;;  %v3845_v60 = vld [vmem:[%s6510_s2 + $0x1] ss:$0 sm:$0xff] }
 0x3fa   : > { %v1202_v19 = vrot.slane %v1188_v2, 4  ;;  %v1203_v20 = vrot.slane %v1190_v14, 4  ;;  %v1199_v21 = vrot.slane %v1187_v17, 4  ;;  %v1200_v22 = vrot.slane %v1189_v15, 4  ;;  %v3961_v17 = vld [vmem:[#allocation3] sm:$0xff] }
 0x3fb   : > { %v1207_v58 = vrot.slane %v1192_v18, 4  ;;  %v1205_v53 = vrot.slane %v1191_v56, 4  ;;  %v3846_v15 = vld [vmem:[%s6510_s2 + $0x2] ss:$0 sm:$0xff]  ;;  %v4591_v18 = vpop.permute.xlu1 %1166 }
 0x3fc   : > { %v1204_v1 = vsel %vm1031_vm0, %v1202_v19, %v1203_v20  ;;  %v1201_v52 = vsel %vm1031_vm0, %v1199_v21, %v1200_v22 }
 0x3fd   : > { %1211 = vrot.lane.b32.xlu0 %v1204_v1, %s3985_s17  ;;  %1209 = vrot.lane.b32.xlu1 %v1201_v52, %s3985_s17  ;;  %v1208_v37 = vsel %vm1031_vm0, %v1203_v20, %v1207_v58  ;;  %v1206_v38 = vsel %vm1031_vm0, %v1200_v22, %v1205_v53  ;;  %v3847_v52 = vld [vmem:[%s6510_s2 + $0x3] ss:$0 sm:$0xff] }
 0x3ff   : > { %v4593_v56 = vpop.permute.xlu1 %1170 }
 0x401   : > { %1215 = vrot.lane.b32.xlu0 %v1208_v37, %s3985_s17  ;;  %1213 = vrot.lane.b32.xlu1 %v1206_v38, %s3985_s17 }
 0x405   : > { %1291 = vrot.lane.b32.xlu0 %v3845_v60, %s3980_s28 }
 0x46f   : > { %v4578_v62 = vpop.permute.xlu0 %1211  ;;  %v4595_v19 = vpop.permute.xlu1 %1209 }
 0x473   : > { %v4580_v2 = vpop.permute.xlu0 %1215  ;;  %v4597_v20 = vpop.permute.xlu1 %1213 }
 0x477   : > { %v4582_v14 = vpop.permute.xlu0 %1291 }
 0x478   : > { %v1295_v58 = vmul.f32 %v3961_v17, %v4582_v14 }
 0x47a   : > { %1304 = vrot.lane.b32.xlu0 %v1295_v58, %s3984_s16  ;;  %1302 = vrot.lane.b32.xlu1 %v1295_v58, %s3984_s16  ;;  %v3848_v58 = vld [vmem:[%s6510_s2 + $0x4] ss:$0 sm:$0xff] }
 0x47e   : > { %1322 = vrot.lane.b32.xlu1 %v3846_v15, %s3986_s9 }
 0x4ec   : > { %v4599_v21 = vpop.permute.xlu1 %1302  ;;  %v4610_v53 = vpop.permute.xlu0 %1304 }
 0x4ed   : > { %6544 = vst [vmem:[#allocation7_spill] sm:$0xff] %v4599_v21  ;;  %6545 = vst [vmem:[#allocation8_spill] sm:$0xff] %v4610_v53 }
 0x4f0   : > { %v4601_v22 = vpop.permute.xlu1 %1322 }
 0x4f1   : > { %v1326_v1 = vmul.f32 %v3961_v17, %v4601_v22 }
 0x4f3   : > { %1335 = vrot.lane.b32.xlu1 %v1326_v1, %s3987_s10  ;;  %1333 = vrot.lane.b32.xlu0 %v1326_v1, %s3987_s10 }
 0x4f7   : > { %1354 = vrot.lane.b32.xlu0 %v3847_v52, %s3988_s20 }
 0x565   : > { %v4612_v37 = vpop.permute.xlu0 %1333  ;;  %v4623_v15 = vpop.permute.xlu1 %1335 }
 0x566   : > { %6546 = vst [vmem:[#allocation9_spill] sm:$0xff] %v4612_v37  ;;  %6547 = vst [vmem:[#allocation10_spill] sm:$0xff] %v4623_v15 }
 0x569   : > { %v4614_v38 = vpop.permute.xlu0 %1354 }
 0x56a   : > { %v1358_v60 = vmul.f32 %v3961_v17, %v4614_v38 }
 0x56c   : > { %1367 = vrot.lane.b32.xlu0 %v1358_v60, %s3989_s21  ;;  %1365 = vrot.lane.b32.xlu1 %v1358_v60, %s3989_s21  ;;  %v3849_v60 = vld [vmem:[%s6510_s2 + $0x5] ss:$0 sm:$0xff] }
 0x570   : > { %1386 = vrot.lane.b32.xlu1 %v3848_v58, %s3985_s17 }
 0x5de   : > { %v4625_v1 = vpop.permute.xlu1 %1365  ;;  %v4636_v21 = vpop.permute.xlu0 %1367 }
 0x5df   : > { %6548 = vst [vmem:[#allocation11_spill] sm:$0xff] %v4625_v1  ;;  %6550 = vst [vmem:[#allocation13_spill] sm:$0xff] %v4636_v21  ;;  %v1443_v21 = vld [vmem:[#allocation3 + $0x10] sm:$0xff] }
 0x5e2   : > { %v4627_v52 = vpop.permute.xlu1 %1386 }
 0x5e3   : > { %6549 = vst [vmem:[#allocation12_spill] sm:$0xff] %v4627_v52  ;;  %v1390_v37 = vmul.f32 %v3961_v17, %v4627_v52 }
 0x5e5   : > { %1399 = vrot.lane.b32.xlu1 %v1390_v37, %s3981_s14  ;;  %1397 = vrot.lane.b32.xlu0 %v1390_v37, %s3981_s14  ;;  %v3850_v37 = vld [vmem:[%s6510_s2 + $0x6] ss:$0 sm:$0xff] }
 0x5e9   : > { %1417 = vrot.lane.b32.xlu0 %v3849_v60, %s3982_s13 }
 0x657   : > { %v4638_v58 = vpop.permute.xlu0 %1397  ;;  %v4649_v53 = vpop.permute.xlu1 %1399 }
 0x658   : > { %6551 = vst [vmem:[#allocation14_spill] sm:$0xff] %v4638_v58  ;;  %6553 = vst [vmem:[#allocation16_spill] sm:$0xff] %v4649_v53  ;;  %v673_v58 = vsel %vm300_vm12, %v4422_v63, %v4380_v28  ;;  %v717_v28 = vsel %vm332_vm13, %v4382_v29, %v4424_v0  ;;  %v808_v29 = vsel %vm396_vm15, %v4392_v34, %v4434_v6  ;;  %v3962_v0 = vld [vmem:[#allocation2 + $0x10] sm:$0xff] }
 0x659   : > { %v677_v53 = vadd.f32 %v673_v58, %v4378_v46  ;;  %v4678_v46 = vld [vmem:[#allocation3 + $0x28] sm:$0xff] }
 0x65b   : > { %v4640_v15 = vpop.permute.xlu0 %1417 }
 0x65c   : > { %6552 = vst [vmem:[#allocation15_spill] sm:$0xff] %v4640_v15  ;;  %v1421_v1 = vmul.f32 %v3961_v17, %v4640_v15  ;;  %v672_v15 = vsel %vm300_vm12, %v4420_v51, %v4376_v26  ;;  %v763_v26 = vsel %vm364_vm14, %v4430_v4, %v4388_v32 }
 0x65d   : > { %v676_v63 = vadd.f32 %v672_v15, %v4372_v23  ;;  %v3852_v23 = vld [vmem:[%s6510_s2 + $0x8] ss:$0 sm:$0xff] }
 0x65e   : > { %1430 = vrot.lane.b32.xlu0 %v1421_v1, %s3977_s22  ;;  %1428 = vrot.lane.b32.xlu1 %v1421_v1, %s3977_s22  ;;  %v718_v1 = vsel %vm332_vm13, %v4384_v30, %v4426_v61 }
 0x65f   : > { %v722_v61 = vadd.f32 %v718_v1, %v677_v53  ;;  %v721_v32 = vadd.f32 %v717_v28, %v676_v63  ;;  %v3853_v1 = vld [vmem:[%s6510_s2 + $0x9] ss:$0 sm:$0xff] }
 0x661   : > { %v767_v4 = vadd.f32 %v763_v26, %v722_v61  ;;  %v877_v26 = vsel %vm300_vm12, %v4436_v8, %v4394_v35  ;;  %v3856_v35 = vld [vmem:[%s6510_s2 + $0xc] ss:$0 sm:$0xff]  ;;  %v968_v8 = vsel %vm364_vm14, %v4446_v13, %v4468_v48  ;;  %v3857_v13 = vld [vmem:[%s6510_s2 + $0xd] ss:$0 sm:$0xff]  ;;  %v3859_v48 = vld [vmem:[%s6510_s2 + $0xf] ss:$0 sm:$0xff] }
 0x662   : > { %1451 = vrot.lane.b32.xlu1 %v3850_v37, %s3978_s27  ;;  %v3833_v37 = vld [vmem:[%s6509_s1 + $0xf] ss:$0 sm:$0xff] }
 0x663   : > { %v821_v58 = vmul.f32 %v3962_v0, %v3833_v37 }
 0x665   : > { %v828_v53 = vrot.slane %v821_v58, 3  ;;  %v1013_v58 = vsel %vm396_vm15, %v4472_v49, %v4502_v42 }
 0x6d0   : > { %v4651_v60 = vpop.permute.xlu1 %1428 }
 0x6d1   : > { %6554 = vst [vmem:[#allocation17_spill] sm:$0xff] %v4651_v60  ;;  %v822_v60 = vmul.f32 %v3833_v37, %v4299_v16  ;;  %v762_v16 = vsel %vm364_vm14, %v4428_v3, %v4386_v31  ;;  %v807_v31 = vsel %vm396_vm15, %v4390_v33, %v4432_v5  ;;  %v820_v3 = vmul.f32 %v3833_v37, %v4289_v7  ;;  %v3854_v7 = vld [vmem:[%s6510_s2 + $0xa] ss:$0 sm:$0xff] }
 0x6d2   : > { %v766_v6 = vadd.f32 %v762_v16, %v721_v32 }
 0x6d3   : > { %v827_v33 = vrot.slane %v820_v3, 3 }
 0x6d4   : > { %v4667_v52 = vpop.permute.xlu1 %1451  ;;  %v811_v15 = vadd.f32 %v807_v31, %v766_v6 }
 0x6d5   : > { %v1455_v30 = vmul.f32 %v4667_v52, %v1443_v21  ;;  %v1454_v51 = vmul.f32 %v3961_v17, %v4667_v52  ;;  %v830_v17 = vrot.slane %v822_v60, 3  ;;  %v1457_v34 = vmul.f32 %v4667_v52, %v4678_v46 }
 0x6d6   : > { %v812_v21 = vadd.f32 %v808_v29, %v767_v4  ;;  %v878_v60 = vsel %vm300_vm12, %v4438_v9, %v4396_v36  ;;  %v829_v28 = vsel %vm826_vm11, %v827_v33, %v828_v53  ;;  %v3838_v36 = vld [vmem:[%s6509_s1 + $0x14] ss:$0 sm:$0xff]  ;;  %v3855_v9 = vld [vmem:[%s6510_s2 + $0xb] ss:$0 sm:$0xff]  ;;  %v967_v29 = vsel %vm364_vm14, %v4444_v12, %v4466_v45 }
 0x6d7   : > { %1464 = vrot.lane.b32.xlu1 %v1455_v30, %s3983_s15  ;;  %1462 = vrot.lane.b32.xlu0 %v1454_v51, %s3983_s15  ;;  %v831_v5 = vsel %vm826_vm11, %v828_v53, %v830_v17  ;;  %v923_v30 = vsel %vm332_vm13, %v4400_v40, %v4442_v27  ;;  %v834_v51 = vadd.f32 %v829_v28, %v811_v15  ;;  %v3863_v53 = vld [vmem:[%s6510_s2 + $0x13] ss:$0 sm:$0xff] }
 0x6d8   : > { %v835_v37 = vadd.f32 %v831_v5, %v812_v21  ;;  %v922_v40 = vsel %vm332_vm13, %v4398_v39, %v4440_v10  ;;  %v1027_v27 = vmul.f32 %v3838_v36, %v4484_v50  ;;  %v1026_v32 = vmul.f32 %v3962_v0, %v3838_v36 }
 0x6d9   : > { %v881_v61 = vadd.f32 %v877_v26, %v834_v51  ;;  %v1012_v12 = vsel %vm396_vm15, %v4470_v47, %v4500_v41  ;;  %v1025_v45 = vmul.f32 %v3838_v36, %v4476_v54  ;;  %v1083_v47 = vsel %vm300_vm12, %v4506_v43, %v4528_v25  ;;  %v6555_v43 = vld [vmem:[#allocation5_spill] sm:$0xff] }
 0x6da   : > { %v882_v63 = vadd.f32 %v878_v60, %v835_v37  ;;  %v1035_v49 = vrot.slane %v1027_v27, 4  ;;  %v1033_v0 = vrot.slane %v1026_v32, 4  ;;  %v1082_v17 = vsel %vm300_vm12, %v4504_v11, %v4526_v24 }
 0x6db   : > { %1468 = vrot.lane.b32.xlu1 %v1457_v34, %s3983_s15  ;;  %1506 = vrot.lane.b32.xlu0 %v3852_v23, %s3980_s28  ;;  %v926_v39 = vadd.f32 %v922_v40, %v881_v61  ;;  %v3861_v23 = vld [vmem:[%s6510_s2 + $0x11] ss:$0 sm:$0xff]  ;;  %v1032_v31 = vrot.slane %v1025_v45, 4  ;;  %v1128_v34 = vsel %vm332_vm13, %v4532_v44, %v4554_v57  ;;  %v1127_v25 = vsel %vm332_vm13, %v6555_v43, %v4552_v55  ;;  %v3866_v55 = vld [vmem:[%s6510_s2 + $0x16] ss:$0 sm:$0xff] }
 0x6dc   : > { %v927_v16 = vadd.f32 %v923_v30, %v882_v63  ;;  %v1036_v3 = vsel %vm1031_vm0, %v1033_v0, %v1035_v49  ;;  %v1173_v11 = vsel %vm364_vm14, %v4558_v59, %v4593_v56  ;;  %v6556_v44 = vld [vmem:[#allocation6_spill] sm:$0xff]  ;;  %v1217_v59 = vsel %vm396_vm15, %v4595_v19, %v4578_v62  ;;  %v3870_v62 = vld [vmem:[%s6510_s2 + $0x1a] ss:$0 sm:$0xff]  ;;  %v4813_v30 = vpop.permute.xlu0 %1430  ;;  %v1725_v61 = vld [vmem:[#allocation3 + $0x10] sm:$0xf8] }
 0x6dd   : > { %v971_v50 = vadd.f32 %v967_v29, %v926_v39  ;;  %v1034_v41 = vsel %vm1031_vm0, %v1032_v31, %v1033_v0  ;;  %v1172_v57 = vsel %vm364_vm14, %v6556_v44, %v4591_v18  ;;  %v3860_v0 = vld [vmem:[%s6510_s2 + $0x10] ss:$0 sm:$0xff] }
 0x6de   : > { %v972_v10 = vadd.f32 %v968_v8, %v927_v16  ;;  %v1726_v16 = vld [vmem:[#allocation3 + $0x40] sm:$0x7] }
 0x6df   : > { %1551 = vrot.lane.b32.xlu1 %v3853_v1, %s3986_s9  ;;  %1596 = vrot.lane.b32.xlu0 %v3854_v7, %s3988_s20  ;;  %v1016_v4 = vadd.f32 %v1012_v12, %v971_v50  ;;  %v1218_v1 = vsel %vm396_vm15, %v4597_v20, %v4580_v2  ;;  %v3868_v2 = vld [vmem:[%s6510_s2 + $0x18] ss:$0 sm:$0xff]  ;;  %v3843_v20 = vld [vmem:[%s6512_s4] ss:$0 sm:$0xff]  ;;  %vm1270_vm15 = vcmask 581632  }
 0x6e0   : > { %v1017_v42 = vadd.f32 %v1013_v58, %v972_v10 }
 0x6e1   : > { %v1039_v6 = vadd.f32 %v1034_v41, %v1016_v4 }
 0x6e2   : > { %v1040_v54 = vadd.f32 %v1036_v3, %v1017_v42  ;;  %v3864_v3 = vld [vmem:[%s6510_s2 + $0x14] ss:$0 sm:$0xff] }
 0x6e3   : > { %1641 = vrot.lane.b32.xlu1 %v3855_v9, %s3985_s17  ;;  %1686 = vrot.lane.b32.xlu0 %v3856_v35, %s3982_s13  ;;  %v1086_v24 = vadd.f32 %v1082_v17, %v1039_v6 }
 0x6e4   : > { %v1087_v21 = vadd.f32 %v1083_v47, %v1040_v54 }
 0x6e5   : > { %v1131_v7 = vadd.f32 %v1127_v25, %v1086_v24 }
 0x6e6   : > { %v1132_v15 = vadd.f32 %v1128_v34, %v1087_v21  ;;  %v2021_v21 = vld [vmem:[#allocation3 + $0x10] sm:$0xc0] }
 0x6e7   : > { %1733 = vrot.lane.b32.xlu1 %v3857_v13, %s3978_s27  ;;  %1802 = vrot.lane.b32.xlu0 %v3859_v48, %s3980_s28  ;;  %v1176_v56 = vadd.f32 %v1172_v57, %v1131_v7 }
 0x6e8   : > { %v1177_v33 = vadd.f32 %v1173_v11, %v1132_v15 }
 0x6e9   : > { %v1221_v18 = vadd.f32 %v1217_v59, %v1176_v56 }
 0x6ea   : > { %v1222_v5 = vadd.f32 %v1218_v1, %v1177_v33  ;;  %v3867_v33 = vld [vmem:[%s6510_s2 + $0x17] ss:$0 sm:$0xff] }
 0x6eb   : > { %1892 = vrot.lane.b32.xlu0 %v3861_v23, %s3988_s20  ;;  %v4801_v37 = vadd.f32 %v3843_v20, %v1221_v18  ;;  %v3862_v23 = vld [vmem:[%s6510_s2 + $0x12] ss:$0 sm:$0xff] }
 0x6ec   : > { %v4798_v60 = vadd.f32 %v3843_v20, %v1222_v5 }
 0x6ed   : > { %v1248_v28 = vrot.slane %v4801_v37, 7 }
 0x6ee   : > { %v1249_v19 = vrot.slane %v4798_v60, 7 }
 0x6ef   : > { %1982 = vrot.lane.b32.xlu0 %v3863_v53, %s3982_s13  ;;  %v2022_v53 = vld [vmem:[#allocation3 + $0x40] sm:$0x3f] }
 0x6f0   : > { %v1250_v26 = vsel %vm1247_vm1, %v1248_v28, %v1249_v19 }
 0x6f3   : > { %2100 = vrot.lane.b32.xlu0 %v3866_v55, %s3980_s28 }
 0x6f7   : > { %2190 = vrot.lane.b32.xlu0 %v3868_v2, %s3988_s20 }
 0x6fb   : > { %2280 = vrot.lane.b32.xlu0 %v3870_v62, %s3982_s13 }
 0x6ff   : > { %1253 = vrot.lane.b32.xlu0 %v1250_v26, %s3988_s20 }
 0x749   : > { %v4815_v51 = vpop.permute.xlu1 %1464  ;;  %v4817_v63 = vpop.permute.xlu0 %1462 }
 0x74d   : > { %v4819_v36 = vpop.permute.xlu1 %1468  ;;  %v4821_v9 = vpop.permute.xlu0 %1506 }
 0x751   : > { %v4823_v35 = vpop.permute.xlu1 %1551  ;;  %v4825_v40 = vpop.permute.xlu0 %1596 }
 0x755   : > { %v4827_v8 = vpop.permute.xlu1 %1641  ;;  %v4829_v27 = vpop.permute.xlu0 %1686 }
 0x759   : > { %v4831_v29 = vpop.permute.xlu1 %1733  ;;  %v4833_v58 = vpop.permute.xlu0 %1802 }
 0x75a   : > { %v1737_v32 = vmul.f32 %v4831_v29, %v1725_v61  ;;  %v1739_v39 = vmul.f32 %v4831_v29, %v4678_v46  ;;  %v1741_v10 = vmul.f32 %v4831_v29, %v1726_v16  ;;  %v6561_v61 = vld [vmem:[#allocation12_spill] sm:$0xff] }
 0x75c   : > { %v1751_v13 = vrot.slane %v1737_v32, 3  ;;  %v1752_v48 = vrot.slane %v1739_v39, 3  ;;  %v1756_v49 = vrot.slane %v1741_v10, 3  ;;  %v4929_v32 = vld [vmem:[#allocation3] sm:$0xf8] }
 0x75d   : > { %v4839_v12 = vpop.permute.xlu0 %1892  ;;  %v1509_v39 = vmul.f32 %v4821_v9, %v4929_v32 }
 0x75e   : > { %v1753_v45 = vsel %vm826_vm11, %v1751_v13, %v1752_v48  ;;  %v1757_v42 = vsel %vm826_vm11, %v1752_v48, %v1756_v49  ;;  %v6562_v13 = vld [vmem:[#allocation15_spill] sm:$0xff] }
 0x75f   : > { %1760 = vrot.lane.b32.xlu1 %v1753_v45, %s3983_s15 }
 0x761   : > { %v4843_v50 = vpop.permute.xlu0 %1982 }
 0x763   : > { %1764 = vrot.lane.b32.xlu1 %v1757_v42, %s3983_s15  ;;  %v1521_v42 = vrot.slane %v1509_v39, 3 }
 0x765   : > { %v4850_v4 = vpop.permute.xlu0 %2100 }
 0x767   : > { %1847 = vrot.lane.b32.xlu1 %v3860_v0, %s3986_s9 }
 0x769   : > { %v4856_v31 = vpop.permute.xlu0 %2190 }
 0x76b   : > { %1937 = vrot.lane.b32.xlu1 %v3862_v23, %s3985_s17 }
 0x76d   : > { %v4862_v47 = vpop.permute.xlu0 %2280 }
 0x76f   : > { %2029 = vrot.lane.b32.xlu1 %v3864_v3, %s3978_s27 }
 0x771   : > { %v1254_v54 = vpop.permute.xlu0 %1253 }
 0x772   : > { %1265 = vst.msk [vmem:[#allocation3 + $0x30] sm:$0xff] %vm1264_vm3, %v1254_v54  ;;  %vm1341_vm3 = vcmask 654336  }
 0x773   : > { %1267 = vst.msk [vmem:[#allocation3 + $0x38] sm:$0xff] %vm1266_vm5, %v1254_v54  ;;  %vm1373_vm5 = vcmask 457728  }
 0x7d1   : > { %v4865_v41 = vpop.permute.xlu1 %1760 }
 0x7d2   : > { %6557 = vst [vmem:[#allocation5_spill] sm:$0xff] %v4865_v41 }
 0x7d5   : > { %v4867_v17 = vpop.permute.xlu1 %1764 }
 0x7d6   : > { %6558 = vst [vmem:[#allocation6_spill] sm:$0xff] %v4867_v17 }
 0x7d9   : > { %v4869_v34 = vpop.permute.xlu1 %1847 }
 0x7dd   : > { %v4871_v6 = vpop.permute.xlu1 %1937 }
 0x7e1   : > { %v4873_v43 = vpop.permute.xlu1 %2029 }
 0x7e2   : > { %v2033_v25 = vmul.f32 %v4873_v43, %v2021_v21  ;;  %v2035_v11 = vmul.f32 %v4873_v43, %v4678_v46  ;;  %v2037_v24 = vmul.f32 %v4873_v43, %v2022_v53  ;;  %v3869_v46 = vld [vmem:[%s6510_s2 + $0x19] ss:$0 sm:$0xff] }
 0x7e4   : > { %v2047_v15 = vrot.slane %v2033_v25, 6  ;;  %v2048_v44 = vrot.slane %v2035_v11, 6  ;;  %v2052_v1 = vrot.slane %v2037_v24, 6  ;;  %v1599_v11 = vmul.f32 %v4825_v40, %v4929_v32 }
 0x7e6   : > { %v2049_v57 = vsel %vm237_vm4, %v2047_v15, %v2048_v44  ;;  %v2053_v7 = vsel %vm237_vm4, %v2048_v44, %v2052_v1  ;;  %v1554_v1 = vmul.f32 %v4823_v35, %v4929_v32 }
 0x7e7   : > { %2056 = vrot.lane.b32.xlu1 %v2049_v57, %s3983_s15 }
 0x7eb   : > { %2060 = vrot.lane.b32.xlu1 %v2053_v7, %s3983_s15  ;;  %v1611_v7 = vrot.slane %v1599_v11, 3 }
 0x7ef   : > { %2145 = vrot.lane.b32.xlu1 %v3867_v33, %s3986_s9 }
 0x7f3   : > { %2235 = vrot.lane.b32.xlu1 %v3869_v46, %s3985_s17 }
 0x7f7   : > { %1251 = vrot.lane.b32.xlu1 %v1248_v28, %s3988_s20 }
 0x7fb   : > { %1255 = vrot.lane.b32.xlu1 %v1249_v19, %s3988_s20 }
 0x859   : > { %v4895_v55 = vpop.permute.xlu1 %2056 }
 0x85a   : > { %6559 = vst [vmem:[#allocation18_spill] sm:$0xff] %v4895_v55 }
 0x85d   : > { %v4897_v59 = vpop.permute.xlu1 %2060 }
 0x85e   : > { %6560 = vst [vmem:[#allocation19_spill] sm:$0xff] %v4897_v59 }
 0x861   : > { %v4899_v56 = vpop.permute.xlu1 %2145 }
 0x865   : > { %v4901_v5 = vpop.permute.xlu1 %2235 }
 0x869   : > { %v1252_v18 = vpop.permute.xlu1 %1251 }
 0x86a   : > { %1261 = vst.msk [vmem:[#allocation3 + $0x18] sm:$0xfe] %vm1260_vm6, %v1252_v18  ;;  %vm1436_vm6 = vcmask 64512  }
 0x86b   : > { %1263 = vst.msk [vmem:[#allocation3 + $0x20] sm:$0xfe] %vm1262_vm7, %v1252_v18  ;;  %vm3520_vm7 = vcmask 990208  }
 0x86d   : > { %v1256_v2 = vpop.permute.xlu1 %1255 }
 0x86e   : > { %1269 = vst.msk [vmem:[#allocation3 + $0x48] sm:$0x1] %vm1268_vm8, %v1256_v2  ;;  %vm3583_vm8 = vcmask 973824  }
 0x86f   : > { %1271 = vst.msk [vmem:[#allocation3 + $0x50] sm:$0x1] %vm1270_vm15, %v1256_v2  ;;  %vm3615_vm15 = vcmask 965632  }
 0x871   : > { %v4903_v20 = vld [vmem:[#allocation3 + $0x18] sm:$0xff] }
 0x872   : > { %v4905_v60 = vld [vmem:[#allocation3 + $0x20] sm:$0xff]  ;;  %v1296_v37 = vmul.f32 %v4582_v14, %v4903_v20  ;;  %v1327_v28 = vmul.f32 %v4601_v22, %v4903_v20  ;;  %v1359_v26 = vmul.f32 %v4614_v38, %v4903_v20  ;;  %v4935_v10 = vmul.f32 %v4821_v9, %v4903_v20 }
 0x873   : > { %v1297_v62 = vmul.f32 %v4582_v14, %v4905_v60  ;;  %v1328_v19 = vmul.f32 %v4601_v22, %v4905_v60  ;;  %v1360_v14 = vmul.f32 %v4614_v38, %v4905_v60  ;;  %v1392_v16 = vmul.f32 %v6561_v61, %v4905_v60  ;;  %v4939_v38 = vld [vmem:[#allocation3 + $0x8] sm:$0xf8] }
 0x874   : > { %1306 = vrot.lane.b32.xlu1 %v1296_v37, %s3984_s16  ;;  %v1391_v22 = vmul.f32 %v6561_v61, %v4903_v20  ;;  %v1422_v48 = vmul.f32 %v6562_v13, %v4903_v20  ;;  %v1423_v45 = vmul.f32 %v6562_v13, %v4905_v60  ;;  %v1510_v49 = vmul.f32 %v4821_v9, %v4939_v38  ;;  %v5008_v61 = vld [vmem:[%s6510_s2 + $0x7] ss:$0 sm:$0xff] }
 0x875   : > { %1308 = vrot.lane.b32.xlu0 %v1297_v62, %s3984_s16  ;;  %v6527_v0 = vrot.slane %v4935_v10, 3  ;;  %v4950_v23 = vmul.f32 %v4821_v9, %v4905_v60  ;;  %v4954_v3 = vmul.f32 %v4823_v35, %v4905_v60  ;;  %v1555_v54 = vmul.f32 %v4823_v35, %v4939_v38 }
 0x876   : > { %v1456_v21 = vmul.f32 %v4667_v52, %v4905_v60  ;;  %v1524_v53 = vrot.slane %v1510_v49, 3  ;;  %v4964_v25 = vmul.f32 %v4823_v35, %v4903_v20  ;;  %v4975_v57 = vmul.f32 %v4825_v40, %v4903_v20 }
 0x877   : > { %v1523_v24 = vsel %vm826_vm11, %v1521_v42, %v6527_v0  ;;  %v6521_v15 = vrot.slane %v4950_v23, 3  ;;  %v6526_v44 = vrot.slane %v4954_v3, 3  ;;  %v1569_v52 = vrot.slane %v1555_v54, 3 }
 0x878   : > { %1339 = vrot.lane.b32.xlu1 %v1328_v19, %s3987_s10  ;;  %v1600_v33 = vmul.f32 %v4825_v40, %v4939_v38  ;;  %v4985_v46 = vmul.f32 %v4825_v40, %v4905_v60  ;;  %v4989_v18 = vmul.f32 %v4827_v8, %v4905_v60  ;;  %v6519_v62 = vrot.slane %v4964_v25, 3 }
 0x879   : > { %1337 = vrot.lane.b32.xlu0 %v1327_v28, %s3987_s10  ;;  %v1526_v2 = vsel %vm826_vm11, %v1524_v53, %v6521_v15  ;;  %v1571_v37 = vsel %vm826_vm11, %v1569_v52, %v6526_v44  ;;  %v6525_v19 = vrot.slane %v4975_v57, 3  ;;  %v1645_v28 = vmul.f32 %v4827_v8, %v4939_v38  ;;  %v5070_v15 = vld [vmem:[#allocation3 + $0x8] sm:$0xc0] }
 0x87a   : > { %v6520_v39 = vrot.slane %v4989_v18, 3  ;;  %v5014_v13 = vmul.f32 %v4827_v8, %v4903_v20  ;;  %v5026_v42 = vmul.f32 %v4829_v27, %v4903_v20  ;;  %v1690_v11 = vmul.f32 %v4829_v27, %v4939_v38 }
 0x87b   : > { %v1613_v49 = vsel %vm826_vm11, %v1611_v7, %v6525_v19  ;;  %v1659_v54 = vrot.slane %v1645_v28, 3  ;;  %v5050_v28 = vmul.f32 %v4829_v27, %v4905_v60 }
 0x87c   : > { %1369 = vrot.lane.b32.xlu1 %v1359_v26, %s3989_s21  ;;  %v1566_v26 = vrot.slane %v1554_v1, 3 }
 0x87d   : > { %1371 = vrot.lane.b32.xlu0 %v1360_v14, %s3989_s21  ;;  %v1689_v14 = vmul.f32 %v4829_v27, %v4929_v32  ;;  %v1661_v7 = vsel %vm826_vm11, %v1659_v54, %v6520_v39  ;;  %v5068_v39 = vmul.f32 %v4831_v29, %v4905_v60 }
 0x87f   : > { %v1701_v53 = vrot.slane %v1689_v14, 3  ;;  %v5058_v14 = vmul.f32 %v5008_v61, %v4903_v20 }
 0x880   : > { %1403 = vrot.lane.b32.xlu1 %v1392_v16, %s3981_s14  ;;  %v1614_v16 = vrot.slane %v1600_v33, 3  ;;  %v6522_v33 = vrot.slane %v5014_v13, 3 }
 0x881   : > { %1401 = vrot.lane.b32.xlu0 %v1391_v22, %s3981_s14  ;;  %v6518_v22 = vrot.slane %v4985_v46, 3  ;;  %6564 = vst [vmem:[#allocation15_spill] sm:$0xff] %v5058_v14 }
 0x883   : > { %v1616_v1 = vsel %vm826_vm11, %v1614_v16, %v6518_v22 }
 0x884   : > { %1432 = vrot.lane.b32.xlu1 %v1422_v48, %s3977_s22  ;;  %v5016_v48 = vld [vmem:[#allocation3 + $0x30] sm:$0x7] }
 0x885   : > { %1434 = vrot.lane.b32.xlu0 %v1423_v45, %s3977_s22  ;;  %v1568_v45 = vsel %vm826_vm11, %v1566_v26, %v6519_v62  ;;  %v1485_v52 = vmul.f32 %v5008_v61, %v5016_v48  ;;  %v5054_v26 = vmul.f32 %v4833_v58, %v4903_v20 }
 0x887   : > { %v1492_v54 = vrot.slane %v1485_v52, 3  ;;  %v6533_v52 = vrot.slane %v5054_v26, 6 }
 0x888   : > { %1531 = vrot.lane.b32.xlu1 %v1523_v24, %s3984_s16  ;;  %v5034_v24 = vld [vmem:[#allocation3] sm:$0xc0] }
 0x889   : > { %1466 = vrot.lane.b32.xlu0 %v1456_v21, %s3983_s15  ;;  %v1644_v21 = vmul.f32 %v4827_v8, %v4929_v32  ;;  %6563 = vst [vmem:[#allocation12_spill] sm:$0xff] %v5034_v24 }
 0x88b   : > { %v1656_v16 = vrot.slane %v1644_v21, 3 }
 0x88c   : > { %1578 = vrot.lane.b32.xlu1 %v1571_v37, %s3987_s10  ;;  %v6524_v37 = vrot.slane %v5026_v42, 3 }
 0x88d   : > { %1533 = vrot.lane.b32.xlu0 %v1526_v2, %s3984_s16  ;;  %v1805_v2 = vmul.f32 %v4833_v58, %v5034_v24  ;;  %v1658_v22 = vsel %vm826_vm11, %v1656_v16, %v6522_v33  ;;  %v1851_v16 = vmul.f32 %v4869_v34, %v5070_v15  ;;  %v5096_v33 = vmul.f32 %v4833_v58, %v4905_v60 }
 0x88e   : > { %v1703_v21 = vsel %vm826_vm11, %v1701_v53, %v6524_v37  ;;  %v1806_v53 = vmul.f32 %v4833_v58, %v5070_v15 }
 0x88f   : > { %v1817_v62 = vrot.slane %v1805_v2, 6  ;;  %v1736_v2 = vmul.f32 %v4831_v29, %v4939_v38  ;;  %v1865_v44 = vrot.slane %v1851_v16, 6  ;;  %v6530_v59 = vrot.slane %v5096_v33, 6 }
 0x890   : > { %1621 = vrot.lane.b32.xlu1 %v1613_v49, %s3989_s21  ;;  %v6523_v49 = vrot.slane %v5058_v14, 3  ;;  %v1820_v0 = vrot.slane %v1806_v53, 6  ;;  %v1850_v16 = vmul.f32 %v4869_v34, %v5034_v24 }
 0x891   : > { %1576 = vrot.lane.b32.xlu0 %v1568_v45, %s3987_s10  ;;  %v1704_v45 = vrot.slane %v1690_v11, 3  ;;  %v6528_v11 = vrot.slane %v5050_v28, 3  ;;  %v1748_v19 = vrot.slane %v1736_v2, 3  ;;  %v5128_v2 = vmul.f32 %v4871_v6, %v4905_v60 }
 0x893   : > { %v1706_v38 = vsel %vm826_vm11, %v1704_v45, %v6528_v11  ;;  %v6565_v55 = vrot.slane %v5128_v2, 6 }
 0x894   : > { %1668 = vrot.lane.b32.xlu1 %v1661_v7, %s3981_s14  ;;  %v5084_v7 = vsel %vm826_vm11, %v6523_v49, %v1492_v54  ;;  %v1895_v54 = vmul.f32 %v4839_v12, %v5034_v24  ;;  %v6529_v49 = vrot.slane %v5068_v39, 3 }
 0x895   : > { %1623 = vrot.lane.b32.xlu0 %v1616_v1, %s3989_s21  ;;  %v5074_v1 = vmul.f32 %v4869_v34, %v4905_v60 }
 0x896   : > { %v1907_v17 = vrot.slane %v1895_v54, 6  ;;  %v1896_v54 = vmul.f32 %v4839_v12, %v5070_v15 }
 0x897   : > { %v6532_v37 = vrot.slane %v5074_v1, 6 }
 0x898   : > { %1711 = vrot.lane.b32.xlu1 %v1703_v21, %s3977_s22  ;;  %v1819_v21 = vsel %vm237_vm4, %v1817_v62, %v6533_v52  ;;  %v1750_v62 = vsel %vm826_vm11, %v1748_v19, %v6529_v49  ;;  %v1941_v19 = vmul.f32 %v4871_v6, %v5070_v15  ;;  %v5150_v49 = vmul.f32 %v4839_v12, %v4905_v60 }
 0x899   : > { %1666 = vrot.lane.b32.xlu0 %v1658_v22, %s3981_s14  ;;  %v5102_v22 = vmul.f32 %v4839_v12, %v4903_v20  ;;  %v1867_v11 = vsel %vm237_vm4, %v1865_v44, %v6532_v37  ;;  %v1822_v44 = vsel %vm237_vm4, %v1820_v0, %v6530_v59  ;;  %v5154_v0 = vmul.f32 %v4843_v50, %v4903_v20 }
 0x89a   : > { %v1955_v59 = vrot.slane %v1941_v19, 6  ;;  %v5160_v52 = vmul.f32 %v4871_v6, %v4903_v20  ;;  %v1513_v19 = vmul.f32 %v4821_v9, %v5016_v48 }
 0x89b   : > { %v6531_v45 = vrot.slane %v5102_v22, 6 }
 0x89c   : > { %1827 = vrot.lane.b32.xlu1 %v1819_v21, %s3984_s16  ;;  %v1957_v41 = vsel %vm237_vm4, %v1955_v59, %v6565_v55 }
 0x89d   : > { %1713 = vrot.lane.b32.xlu0 %v1706_v38, %s3977_s22  ;;  %v5124_v38 = vmul.f32 %v4869_v34, %v4903_v20  ;;  %v1909_v53 = vsel %vm237_vm4, %v1907_v17, %v6531_v45  ;;  %v1862_v17 = vrot.slane %v1850_v16, 6  ;;  %v1910_v45 = vrot.slane %v1896_v54, 6 }
 0x89e   : > { %v1940_v16 = vmul.f32 %v4871_v6, %v5034_v24  ;;  %v1986_v54 = vmul.f32 %v4843_v50, %v5070_v15 }
 0x89f   : > { %v6534_v21 = vrot.slane %v5124_v38, 6 }
 0x8a0   : > { %1874 = vrot.lane.b32.xlu1 %v1867_v11, %s3987_s10  ;;  %v1985_v11 = vmul.f32 %v4843_v50, %v5034_v24 }
 0x8a1   : > { %1758 = vrot.lane.b32.xlu0 %v1750_v62, %s3983_s15  ;;  %v1864_v62 = vsel %vm237_vm4, %v1862_v17, %v6534_v21  ;;  %v1952_v17 = vrot.slane %v1940_v16, 6  ;;  %v1527_v21 = vrot.slane %v1513_v19, 3  ;;  %v2032_v19 = vmul.f32 %v4873_v43, %v5070_v15 }
 0x8a2   : > { %v1997_v37 = vrot.slane %v1985_v11, 6  ;;  %v5178_v11 = vld [vmem:[#allocation3 + $0x38] sm:$0x7] }
 0x8a3   : > { %v1559_v24 = vmul.f32 %v4823_v35, %v5178_v11  ;;  %v1514_v15 = vmul.f32 %v4821_v9, %v5178_v11  ;;  %v1558_v9 = vmul.f32 %v4823_v35, %v5016_v48  ;;  %v1604_v35 = vmul.f32 %v4825_v40, %v5178_v11 }
 0x8a4   : > { %1917 = vrot.lane.b32.xlu1 %v1909_v53, %s3989_s21  ;;  %v6537_v53 = vrot.slane %v5154_v0, 6 }
 0x8a5   : > { %1829 = vrot.lane.b32.xlu0 %v1822_v44, %s3984_s16  ;;  %v6536_v44 = vrot.slane %v5150_v49, 6  ;;  %v1574_v16 = vrot.slane %v1559_v24, 3  ;;  %v2044_v24 = vrot.slane %v2032_v19, 6  ;;  %v1693_v19 = vmul.f32 %v4829_v27, %v5016_v48 }
 0x8a6   : > { %v1999_v59 = vsel %vm237_vm4, %v1997_v37, %v6537_v53 }
 0x8a7   : > { %v1912_v55 = vsel %vm237_vm4, %v1910_v45, %v6536_v44  ;;  %v2000_v45 = vrot.slane %v1986_v54, 6  ;;  %v6566_v44 = vrot.slane %v4935_v10, 3  ;;  %v1603_v54 = vmul.f32 %v4825_v40, %v5016_v48 }
 0x8a8   : > { %1964 = vrot.lane.b32.xlu1 %v1957_v41, %s3981_s14  ;;  %v1953_v41 = vrot.slane %v5160_v52, 6  ;;  %v1648_v40 = vmul.f32 %v4827_v8, %v5016_v48 }
 0x8a9   : > { %1872 = vrot.lane.b32.xlu0 %v1864_v62, %s3987_s10  ;;  %v5189_v62 = vmul.f32 %v4843_v50, %v4905_v60  ;;  %v1528_v53 = vsel %vm826_vm11, %v6566_v44, %v1527_v21  ;;  %v6567_v21 = vrot.slane %v4954_v3, 3 }
 0x8aa   : > { %v1954_v37 = vsel %vm237_vm4, %v1952_v17, %v1953_v41  ;;  %v6568_v17 = vrot.slane %v4975_v57, 3 }
 0x8ab   : > { %v2001_v14 = vrot.slane %v5189_v62, 6 }
 0x8ac   : > { %2007 = vrot.lane.b32.xlu1 %v1999_v59, %s3977_s22  ;;  %v1649_v59 = vmul.f32 %v4827_v8, %v5178_v11  ;;  %v1694_v8 = vmul.f32 %v4829_v27, %v5178_v11  ;;  %v1740_v27 = vmul.f32 %v4831_v29, %v5178_v11  ;;  %v5303_v11 = vld [vmem:[#allocation3 + $0x30] sm:$0xff] }
 0x8ad   : > { %1919 = vrot.lane.b32.xlu0 %v1912_v55, %s3989_s21  ;;  %v5204_v55 = vmul.f32 %v4873_v43, %v4905_v60  ;;  %v2002_v10 = vsel %vm237_vm4, %v2000_v45, %v2001_v14  ;;  %v1575_v60 = vsel %vm826_vm11, %v6567_v21, %v1574_v16  ;;  %v6570_v21 = vrot.slane %v4989_v18, 3 }
 0x8ae   : > { %v1664_v16 = vrot.slane %v1649_v59, 3  ;;  %v6572_v18 = vrot.slane %v5026_v42, 3 }
 0x8af   : > { %v2045_v44 = vrot.slane %v5204_v55, 6 }
 0x8b0   : > { %1535 = vrot.lane.b32.xlu1 %v1528_v53, %s3984_s16  ;;  %v1617_v53 = vrot.slane %v1603_v54, 3  ;;  %v5237_v54 = vld [vmem:[#allocation3 + $0x30] sm:$0x3f] }
 0x8b1   : > { %1962 = vrot.lane.b32.xlu0 %v1954_v37, %s3981_s14  ;;  %v2046_v3 = vsel %vm237_vm4, %v2044_v24, %v2045_v44  ;;  %v1529_v37 = vrot.slane %v1514_v15, 3  ;;  %v1572_v24 = vrot.slane %v1558_v9, 3  ;;  %v1809_v15 = vmul.f32 %v4833_v58, %v5237_v54 }
 0x8b2   : > { %v1618_v45 = vsel %vm826_vm11, %v6568_v17, %v1617_v53  ;;  %v1707_v53 = vrot.slane %v1693_v19, 3  ;;  %v5259_v17 = vld [vmem:[#allocation3 + $0x38] sm:$0x3f]  ;;  %v6574_v9 = vrot.slane %v5054_v26, 6  ;;  %v1899_v48 = vmul.f32 %v4839_v12, %v5237_v54 }
 0x8b3   : > { %v6576_v26 = vrot.slane %v5074_v1, 6  ;;  %v6578_v1 = vrot.slane %v5102_v22, 6  ;;  %v1810_v29 = vmul.f32 %v4833_v58, %v5259_v17  ;;  %v6579_v22 = vrot.slane %v5068_v39, 3  ;;  %v5315_v58 = vld [vmem:[#allocation3 + $0x48] sm:$0x1] }
 0x8b4   : > { %1582 = vrot.lane.b32.xlu1 %v1575_v60, %s3987_s10  ;;  %v1665_v60 = vsel %vm826_vm11, %v6570_v21, %v1664_v16  ;;  %v6573_v16 = vrot.slane %v4985_v46, 3  ;;  %v6575_v46 = vrot.slane %v5014_v13, 3  ;;  %v6577_v13 = vrot.slane %v5050_v28, 3 }
 0x8b5   : > { %2009 = vrot.lane.b32.xlu0 %v2002_v10, %s3977_s22  ;;  %v6569_v10 = vrot.slane %v4950_v23, 3  ;;  %v6571_v23 = vrot.slane %v4964_v25, 3  ;;  %v1855_v25 = vmul.f32 %v4869_v34, %v5259_v17  ;;  %v1989_v28 = vmul.f32 %v4843_v50, %v5237_v54 }
 0x8b6   : > { %v1854_v39 = vmul.f32 %v4869_v34, %v5237_v54  ;;  %v5331_v34 = vld [vmem:[#allocation3 + $0x20] sm:$0xfe] }
 0x8b7   : > { %v1530_v57 = vsel %vm826_vm11, %v6569_v10, %v1529_v37  ;;  %v1573_v59 = vsel %vm826_vm11, %v6571_v23, %v1572_v24  ;;  %v1823_v37 = vrot.slane %v1809_v15, 6  ;;  %v1662_v10 = vrot.slane %v1648_v40, 3 }
 0x8b8   : > { %1625 = vrot.lane.b32.xlu1 %v1618_v45, %s3989_s21  ;;  %v1619_v45 = vrot.slane %v1604_v35, 3  ;;  %v1709_v24 = vrot.slane %v1694_v8, 3  ;;  %v1945_v35 = vmul.f32 %v4871_v6, %v5259_v17 }
 0x8b9   : > { %2054 = vrot.lane.b32.xlu0 %v2046_v3, %s3983_s15  ;;  %v1708_v3 = vsel %vm826_vm11, %v6572_v18, %v1707_v53  ;;  %v1824_v19 = vsel %vm237_vm4, %v6574_v9, %v1823_v37  ;;  %v1663_v21 = vsel %vm826_vm11, %v6575_v46, %v1662_v10  ;;  %v1913_v53 = vrot.slane %v1899_v48, 6 }
 0x8ba   : > { %v1620_v42 = vsel %vm826_vm11, %v6573_v16, %v1619_v45  ;;  %v1710_v15 = vsel %vm826_vm11, %v6577_v13, %v1709_v24  ;;  %v1754_v18 = vrot.slane %v1740_v27, 3  ;;  %v6580_v37 = vrot.slane %v5128_v2, 6  ;;  %v5341_v27 = vld [vmem:[#allocation3 + $0x38] sm:$0xff] }
 0x8bb   : > { %v1914_v23 = vsel %vm237_vm4, %v6578_v1, %v1913_v53  ;;  %v1825_v16 = vrot.slane %v1810_v29, 6  ;;  %v2105_v9 = vmul.f32 %v4850_v4, %v5303_v11  ;;  %v6581_v2 = vrot.slane %v5096_v33, 6 }
 0x8bc   : > { %1672 = vrot.lane.b32.xlu1 %v1665_v60, %s3981_s14  ;;  %v1755_v45 = vsel %vm826_vm11, %v6579_v22, %v1754_v18  ;;  %v6582_v10 = vrot.slane %v5154_v0, 6  ;;  %v2107_v48 = vmul.f32 %v4850_v4, %v5315_v58  ;;  %v1868_v46 = vrot.slane %v1854_v39, 6 }
 0x8bd   : > { %1537 = vrot.lane.b32.xlu0 %v1530_v57, %s3984_s16  ;;  %v1870_v57 = vrot.slane %v1855_v25, 6  ;;  %v1900_v33 = vmul.f32 %v4839_v12, %v5259_v17  ;;  %v2149_v53 = vmul.f32 %v4899_v56, %v5331_v34  ;;  %v1944_v12 = vmul.f32 %v4871_v6, %v5237_v54 }
 0x8be   : > { %v2121_v24 = vrot.slane %v2107_v48, 1  ;;  %v1990_v6 = vmul.f32 %v4843_v50, %v5259_v17  ;;  %v2036_v50 = vmul.f32 %v4873_v43, %v5259_v17  ;;  %v2197_v39 = vmul.f32 %v4856_v31, %v5315_v58 }
 0x8bf   : > { %v1871_v60 = vsel %vm237_vm4, %v6576_v26, %v1870_v57  ;;  %v6583_v26 = vrot.slane %v5124_v38, 6  ;;  %v1915_v13 = vrot.slane %v1900_v33, 6  ;;  %v2151_v38 = vmul.f32 %v4899_v56, %v5341_v27 }
 0x8c0   : > { %1715 = vrot.lane.b32.xlu1 %v1708_v3, %s3977_s22  ;;  %v1960_v3 = vrot.slane %v1945_v35, 6  ;;  %v5345_v35 = vld [vmem:[#allocation3 + $0x50] sm:$0x1]  ;;  %v2163_v18 = vrot.slane %v2149_v53, 1  ;;  %v1958_v29 = vrot.slane %v1944_v12, 6  ;;  %v2050_v43 = vrot.slane %v2036_v50, 6 }
 0x8c1   : > { %1580 = vrot.lane.b32.xlu0 %v1573_v59, %s3987_s10  ;;  %v5297_v59 = vld [vmem:[#allocation3 + $0x18] sm:$0xfe]  ;;  %v1869_v0 = vsel %vm237_vm4, %v6583_v26, %v1868_v46  ;;  %v2106_v62 = vmul.f32 %v4850_v4, %v5341_v27  ;;  %v2239_v48 = vmul.f32 %v4901_v5, %v5331_v34  ;;  %v2241_v55 = vmul.f32 %v4901_v5, %v5341_v27 }
 0x8c2   : > { %v1961_v40 = vsel %vm237_vm4, %v6580_v37, %v1960_v3  ;;  %v2103_v25 = vmul.f32 %v4850_v4, %v5297_v59  ;;  %v2153_v3 = vmul.f32 %v4899_v56, %v5345_v35  ;;  %v2193_v37 = vmul.f32 %v4856_v31, %v5297_v59 }
 0x8c3   : > { %v2119_v46 = vrot.slane %v2106_v62, 1  ;;  %v2254_v53 = vrot.slane %v2241_v55, 1 }
 0x8c4   : > { %1831 = vrot.lane.b32.xlu1 %v1824_v19, %s3984_s16  ;;  %v1826_v19 = vsel %vm237_vm4, %v6581_v2, %v1825_v16  ;;  %v2115_v8 = vrot.slane %v2103_v25, 1  ;;  %v2195_v25 = vmul.f32 %v4856_v31, %v5303_v11  ;;  %v2205_v16 = vrot.slane %v2193_v37, 1 }
 0x8c5   : > { %1627 = vrot.lane.b32.xlu0 %v1620_v42, %s3989_s21  ;;  %v2003_v42 = vrot.slane %v1989_v28, 6  ;;  %v2164_v28 = vrot.slane %v2151_v38, 1  ;;  %v2051_v2 = vsel %vm237_vm4, %v2045_v44, %v2050_v43 }
 0x8c6   : > { %v2206_v17 = vrot.slane %v2195_v25, 1 }
 0x8c7   : > { %v2004_v57 = vsel %vm237_vm4, %v6582_v10, %v2003_v42  ;;  %v2165_v22 = vsel %vm416_vm9, %v2163_v18, %v2164_v28  ;;  %v2104_v42 = vmul.f32 %v4850_v4, %v5331_v34  ;;  %v3844_v18 = vld [vmem:[%s6510_s2] ss:$0 sm:$0xff] }
 0x8c8   : > { %1878 = vrot.lane.b32.xlu1 %v1871_v60, %s3987_s10  ;;  %v2207_v10 = vsel %vm416_vm9, %v2205_v16, %v2206_v17 }
 0x8c9   : > { %1670 = vrot.lane.b32.xlu0 %v1663_v21, %s3981_s14  ;;  %v2116_v21 = vrot.slane %v2105_v9, 1 }
 0x8cb   : > { %v2117_v60 = vsel %vm416_vm9, %v2115_v8, %v2116_v21  ;;  %v2211_v8 = vrot.slane %v2197_v39, 1 }
 0x8cc   : > { %1921 = vrot.lane.b32.xlu1 %v1914_v23, %s3989_s21  ;;  %v2122_v23 = vsel %vm416_vm9, %v2116_v21, %v2121_v24  ;;  %v2243_v24 = vmul.f32 %v4901_v5, %v5345_v35 }
 0x8cd   : > { %1717 = vrot.lane.b32.xlu0 %v1710_v15, %s3977_s22  ;;  %v6584_v15 = vrot.slane %v5150_v49, 6  ;;  %v1959_v49 = vsel %vm237_vm4, %v1953_v41, %v1958_v29 }
 0x8ce   : > { %v2258_v29 = vrot.slane %v2243_v24, 1 }
 0x8cf   : > { %v1916_v1 = vsel %vm237_vm4, %v6584_v15, %v1915_v13  ;;  %v2150_v13 = vmul.f32 %v4899_v56, %v5303_v11 }
 0x8d0   : > { %1968 = vrot.lane.b32.xlu1 %v1961_v40, %s3981_s14  ;;  %v2005_v40 = vrot.slane %v1990_v6, 6  ;;  %v2259_v39 = vsel %vm416_vm9, %v2254_v53, %v2258_v29  ;;  %v6585_v29 = vld [vmem:[#allocation8_spill] sm:$0xff] }
 0x8d1   : > { %1762 = vrot.lane.b32.xlu0 %v1755_v45, %s3983_s15  ;;  %v2168_v45 = vrot.slane %v2153_v3, 1 }
 0x8d2   : > { %v2006_v52 = vsel %vm237_vm4, %v2001_v14, %v2005_v40 }
 0x8d3   : > { %v2169_v41 = vsel %vm416_vm9, %v2164_v28, %v2168_v45  ;;  %v2283_v28 = vmul.f32 %v4862_v47, %v5297_v59  ;;  %v2285_v45 = vmul.f32 %v4862_v47, %v5303_v11 }
 0x8d4   : > { %2011 = vrot.lane.b32.xlu1 %v2004_v57, %s3977_s22  ;;  %v2118_v57 = vrot.slane %v2104_v42, 1 }
 0x8d5   : > { %1833 = vrot.lane.b32.xlu0 %v1826_v19, %s3984_s16  ;;  %v2108_v19 = vmul.f32 %v4850_v4, %v5345_v35  ;;  %v2148_v4 = vmul.f32 %v4899_v56, %v5297_v59  ;;  %v2295_v43 = vrot.slane %v2283_v28, 1  ;;  %v6586_v28 = vld [vmem:[#allocation7_spill] sm:$0xff] }
 0x8d6   : > { %v2120_v26 = vsel %vm416_vm9, %v2118_v57, %v2119_v46 }
 0x8d7   : > { %v2123_v33 = vrot.slane %v2108_v19, 1 }
 0x8d8   : > { %2125 = vrot.lane.b32.xlu1 %v2117_v60, %s3984_s16  ;;  %v2253_v60 = vrot.slane %v2239_v48, 1 }
 0x8d9   : > { %1876 = vrot.lane.b32.xlu0 %v1869_v0, %s3987_s10  ;;  %v2212_v0 = vsel %vm416_vm9, %v2206_v17, %v2211_v8  ;;  %v2124_v15 = vsel %vm416_vm9, %v2119_v46, %v2123_v33 }
 0x8da   : > { %v2255_v6 = vsel %vm416_vm9, %v2253_v60, %v2254_v53  ;;  %v2238_v60 = vmul.f32 %v4901_v5, %v5297_v59 }
 0x8dc   : > { %2129 = vrot.lane.b32.xlu1 %v2122_v23, %s3984_s16  ;;  %v2152_v23 = vmul.f32 %v4899_v56, %v5315_v58 }
 0x8dd   : > { %1923 = vrot.lane.b32.xlu0 %v1916_v1, %s3989_s21  ;;  %v2160_v1 = vrot.slane %v2148_v4, 1 }
 0x8de   : > { %v2166_v25 = vrot.slane %v2152_v23, 1 }
 0x8e0   : > { %2172 = vrot.lane.b32.xlu1 %v2165_v22, %s3987_s10  ;;  %v2161_v22 = vrot.slane %v2150_v13, 1 }
 0x8e1   : > { %1966 = vrot.lane.b32.xlu0 %v1959_v49, %s3981_s14  ;;  %v1280_v49 = vmul.f32 %v3844_v18, %v4903_v20 }
 0x8e2   : > { %v2162_v42 = vsel %vm416_vm9, %v2160_v1, %v2161_v22  ;;  %v2167_v57 = vsel %vm416_vm9, %v2161_v22, %v2166_v25  ;;  %v3963_v1 = vld [vmem:[#allocation3] sm:$0xff]  ;;  %v2250_v22 = vrot.slane %v2238_v60, 1  ;;  %v6589_v25 = vld [vmem:[#allocation13_spill] sm:$0xff] }
 0x8e3   : > { %v1279_v23 = vmul.f32 %v3963_v1, %v3844_v18  ;;  %v6587_v18 = vld [vmem:[#allocation10_spill] sm:$0xff] }
 0x8e4   : > { %2176 = vrot.lane.b32.xlu1 %v2169_v41, %s3987_s10  ;;  %v2287_v41 = vmul.f32 %v4862_v47, %v5315_v58 }
 0x8e5   : > { %2013 = vrot.lane.b32.xlu0 %v2006_v52, %s3977_s22  ;;  %v2194_v52 = vmul.f32 %v4856_v31, %v5331_v34 }
 0x8e6   : > { %v1307_v9 = vpop.permute.xlu1 %1306  ;;  %v2301_v55 = vrot.slane %v2287_v41, 1 }
 0x8e7   : > { %v1309_v14 = vpop.permute.xlu0 %1308  ;;  %v2208_v8 = vrot.slane %v2194_v52, 1  ;;  %v6590_v52 = vld [vmem:[#allocation11_spill] sm:$0xff] }
 0x8e8   : > { %2215 = vrot.lane.b32.xlu1 %v2207_v10, %s3989_s21  ;;  %v1311_v3 = vsel %vm364_vm14, %v1307_v9, %v1309_v14  ;;  %v2296_v9 = vrot.slane %v2285_v45, 1  ;;  %v2196_v14 = vmul.f32 %v4856_v31, %v5341_v27  ;;  %v2242_v45 = vmul.f32 %v4901_v5, %v5315_v58 }
 0x8e9   : > { %2058 = vrot.lane.b32.xlu0 %v2051_v2, %s3983_s15  ;;  %v1315_v37 = vadd.f32 %v1311_v3, %v1280_v49  ;;  %v1310_v49 = vsel %vm364_vm14, %v6586_v28, %v6585_v29  ;;  %v1374_v41 = vsel %vm1373_vm5, %v6590_v52, %v6589_v25  ;;  %v6597_v52 = vld [vmem:[#allocation5_spill] sm:$0xff] }
 0x8ea   : > { %v1340_v21 = vpop.permute.xlu1 %1339  ;;  %v2297_v46 = vsel %vm416_vm9, %v2295_v43, %v2296_v9  ;;  %v2209_v33 = vrot.slane %v2196_v14, 1  ;;  %v2302_v13 = vsel %vm416_vm9, %v2296_v9, %v2301_v55  ;;  %v2256_v43 = vrot.slane %v2242_v45, 1  ;;  %v6591_v9 = vld [vmem:[#allocation16_spill] sm:$0xff]  ;;  %v6592_v14 = vld [vmem:[#allocation14_spill] sm:$0xff] }
 0x8eb   : > { %v1338_v44 = vpop.permute.xlu0 %1337 }
 0x8ec   : > { %2219 = vrot.lane.b32.xlu1 %v2212_v0, %s3989_s21  ;;  %v1343_v56 = vsel %vm1341_vm3, %v1338_v44, %v1340_v21  ;;  %v2198_v21 = vmul.f32 %v4856_v31, %v5345_v35  ;;  %v2210_v53 = vsel %vm416_vm9, %v2208_v8, %v2209_v33 }
 0x8ed   : > { %2127 = vrot.lane.b32.xlu0 %v2120_v26, %s3984_s16  ;;  %v1347_v17 = vadd.f32 %v1343_v56, %v1315_v37  ;;  %v6588_v37 = vld [vmem:[#allocation9_spill] sm:$0xff] }
 0x8ee   : > { %v1370_v12 = vpop.permute.xlu1 %1369  ;;  %v2213_v31 = vrot.slane %v2198_v21, 1  ;;  %v2288_v21 = vmul.f32 %v4862_v47, %v5345_v35 }
 0x8ef   : > { %v1372_v38 = vpop.permute.xlu0 %1371 }
 0x8f0   : > { %2262 = vrot.lane.b32.xlu1 %v2255_v6, %s3981_s14  ;;  %v1375_v16 = vsel %vm1373_vm5, %v1370_v12, %v1372_v38  ;;  %v3871_v38 = vld [vmem:[%s6510_s2 + $0x1b] ss:$0 sm:$0xff]  ;;  %v2214_v56 = vsel %vm416_vm9, %v2209_v33, %v2213_v31  ;;  %v1470_v33 = vsel %vm332_vm13, %v4817_v63, %v4815_v51 }
 0x8f1   : > { %2131 = vrot.lane.b32.xlu0 %v2124_v15, %s3984_s16  ;;  %v1379_v2 = vadd.f32 %v1375_v16, %v1347_v17  ;;  %v2240_v15 = vmul.f32 %v4901_v5, %v5303_v11  ;;  %v2284_v17 = vmul.f32 %v4862_v47, %v5331_v34 }
 0x8f2   : > { %v1404_v40 = vpop.permute.xlu1 %1403 }
 0x8f3   : > { %v1402_v50 = vpop.permute.xlu0 %1401  ;;  %v2298_v55 = vrot.slane %v2284_v17, 1 }
 0x8f4   : > { %2266 = vrot.lane.b32.xlu1 %v2259_v39, %s3981_s14  ;;  %v1406_v62 = vsel %vm228_vm2, %v1402_v50, %v1404_v40  ;;  %v2251_v40 = vrot.slane %v2240_v15, 1  ;;  %v1314_v50 = vadd.f32 %v1310_v49, %v1279_v23  ;;  %v1483_v39 = vmul.f32 %v5008_v61, %v4929_v32 }
 0x8f5   : > { %2170 = vrot.lane.b32.xlu0 %v2162_v42, %s3987_s10  ;;  %v1410_v44 = vadd.f32 %v1406_v62, %v1379_v2  ;;  %v1405_v2 = vsel %vm228_vm2, %v6592_v14, %v6591_v9 }
 0x8f6   : > { %v1433_v19 = vpop.permute.xlu1 %1432  ;;  %v2252_v5 = vsel %vm416_vm9, %v2250_v22, %v2251_v40 }
 0x8f7   : > { %v1435_v10 = vpop.permute.xlu0 %1434 }
 0x8f8   : > { %v1438_v48 = vsel %vm1436_vm6, %v1433_v19, %v1435_v10  ;;  %2305 = vrot.lane.b32.xlu1 %v2297_v46, %s3977_s22  ;;  %v2286_v19 = vmul.f32 %v4862_v47, %v5341_v27  ;;  %v2257_v46 = vsel %vm416_vm9, %v2251_v40, %v2256_v43 }
 0x8f9   : > { %2174 = vrot.lane.b32.xlu0 %v2167_v57, %s3987_s10  ;;  %v1442_v4 = vadd.f32 %v1438_v48, %v1410_v44  ;;  %v6593_v57 = vld [vmem:[#allocation17_spill] sm:$0xff]  ;;  %v1489_v48 = vrot.slane %v1483_v39, 3 }
 0x8fa   : > { %v1532_v26 = vpop.permute.xlu1 %1531  ;;  %v1437_v32 = vsel %vm1436_vm6, %v6593_v57, %v4813_v30 }
 0x8fb   : > { %v1467_v0 = vpop.permute.xlu0 %1466 }
 0x8fc   : > { %v1471_v24 = vsel %vm332_vm13, %v1467_v0, %v4819_v36  ;;  %2309 = vrot.lane.b32.xlu1 %v2302_v13, %s3977_s22 }
 0x8fd   : > { %v1475_v12 = vadd.f32 %v1471_v24, %v1442_v4  ;;  %2217 = vrot.lane.b32.xlu0 %v2210_v53, %s3989_s21  ;;  %v2299_v4 = vrot.slane %v2286_v19, 1  ;;  %v6594_v24 = vld [vmem:[#allocation15_spill] sm:$0xff] }
 0x8fe   : > { %v1579_v3 = vpop.permute.xlu1 %1578  ;;  %v6595_v53 = vrot.slane %v6594_v24, 3 }
 0x8ff   : > { %v5456_v36 = vadd.f32 %v5084_v7, %v1475_v12  ;;  %v1534_v6 = vpop.permute.xlu0 %1533  ;;  %v1342_v7 = vsel %vm1341_vm3, %v6588_v37, %v6587_v18  ;;  %v2300_v31 = vsel %vm416_vm9, %v2298_v55, %v2299_v4  ;;  %v2303_v12 = vrot.slane %v2288_v21, 1 }
 0x900   : > { %2328 = vrot.lane.b32.xlu1 %v3871_v38, %s3978_s27  ;;  %v1346_v62 = vadd.f32 %v1342_v7, %v1314_v50  ;;  %v1491_v13 = vsel %vm826_vm11, %v1489_v48, %v6595_v53  ;;  %v1539_v47 = vsel %vm364_vm14, %v1532_v26, %v1534_v6  ;;  %v3858_v26 = vld [vmem:[%s6510_s2 + $0xe] ss:$0 sm:$0xff]  ;;  %v3865_v48 = vld [vmem:[%s6510_s2 + $0x15] ss:$0 sm:$0xff]  ;;  %vm3360_vm11 = vcmask 1031168  }
 0x901   : > { %2221 = vrot.lane.b32.xlu0 %v2214_v56, %s3989_s21  ;;  %v2304_v63 = vsel %vm416_vm9, %v2299_v4, %v2303_v12  ;;  %v5510_v7 = vmul.f32 %v3858_v26, %v4903_v20  ;;  %v2076_v55 = vmul.f32 %v3865_v48, %v5297_v59 }
 0x902   : > { %v1622_v16 = vpop.permute.xlu1 %1621  ;;  %v1378_v10 = vadd.f32 %v1374_v41, %v1346_v62 }
 0x903   : > { %v1577_v42 = vpop.permute.xlu0 %1576  ;;  %v1786_v39 = vrot.slane %v5510_v7, 6 }
 0x904   : > { %v1409_v44 = vadd.f32 %v1405_v2, %v1378_v10  ;;  %v1584_v51 = vsel %vm1341_vm3, %v1577_v42, %v1579_v3  ;;  %v6596_v3 = vld [vmem:[#allocation12_spill] sm:$0xff] }
 0x905   : > { %2260 = vrot.lane.b32.xlu0 %v2252_v5, %s3981_s14  ;;  %v1779_v37 = vmul.f32 %v3858_v26, %v6596_v3 }
 0x906   : > { %v1669_v61 = vpop.permute.xlu1 %1668  ;;  %v1441_v0 = vadd.f32 %v1437_v32, %v1409_v44 }
 0x907   : > { %v1624_v8 = vpop.permute.xlu0 %1623  ;;  %v1785_v42 = vrot.slane %v1779_v37, 6 }
 0x908   : > { %v1474_v38 = vadd.f32 %v1470_v33, %v1441_v0  ;;  %v1629_v28 = vsel %vm1373_vm5, %v1622_v16, %v1624_v8  ;;  %v5526_v0 = vmul.f32 %v3865_v48, %v5303_v11 }
 0x909   : > { %2264 = vrot.lane.b32.xlu0 %v2257_v46, %s3981_s14  ;;  %v1787_v62 = vsel %vm237_vm4, %v1785_v42, %v1786_v39 }
 0x90a   : > { %v1712_v60 = vpop.permute.xlu1 %1711  ;;  %v1496_v15 = vadd.f32 %v1491_v13, %v1474_v38  ;;  %v2083_v38 = vrot.slane %v5526_v0, 1 }
 0x90b   : > { %v1667_v30 = vpop.permute.xlu0 %1666 }
 0x90c   : > { %v1543_v29 = vadd.f32 %v1539_v47, %v1496_v15  ;;  %v1674_v45 = vsel %vm228_vm2, %v1667_v30, %v1669_v61  ;;  %v2082_v30 = vrot.slane %v2076_v55, 1 }
 0x90d   : > { %2307 = vrot.lane.b32.xlu0 %v2300_v31, %s3977_s22  ;;  %v6598_v31 = vld [vmem:[#allocation18_spill] sm:$0xff] }
 0x90e   : > { %v1828_v1 = vpop.permute.xlu1 %1827  ;;  %v1588_v49 = vadd.f32 %v1584_v51, %v1543_v29  ;;  %v2084_v59 = vsel %vm416_vm9, %v2082_v30, %v2083_v38 }
 0x90f   : > { %v1714_v23 = vpop.permute.xlu0 %1713 }
 0x910   : > { %v1633_v18 = vadd.f32 %v1629_v28, %v1588_v49  ;;  %v1719_v6 = vsel %vm1436_vm6, %v1712_v60, %v1714_v23 }
 0x911   : > { %2311 = vrot.lane.b32.xlu0 %v2304_v63, %s3977_s22 }
 0x912   : > { %v1875_v56 = vpop.permute.xlu1 %1874  ;;  %v1678_v40 = vadd.f32 %v1674_v45, %v1633_v18 }
 0x913   : > { %v1759_v22 = vpop.permute.xlu0 %1758 }
 0x914   : > { %v1766_v41 = vsel %vm332_vm13, %v1759_v22, %v6597_v52  ;;  %v1723_v16 = vadd.f32 %v1719_v6, %v1678_v40  ;;  %v1781_v52 = vmul.f32 %v3858_v26, %v5237_v54 }
 0x916   : > { %v1918_v50 = vpop.permute.xlu1 %1917  ;;  %v1770_v5 = vadd.f32 %v1766_v41, %v1723_v16 }
 0x917   : > { %v1830_v25 = vpop.permute.xlu0 %1829 }
 0x918   : > { %v1792_v9 = vadd.f32 %v1787_v62, %v1770_v5  ;;  %v1835_v20 = vsel %vm364_vm14, %v1828_v1, %v1830_v25 }
 0x91a   : > { %v1965_v43 = vpop.permute.xlu1 %1964  ;;  %v1839_v10 = vadd.f32 %v1835_v20, %v1792_v9 }
 0x91b   : > { %v1873_v17 = vpop.permute.xlu0 %1872 }
 0x91c   : > { %v1880_v19 = vsel %vm1341_vm3, %v1873_v17, %v1875_v56 }
 0x91d   : > { %v1884_v8 = vadd.f32 %v1880_v19, %v1839_v10 }
 0x91e   : > { %v2008_v14 = vpop.permute.xlu1 %2007 }
 0x91f   : > { %v1920_v2 = vpop.permute.xlu0 %1919 }
 0x920   : > { %v1925_v61 = vsel %vm1373_vm5, %v1918_v50, %v1920_v2 }
 0x921   : > { %v1929_v21 = vadd.f32 %v1925_v61, %v1884_v8 }
 0x922   : > { %v1536_v57 = vpop.permute.xlu1 %1535 }
 0x923   : > { %v1963_v32 = vpop.permute.xlu0 %1962 }
 0x924   : > { %v1970_v46 = vsel %vm228_vm2, %v1963_v32, %v1965_v43  ;;  %v1788_v43 = vrot.slane %v1781_v52, 6 }
 0x925   : > { %v1974_v60 = vadd.f32 %v1970_v46, %v1929_v21 }
 0x926   : > { %v1583_v44 = vpop.permute.xlu1 %1582  ;;  %v1789_v9 = vsel %vm237_vm4, %v1786_v39, %v1788_v43  ;;  %vm3266_vm4 = vcmask 113664  }
 0x927   : > { %v2010_v33 = vpop.permute.xlu0 %2009 }
 0x928   : > { %v2015_v4 = vsel %vm1436_vm6, %v2008_v14, %v2010_v33 }
 0x929   : > { %v2019_v24 = vadd.f32 %v2015_v4, %v1974_v60 }
 0x92a   : > { %v1626_v53 = vpop.permute.xlu1 %1625 }
 0x92b   : > { %v2055_v13 = vpop.permute.xlu0 %2054 }
 0x92c   : > { %v2062_v12 = vsel %vm332_vm13, %v2055_v13, %v6598_v31 }
 0x92d   : > { %v2066_v47 = vadd.f32 %v2062_v12, %v2019_v24  ;;  %v6600_v12 = vld [vmem:[#allocation19_spill] sm:$0xff] }
 0x92e   : > { %v1673_v15 = vpop.permute.xlu1 %1672 }
 0x92f   : > { %v1538_v1 = vpop.permute.xlu0 %1537  ;;  %v5532_v23 = vadd.f32 %v2084_v59, %v2066_v47 }
 0x930   : > { %v1540_v49 = vsel %vm364_vm14, %v1536_v57, %v1538_v1 }
 0x931   : > { %v1544_v22 = vadd.f32 %v1540_v49, %v5456_v36  ;;  %v6599_v36 = vld [vmem:[#allocation6_spill] sm:$0xff] }
 0x932   : > { %v1716_v51 = vpop.permute.xlu1 %1715  ;;  %v5575_v49 = vld [vmem:[#allocation3 + $0x40] sm:$0xff] }
 0x933   : > { %v1581_v63 = vpop.permute.xlu0 %1580 }
 0x934   : > { %v1585_v56 = vsel %vm1341_vm3, %v1581_v63, %v1583_v44  ;;  %v2078_v44 = vmul.f32 %v3865_v48, %v5315_v58 }
 0x935   : > { %v1589_v3 = vadd.f32 %v1585_v56, %v1544_v22  ;;  %v2321_v56 = vld [vmem:[#allocation3 + $0x58] sm:$0x1] }
 0x936   : > { %v1832_v29 = vpop.permute.xlu1 %1831  ;;  %v2085_v24 = vrot.slane %v2078_v44, 1 }
 0x937   : > { %v1628_v28 = vpop.permute.xlu0 %1627 }
 0x938   : > { %v1630_v6 = vsel %vm1373_vm5, %v1626_v53, %v1628_v28  ;;  %v2319_v28 = vld [vmem:[#allocation3 + $0x28] sm:$0xfe] }
 0x939   : > { %v1634_v7 = vadd.f32 %v1630_v6, %v1589_v3 }
 0x93a   : > { %v1879_v45 = vpop.permute.xlu1 %1878 }
 0x93b   : > { %v1671_v18 = vpop.permute.xlu0 %1670 }
 0x93c   : > { %v1675_v37 = vsel %vm228_vm2, %v1671_v18, %v1673_v15  ;;  %v2086_v15 = vsel %vm416_vm9, %v2083_v38, %v2085_v24 }
 0x93d   : > { %v1679_v41 = vadd.f32 %v1675_v37, %v1634_v7 }
 0x93e   : > { %v1922_v40 = vpop.permute.xlu1 %1921 }
 0x93f   : > { %v1718_v50 = vpop.permute.xlu0 %1717 }
 0x940   : > { %v1720_v25 = vsel %vm1436_vm6, %v1716_v51, %v1718_v50 }
 0x941   : > { %v1724_v16 = vadd.f32 %v1720_v25, %v1679_v41 }
 0x942   : > { %v1969_v42 = vpop.permute.xlu1 %1968 }
 0x943   : > { %v1763_v5 = vpop.permute.xlu0 %1762 }
 0x944   : > { %v1767_v17 = vsel %vm332_vm13, %v1763_v5, %v6599_v36  ;;  %v3873_v5 = vld [vmem:[%s6510_s2 + $0x1d] ss:$0 sm:$0xff] }
 0x945   : > { %v1771_v62 = vadd.f32 %v1767_v17, %v1724_v16 }
 0x946   : > { %v2012_v2 = vpop.permute.xlu1 %2011 }
 0x947   : > { %v1793_v14 = vadd.f32 %v1789_v9, %v1771_v62  ;;  %v1834_v20 = vpop.permute.xlu0 %1833 }
 0x948   : > { %v1836_v26 = vsel %vm364_vm14, %v1832_v29, %v1834_v20 }
 0x949   : > { %v1840_v61 = vadd.f32 %v1836_v26, %v1793_v14 }
 0x94a   : > { %v5544_v19 = vpop.permute.xlu1 %2125 }
 0x94b   : > { %v1877_v10 = vpop.permute.xlu0 %1876 }
 0x94c   : > { %v1881_v32 = vsel %vm1341_vm3, %v1877_v10, %v1879_v45 }
 0x94d   : > { %v1885_v39 = vadd.f32 %v1881_v32, %v1840_v61 }
 0x94e   : > { %v5546_v57 = vpop.permute.xlu1 %2129 }
 0x94f   : > { %v1924_v54 = vpop.permute.xlu0 %1923 }
 0x950   : > { %v1926_v55 = vsel %vm1373_vm5, %v1922_v40, %v1924_v54 }
 0x951   : > { %v1930_v33 = vadd.f32 %v1926_v55, %v1885_v39  ;;  %v5619_v55 = vld [vmem:[#allocation3 + $0x18] sm:$0xf0] }
 0x952   : > { %v5550_v8 = vpop.permute.xlu1 %2172 }
 0x953   : > { %v1967_v46 = vpop.permute.xlu0 %1966 }
 0x954   : > { %v1971_v21 = vsel %vm228_vm2, %v1967_v46, %v1969_v42  ;;  %v5617_v46 = vld [vmem:[#allocation3 + $0x20] sm:$0xf0] }
 0x955   : > { %v1975_v30 = vadd.f32 %v1971_v21, %v1930_v33 }
 0x956   : > { %v5555_v4 = vpop.permute.xlu1 %2176 }
 0x957   : > { %v2014_v0 = vpop.permute.xlu0 %2013 }
 0x958   : > { %v2016_v60 = vsel %vm1436_vm6, %v2012_v2, %v2014_v0 }
 0x959   : > { %v2020_v53 = vadd.f32 %v2016_v60, %v1975_v30 }
 0x95a   : > { %v5558_v13 = vpop.permute.xlu1 %2215 }
 0x95b   : > { %v2059_v31 = vpop.permute.xlu0 %2058 }
 0x95c   : > { %v2063_v47 = vsel %vm332_vm13, %v2059_v31, %v6600_v12  ;;  %v3875_v12 = vld [vmem:[%s6510_s2 + $0x1f] ss:$0 sm:$0xff] }
 0x95d   : > { %v2067_v59 = vadd.f32 %v2063_v47, %v2020_v53  ;;  %v3874_v47 = vld [vmem:[%s6510_s2 + $0x1e] ss:$0 sm:$0xff] }
 0x95e   : > { %v5563_v1 = vpop.permute.xlu1 %2219 }
 0x95f   : > { %v5565_v58 = vadd.f32 %v2086_v15, %v2067_v59  ;;  %v5593_v43 = vpop.permute.xlu0 %2127  ;;  %v5635_v59 = vld [vmem:[#allocation3 + $0x48] sm:$0xf] }
 0x962   : > { %v5567_v48 = vpop.permute.xlu1 %2262 }
 0x963   : > { %v5595_v36 = vpop.permute.xlu0 %2131 }
 0x966   : > { %v5569_v51 = vpop.permute.xlu1 %2266 }
 0x967   : > { %v5597_v17 = vpop.permute.xlu0 %2170 }
 0x96a   : > { %v5571_v63 = vpop.permute.xlu1 %2305 }
 0x96b   : > { %v5599_v62 = vpop.permute.xlu0 %2174 }
 0x96e   : > { %v5573_v29 = vpop.permute.xlu1 %2309 }
 0x96f   : > { %v5601_v9 = vpop.permute.xlu0 %2217 }
 0x972   : > { %v2329_v22 = vpop.permute.xlu1 %2328 }
 0x973   : > { %v2332_v45 = vmul.f32 %v2329_v22, %v2319_v28  ;;  %v2334_v38 = vmul.f32 %v2329_v22, %v5575_v49  ;;  %v2331_v18 = vmul.f32 %v2329_v22, %v5331_v34  ;;  %v2333_v6 = vmul.f32 %v2329_v22, %v5341_v27  ;;  %v5603_v14 = vpop.permute.xlu0 %2221  ;;  %v3877_v28 = vld [vmem:[%s6510_s2 + $0x21] ss:$0 sm:$0xff] }
 0x974   : > { %v2336_v3 = vmul.f32 %v2329_v22, %v2321_v56  ;;  %v2335_v37 = vmul.f32 %v2329_v22, %v5345_v35  ;;  %v3876_v56 = vld [vmem:[%s6510_s2 + $0x20] ss:$0 sm:$0xff] }
 0x975   : > { %v2346_v7 = vrot.slane %v2332_v45, 1  ;;  %v2347_v40 = vrot.slane %v2334_v38, 1  ;;  %v2343_v50 = vrot.slane %v2331_v18, 1  ;;  %v2344_v25 = vrot.slane %v2333_v6, 1  ;;  %v3878_v45 = vld [vmem:[%s6510_s2 + $0x22] ss:$0 sm:$0xff] }
 0x976   : > { %v2351_v41 = vrot.slane %v2336_v3, 1  ;;  %v2349_v42 = vrot.slane %v2335_v37, 1  ;;  %v3881_v18 = vld [vmem:[%s6510_s2 + $0x25] ss:$0 sm:$0xff]  ;;  %v3880_v6 = vld [vmem:[%s6510_s2 + $0x24] ss:$0 sm:$0xff] }
 0x977   : > { %v2348_v52 = vsel %vm416_vm9, %v2346_v7, %v2347_v40  ;;  %v2345_v16 = vsel %vm416_vm9, %v2343_v50, %v2344_v25  ;;  %v5605_v2 = vpop.permute.xlu0 %2260  ;;  %v3883_v3 = vld [vmem:[%s6510_s2 + $0x27] ss:$0 sm:$0xff]  ;;  %v3882_v37 = vld [vmem:[%s6510_s2 + $0x26] ss:$0 sm:$0xff]  ;;  %v5668_v7 = vld [vmem:[#allocation3 + $0x50] sm:$0xf] }
 0x978   : > { %2355 = vrot.lane.b32.xlu1 %v2348_v52, %s3983_s15  ;;  %2353 = vrot.lane.b32.xlu0 %v2345_v16, %s3983_s15  ;;  %v2352_v34 = vsel %vm416_vm9, %v2347_v40, %v2351_v41  ;;  %v2350_v35 = vsel %vm416_vm9, %v2344_v25, %v2349_v42  ;;  %v3885_v50 = vld [vmem:[%s6510_s2 + $0x29] ss:$0 sm:$0xff]  ;;  %v3884_v25 = vld [vmem:[%s6510_s2 + $0x28] ss:$0 sm:$0xff]  ;;  %vm3280_vm9 = vcmask 56320  }
 0x979   : > { %v3887_v41 = vld [vmem:[%s6510_s2 + $0x2b] ss:$0 sm:$0xff]  ;;  %v3889_v42 = vld [vmem:[%s6510_s2 + $0x2d] ss:$0 sm:$0xff] }
 0x97b   : > { %v5607_v20 = vpop.permute.xlu0 %2264 }
 0x97c   : > { %2359 = vrot.lane.b32.xlu1 %v2352_v34, %s3983_s15  ;;  %2357 = vrot.lane.b32.xlu0 %v2350_v35, %s3983_s15  ;;  %v3888_v34 = vld [vmem:[%s6510_s2 + $0x2c] ss:$0 sm:$0xff]  ;;  %v3891_v35 = vld [vmem:[%s6510_s2 + $0x2f] ss:$0 sm:$0xff] }
 0x97f   : > { %v5609_v10 = vpop.permute.xlu0 %2307 }
 0x980   : > { %2397 = vrot.lane.b32.xlu0 %v3873_v5, %s3980_s28  ;;  %v3890_v5 = vld [vmem:[%s6510_s2 + $0x2e] ss:$0 sm:$0xff] }
 0x983   : > { %v5611_v54 = vpop.permute.xlu0 %2311 }
 0x9ea   : > { %v5613_v26 = vpop.permute.xlu0 %2353 }
 0x9ee   : > { %v5615_v32 = vpop.permute.xlu0 %2357 }
 0x9f2   : > { %v2398_v61 = vpop.permute.xlu0 %2397 }
 0x9f3   : > { %v2401_v39 = vmul.f32 %v2398_v61, %v5617_v46  ;;  %v2403_v21 = vmul.f32 %v2398_v61, %v5341_v27  ;;  %v2400_v44 = vmul.f32 %v2398_v61, %v5619_v55  ;;  %v2402_v33 = vmul.f32 %v2398_v61, %v5303_v11 }
 0x9f4   : > { %v2404_v15 = vmul.f32 %v2398_v61, %v5635_v59  ;;  %v2405_v40 = vmul.f32 %v2398_v61, %v5668_v7  ;;  %v3892_v61 = vld [vmem:[%s6510_s2 + $0x30] ss:$0 sm:$0xff] }
 0x9f5   : > { %v2415_v0 = vrot.slane %v2401_v39, 4  ;;  %v2416_v60 = vrot.slane %v2403_v21, 4  ;;  %v2412_v30 = vrot.slane %v2400_v44, 4  ;;  %v2413_v24 = vrot.slane %v2402_v33, 4  ;;  %v5707_v39 = vpop.permute.xlu1 %2355 }
 0x9f6   : > { %v2418_v22 = vrot.slane %v2404_v15, 4  ;;  %v2420_v52 = vrot.slane %v2405_v40, 4 }
 0x9f7   : > { %v2417_v53 = vsel %vm1031_vm0, %v2415_v0, %v2416_v60  ;;  %v2414_v31 = vsel %vm1031_vm0, %v2412_v30, %v2413_v24 }
 0x9f8   : > { %2424 = vrot.lane.b32.xlu0 %v2417_v53, %s3984_s16  ;;  %2422 = vrot.lane.b32.xlu1 %v2414_v31, %s3984_s16  ;;  %v2419_v38 = vsel %vm1031_vm0, %v2413_v24, %v2418_v22  ;;  %v2421_v16 = vsel %vm1031_vm0, %v2416_v60, %v2420_v52 }
 0x9f9   : > { %v5709_v21 = vpop.permute.xlu1 %2359 }
 0x9fc   : > { %2487 = vrot.lane.b32.xlu0 %v3875_v12, %s3988_s20  ;;  %2442 = vrot.lane.b32.xlu1 %v3874_v47, %s3986_s9 }
 0xa00   : > { %2577 = vrot.lane.b32.xlu0 %v3877_v28, %s3982_s13  ;;  %2532 = vrot.lane.b32.xlu1 %v3876_v56, %s3985_s17 }
 0xa04   : > { %2426 = vrot.lane.b32.xlu0 %v2419_v38, %s3984_s16  ;;  %2624 = vrot.lane.b32.xlu1 %v3878_v45, %s3978_s27 }
 0xa08   : > { %2738 = vrot.lane.b32.xlu0 %v3881_v18, %s3986_s9  ;;  %2693 = vrot.lane.b32.xlu1 %v3880_v6, %s3980_s28 }
 0xa0c   : > { %2828 = vrot.lane.b32.xlu0 %v3883_v3, %s3985_s17  ;;  %2783 = vrot.lane.b32.xlu1 %v3882_v37, %s3988_s20 }
 0xa10   : > { %2920 = vrot.lane.b32.xlu0 %v3885_v50, %s3978_s27  ;;  %2873 = vrot.lane.b32.xlu1 %v3884_v25, %s3982_s13 }
 0xa14   : > { %2991 = vrot.lane.b32.xlu0 %v3887_v41, %s3980_s28  ;;  %2428 = vrot.lane.b32.xlu1 %v2421_v16, %s3984_s16  ;;  %s4008_s28 = smov 122  }
 0xa18   : > { %3081 = vrot.lane.b32.xlu0 %v3889_v42, %s3988_s20  ;;  %3036 = vrot.lane.b32.xlu1 %v3888_v34, %s3986_s9  ;;  %s3995_s9 = smov 6  }
 0xa1c   : > { %3171 = vrot.lane.b32.xlu0 %v3891_v35, %s3982_s13  ;;  %3126 = vrot.lane.b32.xlu1 %v3890_v5, %s3985_s17  ;;  %s3994_s17 = smov 3  }
 0xa20   : > { %3219 = vrot.lane.b32.xlu1 %v3892_v61, %s3978_s27  ;;  %s4011_s27 = smov 118  }
 0xa6a   : > { %v5711_v44 = vpop.permute.xlu0 %2424  ;;  %v5713_v33 = vpop.permute.xlu1 %2422 }
 0xa6e   : > { %v2443_v0 = vpop.permute.xlu1 %2442  ;;  %v2488_v60 = vpop.permute.xlu0 %2487 }
 0xa6f   : > { %v2446_v30 = vmul.f32 %v2443_v0, %v5617_v46  ;;  %v2448_v24 = vmul.f32 %v2443_v0, %v5341_v27  ;;  %v2445_v53 = vmul.f32 %v2443_v0, %v5619_v55  ;;  %v2447_v31 = vmul.f32 %v2443_v0, %v5303_v11 }
 0xa70   : > { %v2450_v12 = vmul.f32 %v2443_v0, %v5668_v7  ;;  %v2449_v47 = vmul.f32 %v2443_v0, %v5635_v59  ;;  %v2491_v18 = vmul.f32 %v2488_v60, %v5617_v46  ;;  %v2493_v6 = vmul.f32 %v2488_v60, %v5341_v27 }
 0xa71   : > { %v2460_v15 = vrot.slane %v2446_v30, 4  ;;  %v2461_v28 = vrot.slane %v2448_v24, 4  ;;  %v2457_v56 = vrot.slane %v2445_v53, 4  ;;  %v2458_v22 = vrot.slane %v2447_v31, 4 }
 0xa72   : > { %v2465_v45 = vrot.slane %v2450_v12, 4  ;;  %v2463_v38 = vrot.slane %v2449_v47, 4  ;;  %v2490_v40 = vmul.f32 %v2488_v60, %v5619_v55  ;;  %v2492_v50 = vmul.f32 %v2488_v60, %v5303_v11  ;;  %v2533_v42 = vpop.permute.xlu1 %2532 }
 0xa73   : > { %v2462_v3 = vsel %vm1031_vm0, %v2460_v15, %v2461_v28  ;;  %v2459_v37 = vsel %vm1031_vm0, %v2457_v56, %v2458_v22  ;;  %v2505_v41 = vrot.slane %v2491_v18, 4  ;;  %v2506_v16 = vrot.slane %v2493_v6, 4 }
 0xa74   : > { %2469 = vrot.lane.b32.xlu1 %v2462_v3, %s3987_s10  ;;  %2467 = vrot.lane.b32.xlu0 %v2459_v37, %s3987_s10  ;;  %v2466_v25 = vsel %vm1031_vm0, %v2461_v28, %v2465_v45  ;;  %v2464_v52 = vsel %vm1031_vm0, %v2458_v22, %v2463_v38  ;;  %v2502_v34 = vrot.slane %v2490_v40, 4  ;;  %v2503_v35 = vrot.slane %v2492_v50, 4  ;;  %v2578_v45 = vpop.permute.xlu0 %2577 }
 0xa75   : > { %v2495_v5 = vmul.f32 %v2488_v60, %v5668_v7  ;;  %v2494_v61 = vmul.f32 %v2488_v60, %v5635_v59  ;;  %v2507_v0 = vsel %vm1031_vm0, %v2505_v41, %v2506_v16  ;;  %v2536_v30 = vmul.f32 %v2533_v42, %v5617_v46 }
 0xa76   : > { %v2538_v24 = vmul.f32 %v2533_v42, %v5341_v27  ;;  %v2535_v53 = vmul.f32 %v2533_v42, %v5619_v55  ;;  %v2504_v31 = vsel %vm1031_vm0, %v2502_v34, %v2503_v35  ;;  %v2537_v15 = vmul.f32 %v2533_v42, %v5303_v11 }
 0xa77   : > { %v2510_v12 = vrot.slane %v2495_v5, 4  ;;  %v2508_v47 = vrot.slane %v2494_v61, 4  ;;  %v2550_v60 = vrot.slane %v2536_v30, 4  ;;  %v2540_v22 = vmul.f32 %v2533_v42, %v5668_v7 }
 0xa78   : > { %2473 = vrot.lane.b32.xlu1 %v2466_v25, %s3987_s10  ;;  %2471 = vrot.lane.b32.xlu0 %v2464_v52, %s3987_s10  ;;  %v2551_v28 = vrot.slane %v2538_v24, 4  ;;  %v2547_v56 = vrot.slane %v2535_v53, 4  ;;  %v2548_v6 = vrot.slane %v2537_v15, 4  ;;  %v2539_v3 = vmul.f32 %v2533_v42, %v5635_v59 }
 0xa79   : > { %v2511_v38 = vsel %vm1031_vm0, %v2506_v16, %v2510_v12  ;;  %v2509_v18 = vsel %vm1031_vm0, %v2503_v35, %v2508_v47  ;;  %v2555_v40 = vrot.slane %v2540_v22, 4  ;;  %v2581_v50 = vmul.f32 %v2578_v45, %v5617_v46  ;;  %v2625_v12 = vpop.permute.xlu1 %2624 }
 0xa7a   : > { %v2552_v37 = vsel %vm1031_vm0, %v2550_v60, %v2551_v28  ;;  %v2583_v25 = vmul.f32 %v2578_v45, %v5341_v27  ;;  %v2549_v52 = vsel %vm1031_vm0, %v2547_v56, %v2548_v6  ;;  %v2553_v41 = vrot.slane %v2539_v3, 4 }
 0xa7b   : > { %v2580_v16 = vmul.f32 %v2578_v45, %v5619_v55  ;;  %v2582_v34 = vmul.f32 %v2578_v45, %v5303_v11  ;;  %v2556_v42 = vsel %vm1031_vm0, %v2551_v28, %v2555_v40  ;;  %v2595_v35 = vrot.slane %v2581_v50, 4 }
 0xa7c   : > { %2514 = vrot.lane.b32.xlu1 %v2507_v0, %s3989_s21  ;;  %2512 = vrot.lane.b32.xlu0 %v2504_v31, %s3989_s21  ;;  %v2596_v5 = vrot.slane %v2583_v25, 4  ;;  %v2585_v61 = vmul.f32 %v2578_v45, %v5668_v7  ;;  %v2616_v0 = vld [vmem:[#allocation3 + $0x28] sm:$0xf0]  ;;  %v2554_v30 = vsel %vm1031_vm0, %v2548_v6, %v2553_v41  ;;  %v2584_v31 = vmul.f32 %v2578_v45, %v5635_v59 }
 0xa7d   : > { %v2592_v24 = vrot.slane %v2580_v16, 4  ;;  %v2593_v53 = vrot.slane %v2582_v34, 4  ;;  %v2628_v11 = vmul.f32 %v2625_v12, %v2616_v0  ;;  %v2630_v47 = vmul.f32 %v2625_v12, %v5575_v49  ;;  %v2694_v40 = vpop.permute.xlu1 %2693  ;;  %v5778_v34 = vld [vmem:[#allocation3 + $0x20] sm:$0x80] }
 0xa7e   : > { %v2597_v15 = vsel %vm1031_vm0, %v2595_v35, %v2596_v5  ;;  %v2600_v60 = vrot.slane %v2585_v61, 4  ;;  %v2598_v56 = vrot.slane %v2584_v31, 4  ;;  %v2627_v22 = vmul.f32 %v2625_v12, %v5617_v46  ;;  %v5775_v46 = vpop.permute.xlu0 %2426  ;;  %v5782_v61 = vld [vmem:[#allocation3 + $0x18] sm:$0x80]  ;;  %v5791_v31 = vld [vmem:[#allocation3 + $0x50] sm:$0x7f] }
 0xa7f   : > { %v2594_v28 = vsel %vm1031_vm0, %v2592_v24, %v2593_v53  ;;  %v2642_v45 = vrot.slane %v2628_v11, 4  ;;  %v2643_v6 = vrot.slane %v2630_v47, 4  ;;  %v2631_v41 = vmul.f32 %v2625_v12, %v5668_v7  ;;  %v5786_v24 = vld [vmem:[#allocation3 + $0x30] sm:$0xff] }
 0xa80   : > { %2518 = vrot.lane.b32.xlu1 %v2511_v38, %s3989_s21  ;;  %2516 = vrot.lane.b32.xlu0 %v2509_v18, %s3989_s21  ;;  %v2629_v38 = vmul.f32 %v2625_v12, %v5341_v27  ;;  %v2617_v18 = vld [vmem:[#allocation3 + $0x58] sm:$0xf]  ;;  %v2601_v3 = vsel %vm1031_vm0, %v2596_v5, %v2600_v60  ;;  %v2599_v50 = vsel %vm1031_vm0, %v2593_v53, %v2598_v56  ;;  %v2639_v25 = vrot.slane %v2627_v22, 4  ;;  %v5795_v60 = vld [vmem:[#allocation3 + $0x48] sm:$0x7f] }
 0xa81   : > { %v2644_v16 = vsel %vm1031_vm0, %v2642_v45, %v2643_v6  ;;  %v2697_v35 = vmul.f32 %v2694_v40, %v5778_v34  ;;  %v2699_v5 = vmul.f32 %v2694_v40, %v5341_v27  ;;  %v2645_v7 = vrot.slane %v2631_v41, 4 }
 0xa82   : > { %v2698_v53 = vmul.f32 %v5786_v24, %v2694_v40 }
 0xa83   : > { %v2711_v11 = vrot.slane %v2697_v35, 7  ;;  %v2712_v47 = vrot.slane %v2699_v5, 7  ;;  %v2784_v5 = vpop.permute.xlu1 %2783 }
 0xa84   : > { %2559 = vrot.lane.b32.xlu1 %v2552_v37, %s3981_s14  ;;  %2557 = vrot.lane.b32.xlu0 %v2549_v52, %s3981_s14  ;;  %v2632_v37 = vmul.f32 %v2625_v12, %v2617_v18  ;;  %v2640_v52 = vrot.slane %v2629_v38, 4  ;;  %v2709_v38 = vrot.slane %v2698_v53, 7  ;;  %v2700_v18 = vmul.f32 %v2694_v40, %v5795_v60 }
 0xa85   : > { %v2713_v45 = vsel %vm1247_vm1, %v2711_v11, %v2712_v47  ;;  %v2787_v11 = vmul.f32 %v2784_v5, %v5778_v34 }
 0xa86   : > { %v2641_v0 = vsel %vm1031_vm0, %v2639_v25, %v2640_v52  ;;  %v2646_v56 = vsel %vm1031_vm0, %v2640_v52, %v2645_v7  ;;  %v2714_v25 = vrot.slane %v2700_v18, 7 }
 0xa88   : > { %2563 = vrot.lane.b32.xlu1 %v2556_v42, %s3981_s14  ;;  %2561 = vrot.lane.b32.xlu0 %v2554_v30, %s3981_s14  ;;  %v2647_v42 = vrot.slane %v2632_v37, 4  ;;  %v2696_v30 = vmul.f32 %v2694_v40, %v5782_v61 }
 0xa8a   : > { %v2648_v12 = vsel %vm1031_vm0, %v2643_v6, %v2647_v42  ;;  %v2708_v22 = vrot.slane %v2696_v30, 7 }
 0xa8c   : > { %2604 = vrot.lane.b32.xlu1 %v2597_v15, %s3977_s22  ;;  %2602 = vrot.lane.b32.xlu0 %v2594_v28, %s3977_s22  ;;  %v2701_v15 = vmul.f32 %v2694_v40, %v5791_v31  ;;  %v2739_v28 = vpop.permute.xlu0 %2738 }
 0xa8d   : > { %v2744_v37 = vmul.f32 %v2739_v28, %v5341_v27  ;;  %v2741_v52 = vmul.f32 %v2739_v28, %v5782_v61  ;;  %v2743_v41 = vmul.f32 %v5786_v24, %v2739_v28  ;;  %v2746_v35 = vmul.f32 %v2739_v28, %v5791_v31 }
 0xa8e   : > { %v2716_v6 = vrot.slane %v2701_v15, 7  ;;  %v2715_v27 = vsel %vm1247_vm1, %v2709_v38, %v2714_v25  ;;  %v2745_v30 = vmul.f32 %v2739_v28, %v5795_v60 }
 0xa8f   : > { %v2757_v42 = vrot.slane %v2744_v37, 7  ;;  %v2754_v7 = vrot.slane %v2743_v41, 7  ;;  %v2790_v41 = vmul.f32 %v2784_v5, %v5795_v60 }
 0xa90   : > { %2608 = vrot.lane.b32.xlu1 %v2601_v3, %s3977_s22  ;;  %2606 = vrot.lane.b32.xlu0 %v2599_v50, %s3977_s22  ;;  %v2742_v3 = vmul.f32 %v2739_v28, %v5778_v34  ;;  %v2710_v50 = vsel %vm1247_vm1, %v2708_v22, %v2709_v38  ;;  %v2717_v40 = vsel %vm1247_vm1, %v2712_v47, %v2716_v6  ;;  %v5817_v47 = vld [vmem:[#allocation3 + $0x38] sm:$0xff]  ;;  %v2759_v22 = vrot.slane %v2745_v30, 7  ;;  %v2829_v37 = vpop.permute.xlu0 %2828 }
 0xa91   : > { %v2789_v15 = vmul.f32 %v5817_v47, %v2784_v5  ;;  %v2786_v38 = vmul.f32 %v2784_v5, %v5782_v61  ;;  %v2788_v28 = vmul.f32 %v5786_v24, %v2784_v5  ;;  %v2833_v30 = vmul.f32 %v5786_v24, %v2829_v37 }
 0xa93   : > { %v2802_v6 = vrot.slane %v2789_v15, 7  ;;  %v2798_v25 = vrot.slane %v2786_v38, 7  ;;  %v2874_v15 = vpop.permute.xlu1 %2873  ;;  %v2844_v38 = vrot.slane %v2833_v30, 7 }
 0xa94   : > { %2651 = vrot.lane.b32.xlu1 %v2644_v16, %s3983_s15  ;;  %2649 = vrot.lane.b32.xlu0 %v2641_v0, %s3983_s15  ;;  %v2756_v16 = vrot.slane %v2742_v3, 7  ;;  %v2753_v0 = vrot.slane %v2741_v52, 7  ;;  %v2791_v3 = vmul.f32 %v2784_v5, %v5791_v31  ;;  %v2799_v52 = vrot.slane %v2788_v28, 7 }
 0xa95   : > { %v2835_v28 = vmul.f32 %v2829_v37, %v5795_v60  ;;  %v2880_v30 = vmul.f32 %v2874_v15, %v5795_v60 }
 0xa96   : > { %v2758_v53 = vsel %vm1247_vm1, %v2756_v16, %v2757_v42  ;;  %v2806_v16 = vrot.slane %v2791_v3, 7  ;;  %v2879_v3 = vmul.f32 %v5817_v47, %v2874_v15 }
 0xa98   : > { %2655 = vrot.lane.b32.xlu1 %v2648_v12, %s3983_s15  ;;  %2653 = vrot.lane.b32.xlu0 %v2646_v56, %s3983_s15  ;;  %v2761_v12 = vrot.slane %v2746_v35, 7  ;;  %v2755_v56 = vsel %vm1247_vm1, %v2753_v0, %v2754_v7  ;;  %v2834_v35 = vmul.f32 %v5817_v47, %v2829_v37  ;;  %v2804_v0 = vrot.slane %v2790_v41, 7 }
 0xa99   : > { %v2807_v5 = vsel %vm1247_vm1, %v2802_v6, %v2806_v16  ;;  %v2878_v41 = vmul.f32 %v5786_v24, %v2874_v15  ;;  %v2892_v16 = vrot.slane %v2879_v3, 7 }
 0xa9a   : > { %v2762_v18 = vsel %vm1247_vm1, %v2757_v42, %v2761_v12  ;;  %v2832_v42 = vmul.f32 %v2829_v37, %v5778_v34  ;;  %v2847_v12 = vrot.slane %v2834_v35, 7  ;;  %v2912_v35 = vld [vmem:[#allocation3 + $0x28] sm:$0x80] }
 0xa9c   : > { %2720 = vrot.lane.b32.xlu1 %v2713_v45, %s3984_s16  ;;  %2718 = vrot.lane.b32.xlu0 %v2710_v50, %s3984_s16  ;;  %v2801_v45 = vrot.slane %v2787_v11, 7  ;;  %v2760_v50 = vsel %vm1247_vm1, %v2754_v7, %v2759_v22  ;;  %v2831_v7 = vmul.f32 %v2829_v37, %v5782_v61  ;;  %v2836_v11 = vmul.f32 %v2829_v37, %v5791_v31 }
 0xa9e   : > { %v2843_v22 = vrot.slane %v2831_v7, 7  ;;  %v2889_v7 = vrot.slane %v2878_v41, 7 }
 0xaa0   : > { %2724 = vrot.lane.b32.xlu1 %v2717_v40, %s3984_s16  ;;  %2722 = vrot.lane.b32.xlu0 %v2715_v27, %s3984_s16  ;;  %v2803_v40 = vsel %vm1247_vm1, %v2801_v45, %v2802_v6  ;;  %v2800_v27 = vsel %vm1247_vm1, %v2798_v25, %v2799_v52  ;;  %v2851_v45 = vrot.slane %v2836_v11, 7  ;;  %v2877_v6 = vmul.f32 %v2874_v15, %v5778_v34 }
 0xaa1   : > { %v2849_v25 = vrot.slane %v2835_v28, 7  ;;  %v2894_v28 = vrot.slane %v2880_v30, 7 }
 0xaa2   : > { %v2852_v37 = vsel %vm1247_vm1, %v2847_v12, %v2851_v45  ;;  %v2913_v45 = vld [vmem:[#allocation3 + $0x58] sm:$0x7f] }
 0xaa4   : > { %2765 = vrot.lane.b32.xlu1 %v2758_v53, %s3987_s10  ;;  %2763 = vrot.lane.b32.xlu0 %v2755_v56, %s3987_s10  ;;  %v2846_v53 = vrot.slane %v2832_v42, 7  ;;  %v2805_v56 = vsel %vm1247_vm1, %v2799_v52, %v2804_v0  ;;  %v2876_v52 = vmul.f32 %v2874_v15, %v5782_v61  ;;  %v2881_v42 = vmul.f32 %v2874_v15, %v5791_v31 }
 0xaa6   : > { %v2888_v0 = vrot.slane %v2876_v52, 7 }
 0xaa8   : > { %2769 = vrot.lane.b32.xlu1 %v2762_v18, %s3987_s10  ;;  %2767 = vrot.lane.b32.xlu0 %v2760_v50, %s3987_s10  ;;  %v2848_v18 = vsel %vm1247_vm1, %v2846_v53, %v2847_v12  ;;  %v2845_v50 = vsel %vm1247_vm1, %v2843_v22, %v2844_v38  ;;  %v2890_v22 = vsel %vm1247_vm1, %v2888_v0, %v2889_v7  ;;  %v5880_v0 = vld [vmem:[#allocation3 + $0x30] sm:$0xfc] }
 0xaa9   : > { %6601 = vst [vmem:[#allocation8_spill] sm:$0xff] %v5880_v0 }
 0xaac   : > { %2810 = vrot.lane.b32.xlu1 %v2803_v40, %s3989_s21  ;;  %2808 = vrot.lane.b32.xlu0 %v2800_v27, %s3989_s21  ;;  %v2891_v40 = vrot.slane %v2877_v6, 7  ;;  %v2850_v27 = vsel %vm1247_vm1, %v2844_v38, %v2849_v25  ;;  %v2895_v25 = vsel %vm1247_vm1, %v2889_v7, %v2894_v28 }
 0xaae   : > { %v2893_v12 = vsel %vm1247_vm1, %v2891_v40, %v2892_v16  ;;  %v5874_v40 = vld [vmem:[#allocation3 + $0x38] sm:$0xfc] }
 0xab0   : > { %2814 = vrot.lane.b32.xlu1 %v2807_v5, %s3989_s21  ;;  %2812 = vrot.lane.b32.xlu0 %v2805_v56, %s3989_s21  ;;  %v2921_v5 = vpop.permute.xlu0 %2920  ;;  %v2896_v56 = vrot.slane %v2881_v42, 7  ;;  %v5876_v42 = vld [vmem:[#allocation3 + $0x50] sm:$0xff] }
 0xab1   : > { %v2924_v53 = vmul.f32 %v2921_v5, %v2912_v35  ;;  %v2926_v11 = vmul.f32 %v2921_v5, %v5575_v49  ;;  %v2923_v38 = vmul.f32 %v2921_v5, %v5778_v34  ;;  %v2928_v49 = vmul.f32 %v2921_v5, %v2913_v45  ;;  %v5871_v34 = vpop.permute.xlu1 %2428 }
 0xab2   : > { %v2897_v3 = vsel %vm1247_vm1, %v2892_v16, %v2896_v56 }
 0xab3   : > { %v2938_v15 = vrot.slane %v2924_v53, 7  ;;  %v2939_v6 = vrot.slane %v2926_v11, 7  ;;  %v2935_v52 = vrot.slane %v2923_v38, 7  ;;  %v2943_v16 = vrot.slane %v2928_v49, 7  ;;  %v5887_v11 = vld [vmem:[#allocation3 + $0x68] sm:$0x3] }
 0xab4   : > { %2855 = vrot.lane.b32.xlu1 %v2848_v18, %s3981_s14  ;;  %2853 = vrot.lane.b32.xlu0 %v2845_v50, %s3981_s14  ;;  %v2925_v18 = vmul.f32 %v5817_v47, %v2921_v5  ;;  %v2992_v50 = vpop.permute.xlu0 %2991  ;;  %v5893_v38 = vld [vmem:[#allocation3 + $0x60] sm:$0x3] }
 0xab5   : > { %v2940_v47 = vsel %vm1247_vm1, %v2938_v15, %v2939_v6  ;;  %v2995_v35 = vmul.f32 %v2992_v50, %v5874_v40  ;;  %v2999_v28 = vmul.f32 %v2992_v50, %v5887_v11  ;;  %6603 = vst [vmem:[#allocation10_spill] sm:$0xff] %v5893_v38  ;;  %v2998_v49 = vmul.f32 %v2992_v50, %v5893_v38 }
 0xab6   : > { %v2936_v41 = vrot.slane %v2925_v18, 7  ;;  %v3037_v18 = vpop.permute.xlu1 %3036 }
 0xab7   : > { %v3009_v56 = vrot.slane %v2995_v35, 2 }
 0xab8   : > { %2859 = vrot.lane.b32.xlu1 %v2852_v37, %s3981_s14  ;;  %2857 = vrot.lane.b32.xlu0 %v2850_v27, %s3981_s14  ;;  %v2927_v37 = vmul.f32 %v2921_v5, %v5791_v31  ;;  %v2997_v27 = vmul.f32 %v2992_v50, %v5876_v42  ;;  %v5882_v31 = vld [vmem:[#allocation3 + $0x48] sm:$0xff]  ;;  %v2937_v7 = vsel %vm1247_vm1, %v2935_v52, %v2936_v41 }
 0xab9   : > { %6602 = vst [vmem:[#allocation7_spill] sm:$0xff] %v5882_v31  ;;  %v2994_v5 = vmul.f32 %v2992_v50, %v5880_v0  ;;  %v2996_v53 = vmul.f32 %v2992_v50, %v5882_v31  ;;  %v3040_v52 = vmul.f32 %v3037_v18, %v5874_v40  ;;  %v3041_v35 = vmul.f32 %v3037_v18, %v5882_v31 }
 0xaba   : > { %v2941_v30 = vrot.slane %v2927_v37, 7  ;;  %v3042_v37 = vmul.f32 %v3037_v18, %v5876_v42 }
 0xabb   : > { %v3006_v15 = vrot.slane %v2994_v5, 2  ;;  %v3082_v5 = vpop.permute.xlu0 %3081 }
 0xabc   : > { %2900 = vrot.lane.b32.xlu1 %v2893_v12, %s3977_s22  ;;  %2898 = vrot.lane.b32.xlu0 %v2890_v22, %s3977_s22  ;;  %v2944_v12 = vsel %vm1247_vm1, %v2939_v6, %v2943_v16  ;;  %v3010_v22 = vrot.slane %v2997_v27, 2  ;;  %v2942_v45 = vsel %vm1247_vm1, %v2936_v41, %v2941_v30  ;;  %v3014_v6 = vrot.slane %v2999_v28, 2 }
 0xabd   : > { %v3012_v16 = vrot.slane %v2998_v49, 2  ;;  %v3039_v41 = vmul.f32 %v3037_v18, %v5880_v0  ;;  %v3054_v27 = vrot.slane %v3040_v52, 2  ;;  %v3044_v30 = vmul.f32 %v3037_v18, %v5887_v11 }
 0xabe   : > { %v3015_v50 = vsel %vm621_vm10, %v3010_v22, %v3014_v6  ;;  %v3043_v28 = vmul.f32 %v3037_v18, %v5893_v38  ;;  %v3087_v49 = vmul.f32 %v3082_v5, %v5876_v42  ;;  %v3086_v52 = vmul.f32 %v3082_v5, %v5882_v31 }
 0xac0   : > { %2904 = vrot.lane.b32.xlu1 %v2897_v3, %s3977_s22  ;;  %2902 = vrot.lane.b32.xlu0 %v2895_v25, %s3977_s22  ;;  %v3007_v3 = vrot.slane %v2996_v53, 2  ;;  %v3011_v25 = vsel %vm621_vm10, %v3009_v56, %v3010_v22  ;;  %v3052_v56 = vrot.slane %v3041_v35, 2  ;;  %v3085_v22 = vmul.f32 %v3082_v5, %v5874_v40 }
 0xac1   : > { %v3057_v6 = vrot.slane %v3043_v28, 2 }
 0xac2   : > { %v3013_v53 = vsel %vm621_vm10, %v3007_v3, %v3012_v16  ;;  %v3089_v16 = vmul.f32 %v3082_v5, %v5887_v11 }
 0xac3   : > { %v3058_v35 = vsel %vm621_vm10, %v3052_v56, %v3057_v6 }
 0xac4   : > { %2947 = vrot.lane.b32.xlu1 %v2940_v47, %s3983_s15  ;;  %2945 = vrot.lane.b32.xlu0 %v2937_v7, %s3983_s15  ;;  %v3008_v47 = vsel %vm621_vm10, %v3006_v15, %v3007_v3  ;;  %v3055_v7 = vrot.slane %v3042_v37, 2  ;;  %v3059_v15 = vrot.slane %v3044_v30, 2  ;;  %v3084_v3 = vmul.f32 %v3082_v5, %v5880_v0 }
 0xac5   : > { %v3099_v37 = vrot.slane %v3085_v22, 2  ;;  %v3088_v30 = vmul.f32 %v3082_v5, %v5893_v38 }
 0xac6   : > { %v3060_v18 = vsel %vm621_vm10, %v3055_v7, %v3059_v15 }
 0xac7   : > { %v3102_v15 = vrot.slane %v3088_v30, 2 }
 0xac8   : > { %2951 = vrot.lane.b32.xlu1 %v2944_v12, %s3983_s15  ;;  %2949 = vrot.lane.b32.xlu0 %v2942_v45, %s3983_s15  ;;  %v3051_v12 = vrot.slane %v3039_v41, 2  ;;  %v3056_v45 = vsel %vm621_vm10, %v3054_v27, %v3055_v7  ;;  %v3127_v41 = vpop.permute.xlu1 %3126  ;;  %v3097_v27 = vrot.slane %v3086_v52, 2 }
 0xac9   : > { %v3130_v7 = vmul.f32 %v3127_v41, %v5874_v40  ;;  %v3132_v28 = vmul.f32 %v3127_v41, %v5876_v42  ;;  %v3131_v22 = vmul.f32 %v3127_v41, %v5882_v31  ;;  %v3134_v6 = vmul.f32 %v3127_v41, %v5887_v11 }
 0xaca   : > { %v3103_v52 = vsel %vm621_vm10, %v3097_v27, %v3102_v15 }
 0xacb   : > { %v3149_v30 = vrot.slane %v3134_v6, 2 }
 0xacc   : > { %3018 = vrot.lane.b32.xlu1 %v3011_v25, %s3984_s16  ;;  %3016 = vrot.lane.b32.xlu0 %v3008_v47, %s3984_s16  ;;  %v3053_v25 = vsel %vm621_vm10, %v3051_v12, %v3052_v56  ;;  %v3100_v47 = vrot.slane %v3087_v49, 2  ;;  %v3104_v12 = vrot.slane %v3089_v16, 2  ;;  %v3129_v56 = vmul.f32 %v3127_v41, %v5880_v0 }
 0xacd   : > { %v3144_v49 = vrot.slane %v3130_v7, 2  ;;  %v3133_v16 = vmul.f32 %v3127_v41, %v5893_v38 }
 0xace   : > { %v3105_v5 = vsel %vm621_vm10, %v3100_v47, %v3104_v12 }
 0xacf   : > { %v3147_v7 = vrot.slane %v3133_v16, 2  ;;  %v3210_v16 = vld [vmem:[#allocation3 + $0x40] sm:$0xfc] }
 0xad0   : > { %3022 = vrot.lane.b32.xlu1 %v3015_v50, %s3984_s16  ;;  %3020 = vrot.lane.b32.xlu0 %v3013_v53, %s3984_s16  ;;  %v3096_v50 = vrot.slane %v3084_v3, 2  ;;  %v3101_v53 = vsel %vm621_vm10, %v3099_v37, %v3100_v47  ;;  %v3172_v3 = vpop.permute.xlu0 %3171  ;;  %v3142_v37 = vrot.slane %v3131_v22, 2  ;;  %s3990_s16 = smov 2  }
 0xad1   : > { %v3175_v47 = vmul.f32 %v3172_v3, %v5874_v40 }
 0xad4   : > { %3063 = vrot.lane.b32.xlu1 %v3056_v45, %s3987_s10  ;;  %3061 = vrot.lane.b32.xlu0 %v3053_v25, %s3987_s10  ;;  %v3098_v45 = vsel %vm621_vm10, %v3096_v50, %v3097_v27  ;;  %v3145_v25 = vrot.slane %v3132_v28, 2  ;;  %v3174_v27 = vmul.f32 %v3172_v3, %v5880_v0  ;;  %v3176_v28 = vmul.f32 %v3172_v3, %v5882_v31 }
 0xad6   : > { %v3146_v50 = vsel %vm621_vm10, %v3144_v49, %v3145_v25  ;;  %v3150_v15 = vsel %vm621_vm10, %v3145_v25, %v3149_v30  ;;  %v3148_v49 = vsel %vm621_vm10, %v3142_v37, %v3147_v7  ;;  %v3186_v6 = vrot.slane %v3174_v27, 2 }
 0xad8   : > { %3067 = vrot.lane.b32.xlu1 %v3060_v18, %s3987_s10  ;;  %3065 = vrot.lane.b32.xlu0 %v3058_v35, %s3987_s10  ;;  %v3141_v18 = vrot.slane %v3129_v56, 2  ;;  %v3220_v35 = vpop.permute.xlu1 %3219  ;;  %v3189_v56 = vrot.slane %v3175_v47, 2  ;;  %s3991_s10 = smov 4  }
 0xad9   : > { %v3223_v47 = vmul.f32 %v3220_v35, %v3210_v16  ;;  %v3224_v27 = vmul.f32 %v3220_v35, %v5876_v42 }
 0xada   : > { %v3143_v12 = vsel %vm621_vm10, %v3141_v18, %v3142_v37  ;;  %v3178_v18 = vmul.f32 %v3172_v3, %v5893_v38 }
 0xadc   : > { %3108 = vrot.lane.b32.xlu1 %v3101_v53, %s3989_s21  ;;  %3106 = vrot.lane.b32.xlu0 %v3098_v45, %s3989_s21  ;;  %v3177_v53 = vmul.f32 %v3172_v3, %v5876_v42  ;;  %v3192_v7 = vrot.slane %v3178_v18, 2  ;;  %v3226_v42 = vmul.f32 %v3220_v35, %v5887_v11 }
 0xade   : > { %v3190_v22 = vrot.slane %v3177_v53, 2 }
 0xae0   : > { %3112 = vrot.lane.b32.xlu1 %v3105_v5, %s3989_s21  ;;  %3110 = vrot.lane.b32.xlu0 %v3103_v52, %s3989_s21  ;;  %v3179_v5 = vmul.f32 %v3172_v3, %v5887_v11  ;;  %v3187_v52 = vrot.slane %v3176_v28, 2  ;;  %v3191_v25 = vsel %vm621_vm10, %v3189_v56, %v3190_v22  ;;  %v3222_v3 = vmul.f32 %v3220_v35, %v5874_v40  ;;  %v3212_v28 = vld [vmem:[#allocation3 + $0x70] sm:$0x3]  ;;  %s224_s21 = scalar_lea.vmem %s6513_s5, %s3912_s29 }
 0xae1   : > { %v3235_v40 = vrot.slane %v3224_v27, 2  ;;  %v3899_v27 = vld [vmem:[%s6511_s3 + $0x4] ss:$0 sm:$0xff] }
 0xae2   : > { %v3194_v30 = vrot.slane %v3179_v5, 2  ;;  %v3188_v37 = vsel %vm621_vm10, %v3186_v6, %v3187_v52  ;;  %v3237_v5 = vrot.slane %v3223_v47, 2  ;;  %v3193_v6 = vsel %vm621_vm10, %v3187_v52, %v3192_v7  ;;  %v3897_v7 = vld [vmem:[%s6511_s3 + $0x2] ss:$0 sm:$0xff] }
 0xae3   : > { %v3234_v18 = vrot.slane %v3222_v3, 2  ;;  %v3240_v47 = vrot.slane %v3226_v42, 2 }
 0xae4   : > { %3153 = vrot.lane.b32.xlu1 %v3146_v50, %s3981_s14  ;;  %3151 = vrot.lane.b32.xlu0 %v3143_v12, %s3981_s14  ;;  %v3211_v50 = vld [vmem:[#allocation3 + $0x58] sm:$0xff]  ;;  %v3195_v56 = vsel %vm621_vm10, %v3190_v22, %v3194_v30 }
 0xae5   : > { %v3225_v53 = vmul.f32 %v3220_v35, %v3211_v50  ;;  %v3227_v50 = vmul.f32 %v3220_v35, %v3212_v28  ;;  %v3236_v22 = vsel %vm621_vm10, %v3234_v18, %v3235_v40  ;;  %v3966_v18 = vld [vmem:[#allocation3] sm:$0xff] }
 0xae6   : > { %v5949_v41 = vpop.permute.xlu0 %2467  ;;  %v5951_v45 = vpop.permute.xlu1 %2469  ;;  %3267 = vst.msk [vmem:[#allocation4 + $0x8] sm:$0xff] %vm3266_vm4, %v3966_v18  ;;  %3269 = vst.msk [vmem:[#allocation4 + $0x18] sm:$0xff] %vm3266_vm4, %v3966_v18 }
 0xae7   : > { %v3238_v16 = vrot.slane %v3225_v53, 2  ;;  %v3242_v30 = vrot.slane %v3227_v50, 2  ;;  %v3241_v53 = vsel %vm621_vm10, %v3235_v40, %v3240_v47 }
 0xae8   : > { %3157 = vrot.lane.b32.xlu1 %v3150_v15, %s3981_s14  ;;  %3155 = vrot.lane.b32.xlu0 %v3148_v49, %s3981_s14  ;;  %s3999_s14 = smov 12  }
 0xae9   : > { %v3239_v38 = vsel %vm621_vm10, %v3237_v5, %v3238_v16  ;;  %v3243_v35 = vsel %vm621_vm10, %v3238_v16, %v3242_v30 }
 0xaea   : > { %v5959_v12 = vpop.permute.xlu0 %2471  ;;  %v5961_v0 = vpop.permute.xlu1 %2473 }
 0xaec   : > { %3198 = vrot.lane.b32.xlu1 %v3191_v25, %s3977_s22  ;;  %3196 = vrot.lane.b32.xlu0 %v3188_v37, %s3977_s22 }
 0xaee   : > { %v5969_v15 = vpop.permute.xlu0 %2512  ;;  %v5971_v49 = vpop.permute.xlu1 %2514 }
 0xaf0   : > { %3202 = vrot.lane.b32.xlu1 %v3195_v56, %s3977_s22  ;;  %3200 = vrot.lane.b32.xlu0 %v3193_v6, %s3977_s22 }
 0xaf2   : > { %v5978_v25 = vpop.permute.xlu0 %2516  ;;  %v5980_v37 = vpop.permute.xlu1 %2518 }
 0xaf4   : > { %3246 = vrot.lane.b32.xlu1 %v3239_v38, %s3983_s15  ;;  %3244 = vrot.lane.b32.xlu0 %v3236_v22, %s3983_s15 }
 0xaf6   : > { %v5986_v52 = vpop.permute.xlu0 %2557  ;;  %v5988_v11 = vpop.permute.xlu1 %2559 }
 0xaf8   : > { %3250 = vrot.lane.b32.xlu1 %v3243_v35, %s3983_s15  ;;  %3248 = vrot.lane.b32.xlu0 %v3241_v53, %s3983_s15  ;;  %s4001_s15 = smov 14  }
 0xafa   : > { %v5997_v3 = vpop.permute.xlu0 %2561  ;;  %v5999_v38 = vpop.permute.xlu1 %2563 }
 0xafc   : > { %3341 = vrot.lane.b32.xlu1 %v3897_v7, %s3990_s16  ;;  %s4014_s16 = smov 115  }
 0xafe   : > { %v6004_v28 = vpop.permute.xlu0 %2602  ;;  %v6006_v56 = vpop.permute.xlu1 %2604 }
 0xb00   : > { %3405 = vrot.lane.b32.xlu1 %v3899_v27, %s3991_s10  ;;  %s4000_s10 = smov 11  }
 0xb02   : > { %v6008_v5 = vpop.permute.xlu0 %2606  ;;  %v6010_v16 = vpop.permute.xlu1 %2608 }
 0xb06   : > { %v6012_v50 = vpop.permute.xlu0 %2649  ;;  %v6014_v6 = vpop.permute.xlu1 %2651 }
 0xb0a   : > { %v6016_v40 = vpop.permute.xlu0 %2653  ;;  %v6018_v42 = vpop.permute.xlu1 %2655 }
 0xb0b   : > { %6604 = vst [vmem:[#allocation9_spill] sm:$0xff] %v6016_v40  ;;  %6605 = vst [vmem:[#allocation13_spill] sm:$0xff] %v6018_v42 }
 0xb0e   : > { %v6020_v22 = vpop.permute.xlu0 %2718  ;;  %v6022_v30 = vpop.permute.xlu1 %2720 }
 0xb0f   : > { %6606 = vst [vmem:[#allocation11_spill] sm:$0xff] %v6020_v22  ;;  %6607 = vst [vmem:[#allocation16_spill] sm:$0xff] %v6022_v30 }
 0xb12   : > { %v6024_v47 = vpop.permute.xlu0 %2722  ;;  %v6026_v35 = vpop.permute.xlu1 %2724 }
 0xb13   : > { %6608 = vst [vmem:[#allocation14_spill] sm:$0xff] %v6024_v47  ;;  %6609 = vst [vmem:[#allocation17_spill] sm:$0xff] %v6026_v35 }
 0xb16   : > { %v6028_v53 = vpop.permute.xlu0 %2763  ;;  %v6030_v7 = vpop.permute.xlu1 %2765 }
 0xb17   : > { %6610 = vst [vmem:[#allocation15_spill] sm:$0xff] %v6028_v53 }
 0xb1a   : > { %v6032_v27 = vpop.permute.xlu0 %2767  ;;  %v6034_v31 = vpop.permute.xlu1 %2769 }
 0xb1b   : > { %6611 = vst [vmem:[#allocation12_spill] sm:$0xff] %v6032_v27  ;;  %6612 = vst [vmem:[#allocation5_spill] sm:$0xff] %v6034_v31  ;;  %v2133_v27 = vsel %vm364_vm14, %v5544_v19, %v5593_v43  ;;  %v2178_v31 = vsel %vm1341_vm3, %v5597_v17, %v5550_v8  ;;  %v2179_v19 = vsel %vm1341_vm3, %v5599_v62, %v5555_v4 }
 0xb1c   : > { %v2313_v4 = vsel %vm1436_vm6, %v5571_v63, %v5609_v10  ;;  %v2314_v63 = vsel %vm1436_vm6, %v5573_v29, %v5611_v54  ;;  %v2430_v29 = vsel %vm364_vm14, %v5713_v33, %v5711_v44  ;;  %v2520_v44 = vsel %vm1373_vm5, %v5969_v15, %v5971_v49 }
 0xb1d   : > { %v2521_v15 = vsel %vm1373_vm5, %v5978_v25, %v5980_v37 }
 0xb1e   : > { %v6036_v18 = vpop.permute.xlu0 %2808  ;;  %v6038_v40 = vpop.permute.xlu1 %2810 }
 0xb1f   : > { %6613 = vst [vmem:[#allocation18_spill] sm:$0xff] %v6036_v18 }
 0xb22   : > { %v6040_v42 = vpop.permute.xlu0 %2812  ;;  %v6042_v22 = vpop.permute.xlu1 %2814 }
 0xb23   : > { %6614 = vst [vmem:[#allocation6_spill] sm:$0xff] %v6040_v42  ;;  %6615 = vst [vmem:[#allocation19_spill] sm:$0xff] %v6042_v22  ;;  %v2137_v42 = vadd.f32 %v2133_v27, %v5532_v23  ;;  %v2268_v23 = vsel %vm228_vm2, %v5605_v2, %v5567_v48  ;;  %v2361_v2 = vsel %vm332_vm13, %v5613_v26, %v5707_v39 }
 0xb24   : > { %v2362_v26 = vsel %vm332_vm13, %v5615_v32, %v5709_v21 }
 0xb26   : > { %v6044_v30 = vpop.permute.xlu0 %2853  ;;  %v6046_v47 = vpop.permute.xlu1 %2855 }
 0xb27   : > { %6616 = vst [vmem:[#allocation20_spill] sm:$0xff] %v6044_v30  ;;  %v2182_v30 = vadd.f32 %v2178_v31, %v2137_v42 }
 0xb2a   : > { %v6048_v35 = vpop.permute.xlu0 %2857  ;;  %v6050_v53 = vpop.permute.xlu1 %2859 }
 0xb2b   : > { %6617 = vst [vmem:[#allocation21_spill] sm:$0xff] %v6048_v35  ;;  %6618 = vst [vmem:[#allocation22_spill] sm:$0xff] %v6050_v53  ;;  %v2134_v35 = vsel %vm364_vm14, %v5546_v57, %v5595_v36  ;;  %v2223_v53 = vsel %vm1373_vm5, %v5558_v13, %v5601_v9  ;;  %v3872_v57 = vld [vmem:[%s6510_s2 + $0x1c] ss:$0 sm:$0xff]  ;;  %v2224_v13 = vsel %vm1373_vm5, %v5563_v1, %v5603_v14 }
 0xb2c   : > { %v2138_v8 = vadd.f32 %v2134_v35, %v5565_v58  ;;  %v2227_v43 = vadd.f32 %v2223_v53, %v2182_v30  ;;  %v2374_v48 = vmul.f32 %v3872_v57, %v5619_v55  ;;  %v2269_v9 = vsel %vm228_vm2, %v5607_v20, %v5569_v51 }
 0xb2d   : > { %v2375_v31 = vmul.f32 %v5786_v24, %v3872_v57  ;;  %v2376_v55 = vmul.f32 %v3872_v57, %v5635_v59 }
 0xb2e   : > { %v6059_v18 = vpop.permute.xlu0 %2898  ;;  %v6061_v22 = vpop.permute.xlu1 %2900  ;;  %v2183_v58 = vadd.f32 %v2179_v19, %v2138_v8  ;;  %v2272_v62 = vadd.f32 %v2268_v23, %v2227_v43  ;;  %v2380_v10 = vrot.slane %v2374_v48, 4  ;;  %v2475_v8 = vsel %vm1341_vm3, %v5949_v41, %v5951_v45 }
 0xb2f   : > { %v2381_v39 = vrot.slane %v2375_v31, 4  ;;  %v2383_v54 = vrot.slane %v2376_v55, 4  ;;  %v2476_v41 = vsel %vm1341_vm3, %v5959_v12, %v5961_v0  ;;  %v2565_v45 = vsel %vm228_vm2, %v5986_v52, %v5988_v11 }
 0xb30   : > { %v2228_v42 = vadd.f32 %v2224_v13, %v2183_v58  ;;  %v2317_v1 = vadd.f32 %v2313_v4, %v2272_v62  ;;  %v2431_v13 = vsel %vm364_vm14, %v5775_v46, %v5871_v34  ;;  %v3879_v46 = vld [vmem:[%s6510_s2 + $0x23] ss:$0 sm:$0xff]  ;;  %v2610_v0 = vsel %vm1436_vm6, %v6004_v28, %v6006_v56 }
 0xb31   : > { %v2382_v19 = vsel %vm1031_vm0, %v2380_v10, %v2381_v39  ;;  %v2384_v57 = vsel %vm1031_vm0, %v2381_v39, %v2383_v54  ;;  %v2670_v12 = vmul.f32 %v3879_v46, %v5782_v61  ;;  %v2566_v11 = vsel %vm228_vm2, %v5997_v3, %v5999_v38  ;;  %v6619_v3 = vld [vmem:[#allocation13_spill] sm:$0xff] }
 0xb32   : > { %v6079_v36 = vpop.permute.xlu0 %2902  ;;  %v6081_v17 = vpop.permute.xlu1 %2904  ;;  %v2273_v51 = vadd.f32 %v2269_v9, %v2228_v42  ;;  %v2365_v20 = vadd.f32 %v2361_v2, %v2317_v1  ;;  %v2657_v9 = vsel %vm332_vm13, %v6012_v50, %v6014_v6  ;;  %v2671_v2 = vmul.f32 %v5786_v24, %v3879_v46  ;;  %v6620_v38 = vld [vmem:[#allocation9_spill] sm:$0xff] }
 0xb33   : > { %v2611_v61 = vsel %vm1436_vm6, %v6008_v5, %v6010_v16  ;;  %v2676_v28 = vrot.slane %v2670_v12, 7  ;;  %v2672_v56 = vmul.f32 %v3879_v46, %v5795_v60  ;;  %v2658_v10 = vsel %vm332_vm13, %v6620_v38, %v6619_v3  ;;  %v6623_v60 = vld [vmem:[#allocation15_spill] sm:$0xff] }
 0xb34   : > { %v2318_v35 = vadd.f32 %v2314_v63, %v2273_v51  ;;  %v2387_v23 = vadd.f32 %v2382_v19, %v2365_v20  ;;  %v2677_v50 = vrot.slane %v2671_v2, 7  ;;  %v6621_v20 = vld [vmem:[#allocation16_spill] sm:$0xff]  ;;  %v2771_v19 = vsel %vm1341_vm3, %v6623_v60, %v6030_v7  ;;  %v6632_v2 = vld [vmem:[#allocation7_spill] sm:$0xff] }
 0xb35   : > { %v2679_v5 = vrot.slane %v2672_v56, 7  ;;  %v6629_v7 = vld [vmem:[#allocation20_spill] sm:$0xff]  ;;  %vm3456_vm0 = vcmask 1006592  }
 0xb36   : > { %v6097_v14 = vpop.permute.xlu0 %2945  ;;  %v6099_v30 = vpop.permute.xlu1 %2947  ;;  %v2366_v59 = vadd.f32 %v2362_v26, %v2318_v35  ;;  %v2434_v32 = vadd.f32 %v2430_v29, %v2387_v23  ;;  %v2678_v51 = vsel %vm1247_vm1, %v2676_v28, %v2677_v50  ;;  %v6622_v26 = vld [vmem:[#allocation11_spill] sm:$0xff]  ;;  %v6634_v28 = vld [vmem:[#allocation21_spill] sm:$0xff] }
 0xb37   : > { %v2726_v39 = vsel %vm364_vm14, %v6622_v26, %v6621_v20  ;;  %v2680_v23 = vsel %vm1247_vm1, %v2677_v50, %v2679_v5  ;;  %vm3488_vm1 = vcmask 998400  }
 0xb38   : > { %v2388_v33 = vadd.f32 %v2384_v57, %v2366_v59  ;;  %v2479_v4 = vadd.f32 %v2475_v8, %v2434_v32  ;;  %v6624_v8 = vld [vmem:[#allocation17_spill] sm:$0xff]  ;;  %v6625_v32 = vld [vmem:[#allocation14_spill] sm:$0xff] }
 0xb39   : > { %v2727_v57 = vsel %vm364_vm14, %v6625_v32, %v6624_v8 }
 0xb3a   : > { %v6108_v53 = vpop.permute.xlu0 %2949  ;;  %v6110_v27 = vpop.permute.xlu1 %2951  ;;  %v2435_v48 = vadd.f32 %v2431_v13, %v2388_v33  ;;  %v2524_v58 = vadd.f32 %v2520_v44, %v2479_v4  ;;  %v6626_v13 = vld [vmem:[#allocation18_spill] sm:$0xff] }
 0xb3b   : > { %v2816_v44 = vsel %vm1373_vm5, %v6626_v13, %v6038_v40  ;;  %v6631_v40 = vld [vmem:[#allocation6_spill] sm:$0xff]  ;;  %v2954_v5 = vsel %vm332_vm13, %v6108_v53, %v6110_v27 }
 0xb3c   : > { %v2480_v49 = vadd.f32 %v2476_v41, %v2435_v48  ;;  %v2569_v52 = vadd.f32 %v2565_v45, %v2524_v58  ;;  %v6627_v41 = vld [vmem:[#allocation5_spill] sm:$0xff]  ;;  %v6628_v45 = vld [vmem:[#allocation12_spill] sm:$0xff]  ;;  %v2861_v58 = vsel %vm228_vm2, %v6629_v7, %v6046_v47 }
 0xb3d   : > { %v2772_v48 = vsel %vm1341_vm3, %v6628_v45, %v6627_v41 }
 0xb3e   : > { %v6119_v21 = vpop.permute.xlu0 %3016  ;;  %v6121_v43 = vpop.permute.xlu1 %3018  ;;  %v2525_v31 = vadd.f32 %v2521_v15, %v2480_v49  ;;  %v2614_v25 = vadd.f32 %v2610_v0, %v2569_v52  ;;  %v3886_v0 = vld [vmem:[%s6510_s2 + $0x2a] ss:$0 sm:$0xff]  ;;  %v6630_v52 = vld [vmem:[#allocation19_spill] sm:$0xff] }
 0xb40   : > { %v2570_v1 = vadd.f32 %v2566_v11, %v2525_v31  ;;  %v2661_v63 = vadd.f32 %v2657_v9, %v2614_v25  ;;  %v2817_v11 = vsel %vm1373_vm5, %v6631_v40, %v6630_v52  ;;  %v2906_v9 = vsel %vm1436_vm6, %v6059_v18, %v6061_v22 }
 0xb41   : > { %v2968_v31 = vmul.f32 %v3886_v0, %v6632_v2  ;;  %v2907_v22 = vsel %vm1436_vm6, %v6079_v36, %v6081_v17 }
 0xb42   : > { %v6139_v34 = vpop.permute.xlu0 %3020  ;;  %v6141_v62 = vpop.permute.xlu1 %3022  ;;  %v2615_v6 = vadd.f32 %v2611_v61, %v2570_v1  ;;  %v2683_v35 = vadd.f32 %v2678_v51, %v2661_v63  ;;  %v6633_v61 = vld [vmem:[#allocation22_spill] sm:$0xff]  ;;  %v2953_v1 = vsel %vm332_vm13, %v6097_v14, %v6099_v30  ;;  %v6635_v63 = vld [vmem:[#allocation8_spill] sm:$0xff] }
 0xb43   : > { %v2862_v56 = vsel %vm228_vm2, %v6634_v28, %v6633_v61  ;;  %v2967_v3 = vmul.f32 %v3886_v0, %v6635_v63  ;;  %v2974_v18 = vrot.slane %v2968_v31, 2  ;;  %v6636_v51 = vld [vmem:[#allocation10_spill] sm:$0xff]  ;;  %v3025_v27 = vsel %vm364_vm14, %v6139_v34, %v6141_v62  ;;  %v3896_v31 = vld [vmem:[%s6511_s3 + $0x1] ss:$0 sm:$0xff]  ;;  %v3901_v61 = vld [vmem:[%s6511_s3 + $0x6] ss:$0 sm:$0xff] }
 0xb44   : > { %v2662_v16 = vadd.f32 %v2658_v10, %v2615_v6  ;;  %v2730_v29 = vadd.f32 %v2726_v39, %v2683_v35  ;;  %v2969_v20 = vmul.f32 %v3886_v0, %v6636_v51  ;;  %v3900_v28 = vld [vmem:[%s6511_s3 + $0x5] ss:$0 sm:$0xff]  ;;  %v3905_v63 = vld [vmem:[%s6511_s3 + $0xa] ss:$0 sm:$0xff] }
 0xb45   : > { %v2973_v14 = vrot.slane %v2967_v3, 2  ;;  %v3904_v3 = vld [vmem:[%s6511_s3 + $0x9] ss:$0 sm:$0xff] }
 0xb46   : > { %v3062_v37 = vpop.permute.xlu0 %3061  ;;  %v3064_v42 = vpop.permute.xlu1 %3063  ;;  %v2684_v33 = vadd.f32 %v2680_v23, %v2662_v16  ;;  %v2775_v4 = vadd.f32 %v2771_v19, %v2730_v29  ;;  %v3024_v19 = vsel %vm364_vm14, %v6119_v21, %v6121_v43  ;;  %v2976_v36 = vrot.slane %v2969_v20, 2 }
 0xb47   : > { %v2975_v60 = vsel %vm621_vm10, %v2973_v14, %v2974_v18  ;;  %v3069_v23 = vsel %vm1341_vm3, %v3062_v37, %v3064_v42  ;;  %vm3424_vm14 = vcmask 1014784  }
 0xb48   : > { %v2731_v46 = vadd.f32 %v2727_v57, %v2684_v33  ;;  %v2820_v15 = vadd.f32 %v2816_v44, %v2775_v4  ;;  %v2977_v53 = vsel %vm621_vm10, %v2974_v18, %v2976_v36  ;;  %vm3328_vm10 = vcmask 1039360  }
 0xb4a   : > { %v3066_v24 = vpop.permute.xlu0 %3065  ;;  %v3068_v55 = vpop.permute.xlu1 %3067  ;;  %v2776_v25 = vadd.f32 %v2772_v48, %v2731_v46  ;;  %v2865_v47 = vadd.f32 %v2861_v58, %v2820_v15 }
 0xb4b   : > { %v3070_v21 = vsel %vm1341_vm3, %v3066_v24, %v3068_v55  ;;  %v3893_v55 = vld [vmem:[%s6512_s4 + $0x1] ss:$0 sm:$0xff]  ;;  %vm3647_vm3 = vcmask 957440  }
 0xb4c   : > { %v2821_v38 = vadd.f32 %v2817_v11, %v2776_v25  ;;  %v2910_v10 = vadd.f32 %v2906_v9, %v2865_v47  ;;  %v3898_v47 = vld [vmem:[%s6511_s3 + $0x3] ss:$0 sm:$0xff] }
 0xb4e   : > { %v3107_v54 = vpop.permute.xlu0 %3106  ;;  %v3109_v59 = vpop.permute.xlu1 %3108  ;;  %v2866_v26 = vadd.f32 %v2862_v56, %v2821_v38  ;;  %v2957_v39 = vadd.f32 %v2953_v1, %v2910_v10  ;;  %v3903_v56 = vld [vmem:[%s6511_s3 + $0x8] ss:$0 sm:$0xff]  ;;  %v3902_v1 = vld [vmem:[%s6511_s3 + $0x7] ss:$0 sm:$0xff]  ;;  %v3907_v38 = vld [vmem:[%s6511_s3 + $0xc] ss:$0 sm:$0xff] }
 0xb4f   : > { %v3114_v13 = vsel %vm1373_vm5, %v3107_v54, %v3109_v59  ;;  %v3906_v10 = vld [vmem:[%s6511_s3 + $0xb] ss:$0 sm:$0xff] }
 0xb50   : > { %v2911_v30 = vadd.f32 %v2907_v22, %v2866_v26  ;;  %v2980_v29 = vadd.f32 %v2975_v60, %v2957_v39 }
 0xb52   : > { %v3111_v12 = vpop.permute.xlu0 %3110  ;;  %v3113_v49 = vpop.permute.xlu1 %3112  ;;  %v2958_v17 = vadd.f32 %v2954_v5, %v2911_v30  ;;  %v3028_v8 = vadd.f32 %v3024_v19, %v2980_v29 }
 0xb53   : > { %v3115_v45 = vsel %vm1373_vm5, %v3111_v12, %v3113_v49  ;;  %vm3679_vm5 = vcmask 949248  }
 0xb54   : > { %v2981_v44 = vadd.f32 %v2977_v53, %v2958_v17  ;;  %v3073_v33 = vadd.f32 %v3069_v23, %v3028_v8 }
 0xb56   : > { %v3152_v50 = vpop.permute.xlu0 %3151  ;;  %v3154_v6 = vpop.permute.xlu1 %3153  ;;  %v3029_v4 = vadd.f32 %v3025_v27, %v2981_v44  ;;  %v3118_v41 = vadd.f32 %v3114_v13, %v3073_v33 }
 0xb57   : > { %v3159_v43 = vsel %vm228_vm2, %v3152_v50, %v3154_v6  ;;  %v3909_v50 = vld [vmem:[%s6511_s3 + $0xe] ss:$0 sm:$0xff]  ;;  %v3908_v6 = vld [vmem:[%s6511_s3 + $0xd] ss:$0 sm:$0xff] }
 0xb58   : > { %v3074_v7 = vadd.f32 %v3070_v21, %v3029_v4  ;;  %v3163_v58 = vadd.f32 %v3159_v43, %v3118_v41 }
 0xb5a   : > { %v3156_v16 = vpop.permute.xlu0 %3155  ;;  %v3158_v35 = vpop.permute.xlu1 %3157  ;;  %v3119_v62 = vadd.f32 %v3115_v45, %v3074_v7 }
 0xb5b   : > { %v3160_v34 = vsel %vm228_vm2, %v3156_v16, %v3158_v35  ;;  %vm3278_vm2 = vcmask 1047608  }
 0xb5c   : > { %v3164_v0 = vadd.f32 %v3160_v34, %v3119_v62 }
 0xb5e   : > { %v3197_v32 = vpop.permute.xlu0 %3196  ;;  %v3199_v57 = vpop.permute.xlu1 %3198 }
 0xb5f   : > { %v3204_v48 = vsel %vm1436_vm6, %v3197_v32, %v3199_v57 }
 0xb60   : > { %v3208_v54 = vadd.f32 %v3204_v48, %v3163_v58 }
 0xb62   : > { %v3201_v37 = vpop.permute.xlu0 %3200  ;;  %v3203_v42 = vpop.permute.xlu1 %3202 }
 0xb63   : > { %v3205_v24 = vsel %vm1436_vm6, %v3201_v37, %v3203_v42  ;;  %vm3711_vm6 = vcmask 941056  }
 0xb64   : > { %v3209_v49 = vadd.f32 %v3205_v24, %v3164_v0 }
 0xb66   : > { %v3245_v59 = vpop.permute.xlu0 %3244  ;;  %v3247_v46 = vpop.permute.xlu1 %3246 }
 0xb67   : > { %v3252_v15 = vsel %vm332_vm13, %v3245_v59, %v3247_v46 }
 0xb68   : > { %v3256_v12 = vadd.f32 %v3252_v15, %v3208_v54 }
 0xb6a   : > { %v3263_v52 = vadd.f32 %v3893_v55, %v3256_v12  ;;  %v3249_v40 = vpop.permute.xlu0 %3248  ;;  %v3251_v11 = vpop.permute.xlu1 %3250 }
 0xb6b   : > { %v3253_v9 = vsel %vm332_vm13, %v3249_v40, %v3251_v11  ;;  %vm3392_vm13 = vcmask 1022976  }
 0xb6c   : > { %v3257_v2 = vadd.f32 %v3253_v9, %v3209_v49  ;;  %3272 = vrot.lane.b32.xlu0 %v3263_v52, %s3992_s8 }
 0xb6e   : > { %v3264_v25 = vadd.f32 %v3893_v55, %v3257_v2  ;;  %v6266_v22 = vpop.permute.xlu1 %3341 }
 0xb70   : > { %3309 = vrot.lane.b32.xlu0 %v3896_v31, %s3993_s12  ;;  %3274 = vrot.lane.b32.xlu1 %v3264_v25, %s3992_s8  ;;  %s4009_s12 = smov 121  }
 0xb72   : > { %v6268_v18 = vpop.permute.xlu1 %3405 }
 0xb74   : > { %3373 = vrot.lane.b32.xlu0 %v3898_v47, %s3994_s17  ;;  %3469 = vrot.lane.b32.xlu1 %v3901_v61, %s3995_s9 }
 0xb78   : > { %3437 = vrot.lane.b32.xlu0 %v3900_v28, %s3996_s24  ;;  %3533 = vrot.lane.b32.xlu1 %v3903_v56, %s3977_s22  ;;  %s3998_s22 = smov 9   ;;  %s4002_s24 = smov 13  }
 0xb7c   : > { %3501 = vrot.lane.b32.xlu0 %v3902_v1, %s3992_s8  ;;  %3596 = vrot.lane.b32.xlu1 %v3905_v63, %s3997_s11  ;;  %s4007_s11 = smov 123  }
 0xb80   : > { %3564 = vrot.lane.b32.xlu0 %v3904_v3, %s3998_s22  ;;  %3660 = vrot.lane.b32.xlu1 %v3907_v38, %s3999_s14  ;;  %s4012_s22 = smov 117   ;;  %s4013_s14 = smov 116  }
 0xb84   : > { %3628 = vrot.lane.b32.xlu0 %v3906_v10, %s4000_s10  ;;  %3724 = vrot.lane.b32.xlu1 %v3909_v50, %s4001_s15 }
 0xb88   : > { %3692 = vrot.lane.b32.xlu0 %v3908_v6, %s4002_s24 }
 0xbde   : > { %v3273_v51 = vpop.permute.xlu0 %3272 }
 0xbdf   : > { %3279 = vst.msk [vmem:[#allocation4] sm:$0xff] %vm3278_vm2, %v3273_v51 }
 0xbe0   : > { %3281 = vst.msk [vmem:[#allocation4 + $0x8] sm:$0xff] %vm3280_vm9, %v3273_v51 }
 0xbe2   : > { %v3275_v20 = vpop.permute.xlu1 %3274  ;;  %v6274_v5 = vpop.permute.xlu0 %3309 }
 0xbe3   : > { %3282 = vst.msk [vmem:[#allocation4 + $0x10] sm:$0xff] %vm3278_vm2, %v3275_v20 }
 0xbe4   : > { %3283 = vst.msk [vmem:[#allocation4 + $0x18] sm:$0xff] %vm3280_vm9, %v3275_v20 }
 0xbe6   : > { %v6270_v26 = vld [vmem:[#allocation4] sm:$0xff]  ;;  %v6284_v35 = vpop.permute.xlu0 %3373  ;;  %v6306_v32 = vpop.permute.xlu1 %3469 }
 0xbe7   : > { %v6272_v39 = vld [vmem:[#allocation4 + $0x8] sm:$0xff]  ;;  %v3312_v14 = vmul.f32 %v6274_v5, %v6270_v26  ;;  %v3344_v60 = vmul.f32 %v6266_v22, %v6270_v26  ;;  %v3376_v36 = vmul.f32 %v6284_v35, %v6270_v26  ;;  %v3408_v29 = vmul.f32 %v6268_v18, %v6270_v26 }
 0xbe8   : > { %v3313_v30 = vmul.f32 %v6274_v5, %v6272_v39  ;;  %v3345_v16 = vmul.f32 %v6266_v22, %v6272_v39  ;;  %v3377_v19 = vmul.f32 %v6284_v35, %v6272_v39  ;;  %v3409_v17 = vmul.f32 %v6268_v18, %v6272_v39 }
 0xbe9   : > { %3320 = vrot.lane.b32.xlu0 %v3312_v14, %s4003_s25  ;;  %v3473_v53 = vmul.f32 %v6306_v32, %v6272_v39  ;;  %v3472_v27 = vmul.f32 %v6306_v32, %v6270_v26 }
 0xbea   : > { %3322 = vrot.lane.b32.xlu1 %v3313_v30, %s4003_s25  ;;  %v6300_v23 = vpop.permute.xlu0 %3437  ;;  %v6322_v33 = vpop.permute.xlu1 %3533  ;;  %v6370_v12 = vld [vmem:[#allocation4 + $0x10] sm:$0xff] }
 0xbeb   : > { %v3441_v8 = vmul.f32 %v6300_v23, %v6272_v39  ;;  %v3440_v57 = vmul.f32 %v6300_v23, %v6270_v26  ;;  %v3537_v43 = vmul.f32 %v6322_v33, %v6272_v39  ;;  %v3536_v4 = vmul.f32 %v6322_v33, %v6270_v26  ;;  %v6367_v15 = vld [vmem:[#allocation4 + $0x18] sm:$0xff] }
 0xbec   : > { %v3315_v49 = vmul.f32 %v6274_v5, %v6367_v15  ;;  %v3314_v52 = vmul.f32 %v6274_v5, %v6370_v12  ;;  %v3347_v40 = vmul.f32 %v6266_v22, %v6367_v15  ;;  %v3346_v11 = vmul.f32 %v6266_v22, %v6370_v12 }
 0xbed   : > { %3352 = vrot.lane.b32.xlu0 %v3344_v60, %s4004_s26  ;;  %v3379_v9 = vmul.f32 %v6284_v35, %v6367_v15  ;;  %v3378_v2 = vmul.f32 %v6284_v35, %v6370_v12  ;;  %v3411_v31 = vmul.f32 %v6268_v18, %v6367_v15  ;;  %v3410_v25 = vmul.f32 %v6268_v18, %v6370_v12 }
 0xbee   : > { %3354 = vrot.lane.b32.xlu1 %v3345_v16, %s4004_s26  ;;  %v6316_v13 = vpop.permute.xlu0 %3501  ;;  %v6338_v42 = vpop.permute.xlu1 %3596  ;;  %v3443_v47 = vmul.f32 %v6300_v23, %v6367_v15  ;;  %v3442_v61 = vmul.f32 %v6300_v23, %v6370_v12  ;;  %v3475_v28 = vmul.f32 %v6306_v32, %v6367_v15  ;;  %v3474_v56 = vmul.f32 %v6306_v32, %v6370_v12 }
 0xbef   : > { %v3505_v44 = vmul.f32 %v6316_v13, %v6272_v39  ;;  %v3504_v21 = vmul.f32 %v6316_v13, %v6270_v26  ;;  %v3600_v48 = vmul.f32 %v6338_v42, %v6272_v39  ;;  %v3599_v7 = vmul.f32 %v6338_v42, %v6270_v26 }
 0xbf0   : > { %v3507_v1 = vmul.f32 %v6316_v13, %v6367_v15  ;;  %v3506_v63 = vmul.f32 %v6316_v13, %v6370_v12  ;;  %v3539_v3 = vmul.f32 %v6322_v33, %v6367_v15  ;;  %v3538_v38 = vmul.f32 %v6322_v33, %v6370_v12 }
 0xbf1   : > { %3384 = vrot.lane.b32.xlu0 %v3376_v36, %s4005_s30  ;;  %v3602_v6 = vmul.f32 %v6338_v42, %v6367_v15  ;;  %v3601_v22 = vmul.f32 %v6338_v42, %v6370_v12 }
 0xbf2   : > { %3386 = vrot.lane.b32.xlu1 %v3377_v19, %s4005_s30  ;;  %v6332_v41 = vpop.permute.xlu0 %3564  ;;  %v6354_v62 = vpop.permute.xlu1 %3660 }
 0xbf3   : > { %v3568_v37 = vmul.f32 %v6332_v41, %v6272_v39  ;;  %v3567_v45 = vmul.f32 %v6332_v41, %v6270_v26  ;;  %v3664_v59 = vmul.f32 %v6354_v62, %v6272_v39  ;;  %v3663_v46 = vmul.f32 %v6354_v62, %v6270_v26 }
 0xbf4   : > { %v3570_v10 = vmul.f32 %v6332_v41, %v6367_v15  ;;  %v3569_v50 = vmul.f32 %v6332_v41, %v6370_v12  ;;  %v3666_v20 = vmul.f32 %v6354_v62, %v6367_v15  ;;  %v3665_v5 = vmul.f32 %v6354_v62, %v6370_v12 }
 0xbf5   : > { %3416 = vrot.lane.b32.xlu0 %v3408_v29, %s4006_s6 }
 0xbf6   : > { %3418 = vrot.lane.b32.xlu1 %v3409_v17, %s4006_s6  ;;  %v6348_v58 = vpop.permute.xlu0 %3628  ;;  %v3725_v30 = vpop.permute.xlu1 %3724  ;;  %v6457_v17 = vld [vmem:[%s6511_s3] ss:$0 sm:$0xff] }
 0xbf7   : > { %v3632_v34 = vmul.f32 %v6348_v58, %v6272_v39  ;;  %v3631_v54 = vmul.f32 %v6348_v58, %v6270_v26  ;;  %v3634_v18 = vmul.f32 %v6348_v58, %v6367_v15  ;;  %v3633_v51 = vmul.f32 %v6348_v58, %v6370_v12 }
 0xbf8   : > { %v3728_v35 = vmul.f32 %v3725_v30, %v6272_v39  ;;  %v3727_v60 = vmul.f32 %v3725_v30, %v6270_v26  ;;  %v3730_v19 = vmul.f32 %v3725_v30, %v6367_v15  ;;  %v3729_v36 = vmul.f32 %v3725_v30, %v6370_v12 }
 0xbf9   : > { %3448 = vrot.lane.b32.xlu0 %v3440_v57, %s4007_s11  ;;  %v3297_v29 = vmul.f32 %v6457_v17, %v6270_v26 }
 0xbfa   : > { %3450 = vrot.lane.b32.xlu1 %v3441_v8, %s4007_s11  ;;  %v3693_v24 = vpop.permute.xlu0 %3692 }
 0xbfb   : > { %v3696_v55 = vmul.f32 %v3693_v24, %v6272_v39  ;;  %v3695_v0 = vmul.f32 %v3693_v24, %v6270_v26  ;;  %v3698_v14 = vmul.f32 %v3693_v24, %v6367_v15  ;;  %v3697_v16 = vmul.f32 %v3693_v24, %v6370_v12  ;;  %v6464_v39 = vld [vmem:[%s6512_s4 + $0x2] ss:$0 sm:$0xff] }
 0xbfc   : > { %v3299_v8 = vadd.f32 %v6464_v39, %v3297_v29 }
 0xbfd   : > { %3480 = vrot.lane.b32.xlu0 %v3472_v27, %s4008_s28 }
 0xbfe   : > { %3482 = vrot.lane.b32.xlu1 %v3473_v53, %s4008_s28 }
 0xc01   : > { %3512 = vrot.lane.b32.xlu0 %v3504_v21, %s4009_s12 }
 0xc02   : > { %3514 = vrot.lane.b32.xlu1 %v3505_v44, %s4009_s12 }
 0xc05   : > { %3544 = vrot.lane.b32.xlu0 %v3536_v4, %s3982_s13 }
 0xc06   : > { %3546 = vrot.lane.b32.xlu1 %v3537_v43, %s3982_s13 }
 0xc09   : > { %3575 = vrot.lane.b32.xlu0 %v3567_v45, %s4010_s23 }
 0xc0a   : > { %3577 = vrot.lane.b32.xlu1 %v3568_v37, %s4010_s23 }
 0xc0d   : > { %3607 = vrot.lane.b32.xlu0 %v3599_v7, %s4011_s27 }
 0xc0e   : > { %3609 = vrot.lane.b32.xlu1 %v3600_v48, %s4011_s27 }
 0xc11   : > { %3639 = vrot.lane.b32.xlu0 %v3631_v54, %s4012_s22 }
 0xc12   : > { %3641 = vrot.lane.b32.xlu1 %v3632_v34, %s4012_s22 }
 0xc15   : > { %3671 = vrot.lane.b32.xlu0 %v3663_v46, %s4013_s14 }
 0xc16   : > { %3673 = vrot.lane.b32.xlu1 %v3664_v59, %s4013_s14 }
 0xc19   : > { %3703 = vrot.lane.b32.xlu0 %v3695_v0, %s4014_s16 }
 0xc1a   : > { %3705 = vrot.lane.b32.xlu1 %v3696_v55, %s4014_s16 }
 0xc1d   : > { %3324 = vrot.lane.b32.xlu0 %v3314_v52, %s4003_s25 }
 0xc1e   : > { %3326 = vrot.lane.b32.xlu1 %v3315_v49, %s4003_s25 }
 0xc21   : > { %3356 = vrot.lane.b32.xlu0 %v3346_v11, %s4004_s26 }
 0xc22   : > { %3358 = vrot.lane.b32.xlu1 %v3347_v40, %s4004_s26 }
 0xc25   : > { %3388 = vrot.lane.b32.xlu0 %v3378_v2, %s4005_s30 }
 0xc26   : > { %3390 = vrot.lane.b32.xlu1 %v3379_v9, %s4005_s30 }
 0xc29   : > { %3420 = vrot.lane.b32.xlu0 %v3410_v25, %s4006_s6 }
 0xc2a   : > { %3422 = vrot.lane.b32.xlu1 %v3411_v31, %s4006_s6 }
 0xc2d   : > { %3452 = vrot.lane.b32.xlu0 %v3442_v61, %s4007_s11 }
 0xc2e   : > { %3454 = vrot.lane.b32.xlu1 %v3443_v47, %s4007_s11 }
 0xc31   : > { %3484 = vrot.lane.b32.xlu0 %v3474_v56, %s4008_s28 }
 0xc32   : > { %3486 = vrot.lane.b32.xlu1 %v3475_v28, %s4008_s28 }
 0xc35   : > { %3516 = vrot.lane.b32.xlu0 %v3506_v63, %s4009_s12 }
 0xc36   : > { %3518 = vrot.lane.b32.xlu1 %v3507_v1, %s4009_s12 }
 0xc39   : > { %3548 = vrot.lane.b32.xlu0 %v3538_v38, %s3982_s13 }
 0xc3a   : > { %3550 = vrot.lane.b32.xlu1 %v3539_v3, %s3982_s13  ;;  %s4015_s13 = smov 114  }
 0xc3d   : > { %3579 = vrot.lane.b32.xlu0 %v3569_v50, %s4010_s23 }
 0xc3e   : > { %3581 = vrot.lane.b32.xlu1 %v3570_v10, %s4010_s23 }
 0xc41   : > { %3611 = vrot.lane.b32.xlu0 %v3601_v22, %s4011_s27 }
 0xc42   : > { %3613 = vrot.lane.b32.xlu1 %v3602_v6, %s4011_s27 }
 0xc45   : > { %3643 = vrot.lane.b32.xlu0 %v3633_v51, %s4012_s22 }
 0xc46   : > { %3645 = vrot.lane.b32.xlu1 %v3634_v18, %s4012_s22 }
 0xc49   : > { %3675 = vrot.lane.b32.xlu0 %v3665_v5, %s4013_s14 }
 0xc4a   : > { %3677 = vrot.lane.b32.xlu1 %v3666_v20, %s4013_s14 }
 0xc4d   : > { %3707 = vrot.lane.b32.xlu0 %v3697_v16, %s4014_s16 }
 0xc4e   : > { %3709 = vrot.lane.b32.xlu1 %v3698_v14, %s4014_s16 }
 0xc51   : > { %3735 = vrot.lane.b32.xlu0 %v3727_v60, %s4015_s13  ;;  %v3298_v60 = vmul.f32 %v6457_v17, %v6370_v12 }
 0xc52   : > { %3737 = vrot.lane.b32.xlu1 %v3728_v35, %s4015_s13 }
 0xc55   : > { %3739 = vrot.lane.b32.xlu0 %v3729_v36, %s4015_s13 }
 0xc56   : > { %3741 = vrot.lane.b32.xlu1 %v3730_v19, %s4015_s13 }
 0xc5b   : > { %v3321_v23 = vpop.permute.xlu0 %3320 }
 0xc5c   : > { %v3323_v32 = vpop.permute.xlu1 %3322 }
 0xc5d   : > { %v3329_v57 = vsel %vm3328_vm10, %v3321_v23, %v3323_v32  ;;  %v3300_v23 = vadd.f32 %v6464_v39, %v3298_v60 }
 0xc5e   : > { %v3333_v53 = vadd.f32 %v3329_v57, %v3299_v8 }
 0xc5f   : > { %v3353_v13 = vpop.permute.xlu0 %3352 }
 0xc60   : > { %v3355_v27 = vpop.permute.xlu1 %3354 }
 0xc61   : > { %v3361_v44 = vsel %vm3360_vm11, %v3353_v13, %v3355_v27 }
 0xc62   : > { %v3365_v33 = vadd.f32 %v3361_v44, %v3333_v53 }
 0xc63   : > { %v3385_v21 = vpop.permute.xlu0 %3384 }
 0xc64   : > { %v3387_v26 = vpop.permute.xlu1 %3386 }
 0xc65   : > { %v3393_v43 = vsel %vm3392_vm13, %v3385_v21, %v3387_v26 }
 0xc66   : > { %v3397_v4 = vadd.f32 %v3393_v43, %v3365_v33 }
 0xc67   : > { %v3417_v37 = vpop.permute.xlu0 %3416 }
 0xc68   : > { %v3419_v41 = vpop.permute.xlu1 %3418 }
 0xc69   : > { %v3425_v42 = vsel %vm3424_vm14, %v3417_v37, %v3419_v41 }
 0xc6a   : > { %v3429_v45 = vadd.f32 %v3425_v42, %v3397_v4 }
 0xc6b   : > { %v3449_v7 = vpop.permute.xlu0 %3448 }
 0xc6c   : > { %v3451_v48 = vpop.permute.xlu1 %3450 }
 0xc6d   : > { %v3457_v58 = vsel %vm3456_vm0, %v3449_v7, %v3451_v48 }
 0xc6e   : > { %v3461_v34 = vadd.f32 %v3457_v58, %v3429_v45 }
 0xc6f   : > { %v3481_v54 = vpop.permute.xlu0 %3480 }
 0xc70   : > { %v3483_v62 = vpop.permute.xlu1 %3482 }
 0xc71   : > { %v3489_v59 = vsel %vm3488_vm1, %v3481_v54, %v3483_v62 }
 0xc72   : > { %v3493_v46 = vadd.f32 %v3489_v59, %v3461_v34 }
 0xc73   : > { %v3513_v55 = vpop.permute.xlu0 %3512 }
 0xc74   : > { %v3515_v24 = vpop.permute.xlu1 %3514 }
 0xc75   : > { %v3521_v15 = vsel %vm3520_vm7, %v3513_v55, %v3515_v24 }
 0xc76   : > { %v3525_v0 = vadd.f32 %v3521_v15, %v3493_v46 }
 0xc77   : > { %v3545_v52 = vpop.permute.xlu0 %3544 }
 0xc78   : > { %v3547_v49 = vpop.permute.xlu1 %3546 }
 0xc79   : > { %v3552_v40 = vsel %vm300_vm12, %v3545_v52, %v3547_v49 }
 0xc7a   : > { %v3556_v11 = vadd.f32 %v3552_v40, %v3525_v0 }
 0xc7b   : > { %v3576_v2 = vpop.permute.xlu0 %3575 }
 0xc7c   : > { %v3578_v9 = vpop.permute.xlu1 %3577 }
 0xc7d   : > { %v3584_v37 = vsel %vm3583_vm8, %v3576_v2, %v3578_v9 }
 0xc7e   : > { %v3588_v34 = vadd.f32 %v3584_v37, %v3556_v11 }
 0xc7f   : > { %v3608_v25 = vpop.permute.xlu0 %3607 }
 0xc80   : > { %v3610_v31 = vpop.permute.xlu1 %3609 }
 0xc81   : > { %v3616_v48 = vsel %vm3615_vm15, %v3608_v25, %v3610_v31 }
 0xc82   : > { %v3620_v24 = vadd.f32 %v3616_v48, %v3588_v34 }
 0xc83   : > { %v3640_v61 = vpop.permute.xlu0 %3639 }
 0xc84   : > { %v3642_v47 = vpop.permute.xlu1 %3641 }
 0xc85   : > { %v3648_v59 = vsel %vm3647_vm3, %v3640_v61, %v3642_v47 }
 0xc86   : > { %v3652_v52 = vadd.f32 %v3648_v59, %v3620_v24 }
 0xc87   : > { %v3672_v56 = vpop.permute.xlu0 %3671 }
 0xc88   : > { %v3674_v28 = vpop.permute.xlu1 %3673 }
 0xc89   : > { %v3680_v15 = vsel %vm3679_vm5, %v3672_v56, %v3674_v28 }
 0xc8a   : > { %v3684_v31 = vadd.f32 %v3680_v15, %v3652_v52 }
 0xc8b   : > { %v3704_v63 = vpop.permute.xlu0 %3703 }
 0xc8c   : > { %v3706_v1 = vpop.permute.xlu1 %3705 }
 0xc8d   : > { %v3712_v11 = vsel %vm3711_vm6, %v3704_v63, %v3706_v1 }
 0xc8f   : > { %v3325_v38 = vpop.permute.xlu0 %3324 }
 0xc90   : > { %v3327_v3 = vpop.permute.xlu1 %3326 }
 0xc91   : > { %v3330_v29 = vsel %vm3328_vm10, %v3325_v38, %v3327_v3  ;;  %v3716_v3 = vadd.f32 %v3712_v11, %v3684_v31 }
 0xc92   : > { %v3334_v57 = vadd.f32 %v3330_v29, %v3300_v23 }
 0xc93   : > { %v3357_v50 = vpop.permute.xlu0 %3356 }
 0xc94   : > { %v3359_v10 = vpop.permute.xlu1 %3358 }
 0xc95   : > { %v3362_v8 = vsel %vm3360_vm11, %v3357_v50, %v3359_v10 }
 0xc96   : > { %v3366_v13 = vadd.f32 %v3362_v8, %v3334_v57 }
 0xc97   : > { %v3389_v22 = vpop.permute.xlu0 %3388 }
 0xc98   : > { %v3391_v6 = vpop.permute.xlu1 %3390 }
 0xc99   : > { %v3394_v27 = vsel %vm3392_vm13, %v3389_v22, %v3391_v6  ;;  %v3967_v22 = vld [vmem:[%s4074_s7] sm:$0xff] }
 0xc9a   : > { %v3398_v26 = vadd.f32 %v3394_v27, %v3366_v13 }
 0xc9b   : > { %v3421_v51 = vpop.permute.xlu0 %3420 }
 0xc9c   : > { %v3423_v18 = vpop.permute.xlu1 %3422 }
 0xc9d   : > { %v3426_v44 = vsel %vm3424_vm14, %v3421_v51, %v3423_v18 }
 0xc9e   : > { %v3430_v17 = vadd.f32 %v3426_v44, %v3398_v26 }
 0xc9f   : > { %v3453_v5 = vpop.permute.xlu0 %3452 }
 0xca0   : > { %v3455_v20 = vpop.permute.xlu1 %3454 }
 0xca1   : > { %v3458_v12 = vsel %vm3456_vm0, %v3453_v5, %v3455_v20 }
 0xca2   : > { %v3462_v4 = vadd.f32 %v3458_v12, %v3430_v17 }
 0xca3   : > { %v3485_v30 = vpop.permute.xlu0 %3484 }
 0xca4   : > { %v3487_v14 = vpop.permute.xlu1 %3486 }
 0xca5   : > { %v3490_v43 = vsel %vm3488_vm1, %v3485_v30, %v3487_v14  ;;  %v3968_v14 = vld [vmem:[%s4074_s7 + $0x8] sm:$0xff] }
 0xca6   : > { %v3494_v45 = vadd.f32 %v3490_v43, %v3462_v4 }
 0xca7   : > { %v3517_v35 = vpop.permute.xlu0 %3516 }
 0xca8   : > { %v3519_v16 = vpop.permute.xlu1 %3518 }
 0xca9   : > { %v3522_v42 = vsel %vm3520_vm7, %v3517_v35, %v3519_v16 }
 0xcaa   : > { %v3526_v62 = vadd.f32 %v3522_v42, %v3494_v45 }
 0xcab   : > { %v3549_v36 = vpop.permute.xlu0 %3548 }
 0xcac   : > { %v3551_v19 = vpop.permute.xlu1 %3550 }
 0xcad   : > { %v3553_v7 = vsel %vm300_vm12, %v3549_v36, %v3551_v19  ;;  %vm3743_vm12 = vcmask 932864  }
 0xcae   : > { %v3557_v55 = vadd.f32 %v3553_v7, %v3526_v62 }
 0xcaf   : > { %v3580_v53 = vpop.permute.xlu0 %3579 }
 0xcb0   : > { %v3582_v32 = vpop.permute.xlu1 %3581 }
 0xcb1   : > { %v3585_v46 = vsel %vm3583_vm8, %v3580_v53, %v3582_v32 }
 0xcb2   : > { %v3589_v40 = vadd.f32 %v3585_v46, %v3557_v55 }
 0xcb3   : > { %v3612_v21 = vpop.permute.xlu0 %3611 }
 0xcb4   : > { %v3614_v33 = vpop.permute.xlu1 %3613 }
 0xcb5   : > { %v3617_v0 = vsel %vm3615_vm15, %v3612_v21, %v3614_v33 }
 0xcb6   : > { %v3621_v25 = vadd.f32 %v3617_v0, %v3589_v40 }
 0xcb7   : > { %v3644_v41 = vpop.permute.xlu0 %3643 }
 0xcb8   : > { %v3646_v39 = vpop.permute.xlu1 %3645 }
 0xcb9   : > { %v3649_v2 = vsel %vm3647_vm3, %v3644_v41, %v3646_v39 }
 0xcba   : > { %v3653_v28 = vadd.f32 %v3649_v2, %v3621_v25 }
 0xcbb   : > { %v3676_v54 = vpop.permute.xlu0 %3675 }
 0xcbc   : > { %v3678_v58 = vpop.permute.xlu1 %3677 }
 0xcbd   : > { %v3681_v47 = vsel %vm3679_vm5, %v3676_v54, %v3678_v58 }
 0xcbe   : > { %v3685_v50 = vadd.f32 %v3681_v47, %v3653_v28 }
 0xcbf   : > { %v3708_v9 = vpop.permute.xlu0 %3707 }
 0xcc0   : > { %v3710_v49 = vpop.permute.xlu1 %3709 }
 0xcc1   : > { %v3713_v38 = vsel %vm3711_vm6, %v3708_v9, %v3710_v49 }
 0xcc2   : > { %v3717_v63 = vadd.f32 %v3713_v38, %v3685_v50 }
 0xcc3   : > { %v3736_v56 = vpop.permute.xlu0 %3735 }
 0xcc4   : > { %v3738_v61 = vpop.permute.xlu1 %3737 }
 0xcc5   : > { %v3744_v10 = vsel %vm3743_vm12, %v3736_v56, %v3738_v61 }
 0xcc6   : > { %v3748_v6 = vadd.f32 %v3744_v10, %v3716_v3 }
 0xcc7   : > { %v3740_v51 = vpop.permute.xlu0 %3739 }
 0xcc8   : > { %v3742_v1 = vpop.permute.xlu1 %3741  ;;  %v3750_v18 = vmul.f32 %v3967_v22, %v3748_v6 }
 0xcc9   : > { %v3745_v20 = vsel %vm3743_vm12, %v3740_v51, %v3742_v1 }
 0xcca   : > { %3752 = vst [vmem:[%s224_s21] sm:$0xff] %v3750_v18  ;;  %v3749_v5 = vadd.f32 %v3745_v20, %v3717_v63 }
 0xccc   : > { %v3751_v30 = vmul.f32 %v3968_v14, %v3749_v5 }
 0xcce   : > { %3753 = vst [vmem:[%s224_s21 + $0x8] sm:$0xff] %v3751_v30 }
 0xccf PF: > { %s15_s18 = sadd.s32 1, %s3975_s18  }
 0xcd0   : > { %p12_p4 = scmp.ge.s32.totalorder %s15_s18, 4  }
 0xcd2   :  { %14 = sbr.rel (!%p12_p4) target bundleno = 1 (0x1), region = 70 }

</bundles_post_ra>
